<compile_context>
chip_gen: v7x
topology: tpu7x:2x2x1
jax: 0.10.0
libtpu: 0.0.40
codegen_flags: <defaults>
</compile_context>

<pallas_src>
import numpy as np
import jax
import jax.numpy as jnp
from jax import lax
from jax.experimental import pallas as pl
from jax.experimental.pallas import tpu as pltpu

KERNEL_SIZE = 7
PAD = KERNEL_SIZE // 2
KK = KERNEL_SIZE * KERNEL_SIZE


def _largest_divisor(n, cap, align):
    """Largest divisor d of n with d <= cap and (d == n or d % align == 0)."""
    best = None
    for d in range(1, n + 1):
        if n % d == 0 and d <= cap and (d == n or d % align == 0):
            best = d
    return best


def _make_kernel(Bt, Ct, H, W):
    HW = H * W
    S = PAD * W + PAD                      # max |flat shift| of a 7x7 tap
    CH = 8 if (Ct % 8 == 0) else Ct        # channel chunk for the streamed reduce

    def kernel(x_ref, w_ref, mask_ref, o_ref, sum_ref, max_ref, pad_ref):
        # x_ref   : (Bt, Ct, HW)     VMEM   one (batch-block, channel-block)
        # w_ref   : (2*49,)          SMEM   [49 avg wgts (pre-scaled 1/C), 49 max wgts]
        # mask_ref: (14, HW)         VMEM   7 row + 7 col validity masks (f32 0/1)
        # o_ref   : (Bt, HW)         VMEM   sigmoid(conv) output (lane-dense)
        # sum_ref : (Bt, HW)         VMEM   running channel sum
        # max_ref : (Bt, HW)         VMEM   running channel max
        # pad_ref : (2, Bt, HW+2S)   VMEM   zero-padded flat [sum, max] maps
        k = pl.program_id(1)
        nk = pl.num_programs(1)

        @pl.when(k == 0)
        def _init():
            sum_ref[...] = jnp.zeros_like(sum_ref)
            max_ref[...] = jnp.full_like(max_ref, -jnp.inf)
            # Only the halos need zeroing; the interior is fully overwritten in
            # the finalize step.  Done once per batch block (megacore-safe).
            pad_ref[:, :, 0:S] = jnp.zeros((2, Bt, S), jnp.float32)
            pad_ref[:, :, S + HW:S + HW + S] = jnp.zeros((2, Bt, S), jnp.float32)

        # ---- streamed, lane-dense channel reduction (sum & max) ----
        s_acc = None
        m_acc = None
        for j in range(Ct // CH):
            xc = x_ref[:, j * CH:(j + 1) * CH, :].astype(jnp.float32)  # (Bt, CH, HW)
            cs = jnp.sum(xc, axis=1)
            cm = jnp.max(xc, axis=1)
            s_acc = cs if s_acc is None else s_acc + cs
            m_acc = cm if m_acc is None else jnp.maximum(m_acc, cm)
        sum_ref[...] = sum_ref[...] + s_acc
        max_ref[...] = jnp.maximum(max_ref[...], m_acc)

        # ---- finalize: 7x7 SAME conv over [avg, max] + sigmoid ----
        @pl.when(k == nk - 1)
        def _finalize():
            pad_ref[0, :, S:S + HW] = sum_ref[...]   # 1/C already folded into weights
            pad_ref[1, :, S:S + HW] = max_ref[...]

            row_m = [mask_ref[dh:dh + 1, :] for dh in range(KERNEL_SIZE)]
            col_m = [mask_ref[KERNEL_SIZE + dw:KERNEL_SIZE + dw + 1, :]
                     for dw in range(KERNEL_SIZE)]

            acc = jnp.zeros((Bt, HW), jnp.float32)
            for dh in range(KERNEL_SIZE):
                rm = row_m[dh]
                for dw in range(KERNEL_SIZE):
                    off = S + (dh - PAD) * W + (dw - PAD)
                    win = pad_ref[:, :, off:off + HW]      # (2, Bt, HW): both channels in one read
                    w_avg = w_ref[dh * KERNEL_SIZE + dw]
                    w_max = w_ref[KK + dh * KERNEL_SIZE + dw]
                    acc = acc + (rm * col_m[dw]) * (w_avg * win[0] + w_max * win[1])
            o_ref[...] = jax.nn.sigmoid(acc).astype(o_ref.dtype)

    return kernel


def spatial_attention(x, w):
    """x: (B, C, H, W), w: (1, 2, K, K) -> (B, 1, H, W) = sigmoid(conv7x7([mean_C, max_C]))."""
    B, C, H, W = x.shape
    HW = H * W
    S = PAD * W + PAD

    # Tiling: block batch to amortize per-step overhead; tile C so the (double-
    # buffered) input block stays a few MB (safe for v7x's smaller VMEM).
    Bt = _largest_divisor(B, 8, 8) or B
    ct_cap = max(1, min(64, (2 * 1024 * 1024) // max(1, Bt * HW * 4)))
    Ct = _largest_divisor(C, ct_cap, 8) or C
    nb, nc = B // Bt, C // Ct

    # Host-side prep: lane-dense layout, fold 1/C into avg weights, conv masks.
    x_flat = x.reshape(B, C, HW)
    w_avg = (w[0, 0] / C).reshape(-1)
    w_max = w[0, 1].reshape(-1)
    w_flat = jnp.concatenate([w_avg, w_max]).astype(jnp.float32)      # (98,)

    hh = np.arange(HW) // W
    ww = np.arange(HW) % W
    row_masks = np.stack([((hh + dh - PAD >= 0) & (hh + dh - PAD < H))
                          for dh in range(KERNEL_SIZE)])
    col_masks = np.stack([((ww + dw - PAD >= 0) & (ww + dw - PAD < W))
                          for dw in range(KERNEL_SIZE)])
    masks = jnp.asarray(np.concatenate([row_masks, col_masks], axis=0),
                        dtype=jnp.float32)                            # (14, HW)

    kernel = _make_kernel(Bt, Ct, H, W)

    out_flat = pl.pallas_call(
        kernel,
        out_shape=jax.ShapeDtypeStruct((B, HW), x.dtype),
        grid_spec=pltpu.PrefetchScalarGridSpec(
            num_scalar_prefetch=0,
            grid=(nb, nc),
            in_specs=[
                pl.BlockSpec((Bt, Ct, HW), lambda b, k: (b, k, 0)),
                pl.BlockSpec(memory_space=pltpu.MemorySpace.SMEM),
                pl.BlockSpec((2 * KERNEL_SIZE, HW), lambda b, k: (0, 0)),
            ],
            out_specs=pl.BlockSpec((Bt, HW), lambda b, k: (b, 0)),
            scratch_shapes=[
                pltpu.VMEM((Bt, HW), jnp.float32),                 # running sum
                pltpu.VMEM((Bt, HW), jnp.float32),                 # running max
                pltpu.VMEM((2, Bt, HW + 2 * S), jnp.float32),      # padded flat maps
            ],
        ),
        compiler_params=pltpu.CompilerParams(
            dimension_semantics=("parallel", "arbitrary"),
            vmem_limit_bytes=32 * 1024 * 1024,
        ),
    )(x_flat, w_flat, masks)

    return out_flat.reshape(B, 1, H, W)


def spatial_attention_ref(x, w):
    """Pure-JAX reference matching the PyTorch forward."""
    avg = jnp.mean(x, axis=1, keepdims=True)
    mx = jnp.max(x, axis=1, keepdims=True)
    cat = jnp.concatenate([avg, mx], axis=1)
    out = lax.conv_general_dilated(
        cat, w, window_strides=(1, 1),
        padding=[(PAD, PAD), (PAD, PAD)],
        dimension_numbers=("NCHW", "OIHW", "NCHW"),
    )
    return jax.nn.sigmoid(out)


if __name__ == "__main__":
    key = jax.random.PRNGKey(0)
    kx, kw = jax.random.split(key)

    B, C, H, W = 2, 4, 16, 16
    x = jax.random.normal(kx, (B, C, H, W), dtype=jnp.float32)

    # PyTorch-style kaiming-uniform bound: fan_in = 2*7*7 = 98.
    fan_in = 2 * KERNEL_SIZE * KERNEL_SIZE
    bound = 1.0 / np.sqrt(fan_in)
    w = jax.random.uniform(kw, (1, 2, KERNEL_SIZE, KERNEL_SIZE),
                           minval=-bound, maxval=bound, dtype=jnp.float32)

    out = spatial_attention(x, w)
    out = jax.block_until_ready(out)

    ref = spatial_attention_ref(x, w)
    np.testing.assert_allclose(np.asarray(out), np.asarray(ref),
                               rtol=1e-4, atol=1e-5)

    # TODO(synk): optional CBAM fusion (y = x * attention) could be added as a
    # second output to halve end-to-end HBM traffic, but the module's forward
    # only returns the attention map, so semantics are kept as-is.
    print("KERNEL_OK")
</pallas_src>

<mosaic_0001>
module attributes {stable_mosaic.version = 11 : i64} {
  func.func @kernel(%arg0: i32, %arg1: i32, %arg2: memref<2x4x256xf32, #tpu.memory_space<vmem>>, %arg3: memref<98xf32, #tpu.memory_space<smem>>, %arg4: memref<14x256xf32, #tpu.memory_space<vmem>>, %arg5: memref<2x256xf32, #tpu.memory_space<vmem>>, %arg6: memref<2x256xf32, #tpu.memory_space<vmem>>, %arg7: memref<2x256xf32, #tpu.memory_space<vmem>>, %arg8: memref<2x2x358xf32, #tpu.memory_space<vmem>>) attributes {dimension_semantics = [#tpu.dimension_semantics<parallel>, #tpu.dimension_semantics<arbitrary>], iteration_bounds = array<i64: 1, 1>, scalar_prefetch = 0 : i64, scratch_operands = 3 : i64, tpu.core_type = #tpu.core_type<tc>, window_params = [{transform_indices = @transform_0, window_bounds = array<i64: 2, 4, 256>}, {transform_indices = @transform_1, window_bounds = array<i64: 98>}, {pipeline_mode = #tpu.pipeline_mode<synchronous>, transform_indices = @transform_2, window_bounds = array<i64: 14, 256>}, {transform_indices = @transform_3, window_bounds = array<i64: 2, 256>}]} {
    %c0_i32 = arith.constant 0 : i32
    %0 = arith.cmpi eq, %arg1, %c0_i32 : i32
    %1 = arith.extui %0 : i1 to i32
    %c0_i32_0 = arith.constant 0 : i32
    %2 = arith.cmpi ne, %1, %c0_i32_0 : i32
    scf.if %2 {
      %cst_14 = arith.constant 0.000000e+00 : f32
      %15 = vector.broadcast %cst_14 : f32 to vector<2x256xf32>
      %c0_15 = arith.constant 0 : index
      %c0_16 = arith.constant 0 : index
      %16 = vector.load %arg6[%c0_15, %c0_16] : memref<2x256xf32, #tpu.memory_space<vmem>>, vector<2x256xf32>
      tpu.vector_store %arg6[%c0_15, %c0_16], %15 {strides = array<i32>} : memref<2x256xf32, #tpu.memory_space<vmem>>, vector<2x256xf32>,
      %cst_17 = arith.constant 0xFF800000 : f32
      %17 = vector.broadcast %cst_17 : f32 to vector<2x256xf32>
      %c0_18 = arith.constant 0 : index
      %c0_19 = arith.constant 0 : index
      %18 = vector.load %arg7[%c0_18, %c0_19] : memref<2x256xf32, #tpu.memory_space<vmem>>, vector<2x256xf32>
      tpu.vector_store %arg7[%c0_18, %c0_19], %17 {strides = array<i32>} : memref<2x256xf32, #tpu.memory_space<vmem>>, vector<2x256xf32>,
      %cst_20 = arith.constant 0.000000e+00 : f32
      %19 = vector.broadcast %cst_20 : f32 to vector<2x2x51xf32>
      %c0_21 = arith.constant 0 : index
      %c0_22 = arith.constant 0 : index
      %c0_23 = arith.constant 0 : index
      %20 = vector.load %arg8[%c0_21, %c0_22, %c0_23] : memref<2x2x358xf32, #tpu.memory_space<vmem>>, vector<2x2x51xf32>
      tpu.vector_store %arg8[%c0_21, %c0_22, %c0_23], %19 {strides = array<i32>} : memref<2x2x358xf32, #tpu.memory_space<vmem>>, vector<2x2x51xf32>,
      %cst_24 = arith.constant 0.000000e+00 : f32
      %21 = vector.broadcast %cst_24 : f32 to vector<2x2x51xf32>
      %c0_25 = arith.constant 0 : index
      %c0_26 = arith.constant 0 : index
      %c307 = arith.constant 307 : index
      %22 = vector.load %arg8[%c0_25, %c0_26, %c307] : memref<2x2x358xf32, #tpu.memory_space<vmem>>, vector<2x2x51xf32>
      tpu.vector_store %arg8[%c0_25, %c0_26, %c307], %21 {strides = array<i32>} : memref<2x2x358xf32, #tpu.memory_space<vmem>>, vector<2x2x51xf32>,
    } else {
    }
    %c0 = arith.constant 0 : index
    %c0_1 = arith.constant 0 : index
    %c0_2 = arith.constant 0 : index
    %3 = vector.load %arg2[%c0, %c0_1, %c0_2] : memref<2x4x256xf32, #tpu.memory_space<vmem>>, vector<2x4x256xf32>
    %cst = arith.constant dense<0.000000e+00> : vector<2x256xf32>
    %4 = vector.multi_reduction <add>, %3, %cst [1] : vector<2x4x256xf32> to vector<2x256xf32>
    %cst_3 = arith.constant dense<0xFF800000> : vector<2x256xf32>
    %5 = vector.multi_reduction <maximumf>, %3, %cst_3 [1] : vector<2x4x256xf32> to vector<2x256xf32>
    %c0_4 = arith.constant 0 : index
    %c0_5 = arith.constant 0 : index
    %6 = vector.load %arg6[%c0_4, %c0_5] : memref<2x256xf32, #tpu.memory_space<vmem>>, vector<2x256xf32>
    %7 = arith.addf %6, %4 : vector<2x256xf32>
    %c0_6 = arith.constant 0 : index
    %c0_7 = arith.constant 0 : index
    %8 = vector.load %arg6[%c0_6, %c0_7] : memref<2x256xf32, #tpu.memory_space<vmem>>, vector<2x256xf32>
    tpu.vector_store %arg6[%c0_6, %c0_7], %7 {strides = array<i32>} : memref<2x256xf32, #tpu.memory_space<vmem>>, vector<2x256xf32>,
    %c0_8 = arith.constant 0 : index
    %c0_9 = arith.constant 0 : index
    %9 = vector.load %arg7[%c0_8, %c0_9] : memref<2x256xf32, #tpu.memory_space<vmem>>, vector<2x256xf32>
    %10 = arith.maximumf %9, %5 : vector<2x256xf32>
    %c0_10 = arith.constant 0 : index
    %c0_11 = arith.constant 0 : index
    %11 = vector.load %arg7[%c0_10, %c0_11] : memref<2x256xf32, #tpu.memory_space<vmem>>, vector<2x256xf32>
    tpu.vector_store %arg7[%c0_10, %c0_11], %10 {strides = array<i32>} : memref<2x256xf32, #tpu.memory_space<vmem>>, vector<2x256xf32>,
    %c0_i32_12 = arith.constant 0 : i32
    %12 = arith.cmpi eq, %arg1, %c0_i32_12 : i32
    %13 = arith.extui %12 : i1 to i32
    %c0_i32_13 = arith.constant 0 : i32
    %14 = arith.cmpi ne, %13, %c0_i32_13 : i32
    scf.if %14 {
      %c0_14 = arith.constant 0 : index
      %c0_15 = arith.constant 0 : index
      %15 = vector.load %arg6[%c0_14, %c0_15] : memref<2x256xf32, #tpu.memory_space<vmem>>, vector<2x256xf32>
      %c0_16 = arith.constant 0 : index
      %c0_17 = arith.constant 0 : index
      %c51 = arith.constant 51 : index
      %16 = vector.load %arg8[%c0_16, %c0_17, %c51] : memref<2x2x358xf32, #tpu.memory_space<vmem>>, vector<1x2x256xf32>
      %17 = vector.shape_cast %16 : vector<1x2x256xf32> to vector<2x256xf32>
      %18 = vector.shape_cast %15 : vector<2x256xf32> to vector<1x2x256xf32>
      tpu.vector_store %arg8[%c0_16, %c0_17, %c51], %18 {strides = array<i32>} : memref<2x2x358xf32, #tpu.memory_space<vmem>>, vector<1x2x256xf32>,
      %c0_18 = arith.constant 0 : index
      %c0_19 = arith.constant 0 : index
      %19 = vector.load %arg7[%c0_18, %c0_19] : memref<2x256xf32, #tpu.memory_space<vmem>>, vector<2x256xf32>
      %c1 = arith.constant 1 : index
      %c0_20 = arith.constant 0 : index
      %c51_21 = arith.constant 51 : index
      %20 = vector.load %arg8[%c1, %c0_20, %c51_21] : memref<2x2x358xf32, #tpu.memory_space<vmem>>, vector<1x2x256xf32>
      %21 = vector.shape_cast %20 : vector<1x2x256xf32> to vector<2x256xf32>
      %22 = vector.shape_cast %19 : vector<2x256xf32> to vector<1x2x256xf32>
      tpu.vector_store %arg8[%c1, %c0_20, %c51_21], %22 {strides = array<i32>} : memref<2x2x358xf32, #tpu.memory_space<vmem>>, vector<1x2x256xf32>,
      %c0_22 = arith.constant 0 : index
      %c0_23 = arith.constant 0 : index
      %23 = vector.load %arg4[%c0_22, %c0_23] : memref<14x256xf32, #tpu.memory_space<vmem>>, vector<1x256xf32>
      %c1_24 = arith.constant 1 : index
      %c0_25 = arith.constant 0 : index
      %24 = vector.load %arg4[%c1_24, %c0_25] : memref<14x256xf32, #tpu.memory_space<vmem>>, vector<1x256xf32>
      %c2 = arith.constant 2 : index
      %c0_26 = arith.constant 0 : index
      %25 = vector.load %arg4[%c2, %c0_26] : memref<14x256xf32, #tpu.memory_space<vmem>>, vector<1x256xf32>
      %c3 = arith.constant 3 : index
      %c0_27 = arith.constant 0 : index
      %26 = vector.load %arg4[%c3, %c0_27] : memref<14x256xf32, #tpu.memory_space<vmem>>, vector<1x256xf32>
      %c4 = arith.constant 4 : index
      %c0_28 = arith.constant 0 : index
      %27 = vector.load %arg4[%c4, %c0_28] : memref<14x256xf32, #tpu.memory_space<vmem>>, vector<1x256xf32>
      %c5 = arith.constant 5 : index
      %c0_29 = arith.constant 0 : index
      %28 = vector.load %arg4[%c5, %c0_29] : memref<14x256xf32, #tpu.memory_space<vmem>>, vector<1x256xf32>
      %c6 = arith.constant 6 : index
      %c0_30 = arith.constant 0 : index
      %29 = vector.load %arg4[%c6, %c0_30] : memref<14x256xf32, #tpu.memory_space<vmem>>, vector<1x256xf32>
      %c7 = arith.constant 7 : index
      %c0_31 = arith.constant 0 : index
      %30 = vector.load %arg4[%c7, %c0_31] : memref<14x256xf32, #tpu.memory_space<vmem>>, vector<1x256xf32>
      %c8 = arith.constant 8 : index
      %c0_32 = arith.constant 0 : index
      %31 = vector.load %arg4[%c8, %c0_32] : memref<14x256xf32, #tpu.memory_space<vmem>>, vector<1x256xf32>
      %c9 = arith.constant 9 : index
      %c0_33 = arith.constant 0 : index
      %32 = vector.load %arg4[%c9, %c0_33] : memref<14x256xf32, #tpu.memory_space<vmem>>, vector<1x256xf32>
      %c10 = arith.constant 10 : index
      %c0_34 = arith.constant 0 : index
      %33 = vector.load %arg4[%c10, %c0_34] : memref<14x256xf32, #tpu.memory_space<vmem>>, vector<1x256xf32>
      %c11 = arith.constant 11 : index
      %c0_35 = arith.constant 0 : index
      %34 = vector.load %arg4[%c11, %c0_35] : memref<14x256xf32, #tpu.memory_space<vmem>>, vector<1x256xf32>
      %c12 = arith.constant 12 : index
      %c0_36 = arith.constant 0 : index
      %35 = vector.load %arg4[%c12, %c0_36] : memref<14x256xf32, #tpu.memory_space<vmem>>, vector<1x256xf32>
      %c13 = arith.constant 13 : index
      %c0_37 = arith.constant 0 : index
      %36 = vector.load %arg4[%c13, %c0_37] : memref<14x256xf32, #tpu.memory_space<vmem>>, vector<1x256xf32>
      %cst_38 = arith.constant 0.000000e+00 : f32
      %37 = vector.broadcast %cst_38 : f32 to vector<2x256xf32>
      %c0_39 = arith.constant 0 : index
      %c0_40 = arith.constant 0 : index
      %c0_41 = arith.constant 0 : index
      %38 = vector.load %arg8[%c0_39, %c0_40, %c0_41] : memref<2x2x358xf32, #tpu.memory_space<vmem>>, vector<2x2x256xf32>
      %c0_42 = arith.constant 0 : index
      %39 = memref.load %arg3[%c0_42] : memref<98xf32, #tpu.memory_space<smem>>
      %c49 = arith.constant 49 : index
      %40 = memref.load %arg3[%c49] : memref<98xf32, #tpu.memory_space<smem>>
      %41 = arith.mulf %23, %30 : vector<1x256xf32>
      %42 = vector.extract_strided_slice %38 {offsets = [0, 0, 0], sizes = [1, 2, 256], strides = [1, 1, 1]} : vector<2x2x256xf32> to vector<1x2x256xf32>
      %43 = vector.shape_cast %42 : vector<1x2x256xf32> to vector<2x256xf32>
      %44 = vector.broadcast %39 : f32 to vector<2x256xf32>
      %45 = arith.mulf %44, %43 : vector<2x256xf32>
      %46 = vector.extract_strided_slice %38 {offsets = [1, 0, 0], sizes = [1, 2, 256], strides = [1, 1, 1]} : vector<2x2x256xf32> to vector<1x2x256xf32>
      %47 = vector.shape_cast %46 : vector<1x2x256xf32> to vector<2x256xf32>
      %48 = vector.broadcast %40 : f32 to vector<2x256xf32>
      %49 = arith.mulf %48, %47 : vector<2x256xf32>
      %50 = arith.addf %45, %49 : vector<2x256xf32>
      %51 = vector.broadcast %41 : vector<1x256xf32> to vector<2x256xf32>
      %52 = arith.mulf %51, %50 : vector<2x256xf32>
      %53 = arith.addf %37, %52 : vector<2x256xf32>
      %c0_43 = arith.constant 0 : index
      %c0_44 = arith.constant 0 : index
      %c1_45 = arith.constant 1 : index
      %54 = vector.load %arg8[%c0_43, %c0_44, %c1_45] : memref<2x2x358xf32, #tpu.memory_space<vmem>>, vector<2x2x256xf32>
      %c1_46 = arith.constant 1 : index
      %55 = memref.load %arg3[%c1_46] : memref<98xf32, #tpu.memory_space<smem>>
      %c50 = arith.constant 50 : index
      %56 = memref.load %arg3[%c50] : memref<98xf32, #tpu.memory_space<smem>>
      %57 = arith.mulf %23, %31 : vector<1x256xf32>
      %58 = vector.extract_strided_slice %54 {offsets = [0, 0, 0], sizes = [1, 2, 256], strides = [1, 1, 1]} : vector<2x2x256xf32> to vector<1x2x256xf32>
      %59 = vector.shape_cast %58 : vector<1x2x256xf32> to vector<2x256xf32>
      %60 = vector.broadcast %55 : f32 to vector<2x256xf32>
      %61 = arith.mulf %60, %59 : vector<2x256xf32>
      %62 = vector.extract_strided_slice %54 {offsets = [1, 0, 0], sizes = [1, 2, 256], strides = [1, 1, 1]} : vector<2x2x256xf32> to vector<1x2x256xf32>
      %63 = vector.shape_cast %62 : vector<1x2x256xf32> to vector<2x256xf32>
      %64 = vector.broadcast %56 : f32 to vector<2x256xf32>
      %65 = arith.mulf %64, %63 : vector<2x256xf32>
      %66 = arith.addf %61, %65 : vector<2x256xf32>
      %67 = vector.broadcast %57 : vector<1x256xf32> to vector<2x256xf32>
      %68 = arith.mulf %67, %66 : vector<2x256xf32>
      %69 = arith.addf %53, %68 : vector<2x256xf32>
      %c0_47 = arith.constant 0 : index
      %c0_48 = arith.constant 0 : index
      %c2_49 = arith.constant 2 : index
      %70 = vector.load %arg8[%c0_47, %c0_48, %c2_49] : memref<2x2x358xf32, #tpu.memory_space<vmem>>, vector<2x2x256xf32>
      %c2_50 = arith.constant 2 : index
      %71 = memref.load %arg3[%c2_50] : memref<98xf32, #tpu.memory_space<smem>>
      %c51_51 = arith.constant 51 : index
      %72 = memref.load %arg3[%c51_51] : memref<98xf32, #tpu.memory_space<smem>>
      %73 = arith.mulf %23, %32 : vector<1x256xf32>
      %74 = vector.extract_strided_slice %70 {offsets = [0, 0, 0], sizes = [1, 2, 256], strides = [1, 1, 1]} : vector<2x2x256xf32> to vector<1x2x256xf32>
      %75 = vector.shape_cast %74 : vector<1x2x256xf32> to vector<2x256xf32>
      %76 = vector.broadcast %71 : f32 to vector<2x256xf32>
      %77 = arith.mulf %76, %75 : vector<2x256xf32>
      %78 = vector.extract_strided_slice %70 {offsets = [1, 0, 0], sizes = [1, 2, 256], strides = [1, 1, 1]} : vector<2x2x256xf32> to vector<1x2x256xf32>
      %79 = vector.shape_cast %78 : vector<1x2x256xf32> to vector<2x256xf32>
      %80 = vector.broadcast %72 : f32 to vector<2x256xf32>
      %81 = arith.mulf %80, %79 : vector<2x256xf32>
      %82 = arith.addf %77, %81 : vector<2x256xf32>
      %83 = vector.broadcast %73 : vector<1x256xf32> to vector<2x256xf32>
      %84 = arith.mulf %83, %82 : vector<2x256xf32>
      %85 = arith.addf %69, %84 : vector<2x256xf32>
      %c0_52 = arith.constant 0 : index
      %c0_53 = arith.constant 0 : index
      %c3_54 = arith.constant 3 : index
      %86 = vector.load %arg8[%c0_52, %c0_53, %c3_54] : memref<2x2x358xf32, #tpu.memory_space<vmem>>, vector<2x2x256xf32>
      %c3_55 = arith.constant 3 : index
      %87 = memref.load %arg3[%c3_55] : memref<98xf32, #tpu.memory_space<smem>>
      %c52 = arith.constant 52 : index
      %88 = memref.load %arg3[%c52] : memref<98xf32, #tpu.memory_space<smem>>
      %89 = arith.mulf %23, %33 : vector<1x256xf32>
      %90 = vector.extract_strided_slice %86 {offsets = [0, 0, 0], sizes = [1, 2, 256], strides = [1, 1, 1]} : vector<2x2x256xf32> to vector<1x2x256xf32>
      %91 = vector.shape_cast %90 : vector<1x2x256xf32> to vector<2x256xf32>
      %92 = vector.broadcast %87 : f32 to vector<2x256xf32>
      %93 = arith.mulf %92, %91 : vector<2x256xf32>
      %94 = vector.extract_strided_slice %86 {offsets = [1, 0, 0], sizes = [1, 2, 256], strides = [1, 1, 1]} : vector<2x2x256xf32> to vector<1x2x256xf32>
      %95 = vector.shape_cast %94 : vector<1x2x256xf32> to vector<2x256xf32>
      %96 = vector.broadcast %88 : f32 to vector<2x256xf32>
      %97 = arith.mulf %96, %95 : vector<2x256xf32>
      %98 = arith.addf %93, %97 : vector<2x256xf32>
      %99 = vector.broadcast %89 : vector<1x256xf32> to vector<2x256xf32>
      %100 = arith.mulf %99, %98 : vector<2x256xf32>
      %101 = arith.addf %85, %100 : vector<2x256xf32>
      %c0_56 = arith.constant 0 : index
      %c0_57 = arith.constant 0 : index
      %c4_58 = arith.constant 4 : index
      %102 = vector.load %arg8[%c0_56, %c0_57, %c4_58] : memref<2x2x358xf32, #tpu.memory_space<vmem>>, vector<2x2x256xf32>
      %c4_59 = arith.constant 4 : index
      %103 = memref.load %arg3[%c4_59] : memref<98xf32, #tpu.memory_space<smem>>
      %c53 = arith.constant 53 : index
      %104 = memref.load %arg3[%c53] : memref<98xf32, #tpu.memory_space<smem>>
      %105 = arith.mulf %23, %34 : vector<1x256xf32>
      %106 = vector.extract_strided_slice %102 {offsets = [0, 0, 0], sizes = [1, 2, 256], strides = [1, 1, 1]} : vector<2x2x256xf32> to vector<1x2x256xf32>
      %107 = vector.shape_cast %106 : vector<1x2x256xf32> to vector<2x256xf32>
      %108 = vector.broadcast %103 : f32 to vector<2x256xf32>
      %109 = arith.mulf %108, %107 : vector<2x256xf32>
      %110 = vector.extract_strided_slice %102 {offsets = [1, 0, 0], sizes = [1, 2, 256], strides = [1, 1, 1]} : vector<2x2x256xf32> to vector<1x2x256xf32>
      %111 = vector.shape_cast %110 : vector<1x2x256xf32> to vector<2x256xf32>
      %112 = vector.broadcast %104 : f32 to vector<2x256xf32>
      %113 = arith.mulf %112, %111 : vector<2x256xf32>
      %114 = arith.addf %109, %113 : vector<2x256xf32>
      %115 = vector.broadcast %105 : vector<1x256xf32> to vector<2x256xf32>
      %116 = arith.mulf %115, %114 : vector<2x256xf32>
      %117 = arith.addf %101, %116 : vector<2x256xf32>
      %c0_60 = arith.constant 0 : index
      %c0_61 = arith.constant 0 : index
      %c5_62 = arith.constant 5 : index
      %118 = vector.load %arg8[%c0_60, %c0_61, %c5_62] : memref<2x2x358xf32, #tpu.memory_space<vmem>>, vector<2x2x256xf32>
      %c5_63 = arith.constant 5 : index
      %119 = memref.load %arg3[%c5_63] : memref<98xf32, #tpu.memory_space<smem>>
      %c54 = arith.constant 54 : index
      %120 = memref.load %arg3[%c54] : memref<98xf32, #tpu.memory_space<smem>>
      %121 = arith.mulf %23, %35 : vector<1x256xf32>
      %122 = vector.extract_strided_slice %118 {offsets = [0, 0, 0], sizes = [1, 2, 256], strides = [1, 1, 1]} : vector<2x2x256xf32> to vector<1x2x256xf32>
      %123 = vector.shape_cast %122 : vector<1x2x256xf32> to vector<2x256xf32>
      %124 = vector.broadcast %119 : f32 to vector<2x256xf32>
      %125 = arith.mulf %124, %123 : vector<2x256xf32>
      %126 = vector.extract_strided_slice %118 {offsets = [1, 0, 0], sizes = [1, 2, 256], strides = [1, 1, 1]} : vector<2x2x256xf32> to vector<1x2x256xf32>
      %127 = vector.shape_cast %126 : vector<1x2x256xf32> to vector<2x256xf32>
      %128 = vector.broadcast %120 : f32 to vector<2x256xf32>
      %129 = arith.mulf %128, %127 : vector<2x256xf32>
      %130 = arith.addf %125, %129 : vector<2x256xf32>
      %131 = vector.broadcast %121 : vector<1x256xf32> to vector<2x256xf32>
      %132 = arith.mulf %131, %130 : vector<2x256xf32>
      %133 = arith.addf %117, %132 : vector<2x256xf32>
      %c0_64 = arith.constant 0 : index
      %c0_65 = arith.constant 0 : index
      %c6_66 = arith.constant 6 : index
      %134 = vector.load %arg8[%c0_64, %c0_65, %c6_66] : memref<2x2x358xf32, #tpu.memory_space<vmem>>, vector<2x2x256xf32>
      %c6_67 = arith.constant 6 : index
      %135 = memref.load %arg3[%c6_67] : memref<98xf32, #tpu.memory_space<smem>>
      %c55 = arith.constant 55 : index
      %136 = memref.load %arg3[%c55] : memref<98xf32, #tpu.memory_space<smem>>
      %137 = arith.mulf %23, %36 : vector<1x256xf32>
      %138 = vector.extract_strided_slice %134 {offsets = [0, 0, 0], sizes = [1, 2, 256], strides = [1, 1, 1]} : vector<2x2x256xf32> to vector<1x2x256xf32>
      %139 = vector.shape_cast %138 : vector<1x2x256xf32> to vector<2x256xf32>
      %140 = vector.broadcast %135 : f32 to vector<2x256xf32>
      %141 = arith.mulf %140, %139 : vector<2x256xf32>
      %142 = vector.extract_strided_slice %134 {offsets = [1, 0, 0], sizes = [1, 2, 256], strides = [1, 1, 1]} : vector<2x2x256xf32> to vector<1x2x256xf32>
      %143 = vector.shape_cast %142 : vector<1x2x256xf32> to vector<2x256xf32>
      %144 = vector.broadcast %136 : f32 to vector<2x256xf32>
      %145 = arith.mulf %144, %143 : vector<2x256xf32>
      %146 = arith.addf %141, %145 : vector<2x256xf32>
      %147 = vector.broadcast %137 : vector<1x256xf32> to vector<2x256xf32>
      %148 = arith.mulf %147, %146 : vector<2x256xf32>
      %149 = arith.addf %133, %148 : vector<2x256xf32>
      %c0_68 = arith.constant 0 : index
      %c0_69 = arith.constant 0 : index
      %c16 = arith.constant 16 : index
      %150 = vector.load %arg8[%c0_68, %c0_69, %c16] : memref<2x2x358xf32, #tpu.memory_space<vmem>>, vector<2x2x256xf32>
      %c7_70 = arith.constant 7 : index
      %151 = memref.load %arg3[%c7_70] : memref<98xf32, #tpu.memory_space<smem>>
      %c56 = arith.constant 56 : index
      %152 = memref.load %arg3[%c56] : memref<98xf32, #tpu.memory_space<smem>>
      %153 = arith.mulf %24, %30 : vector<1x256xf32>
      %154 = vector.extract_strided_slice %150 {offsets = [0, 0, 0], sizes = [1, 2, 256], strides = [1, 1, 1]} : vector<2x2x256xf32> to vector<1x2x256xf32>
      %155 = vector.shape_cast %154 : vector<1x2x256xf32> to vector<2x256xf32>
      %156 = vector.broadcast %151 : f32 to vector<2x256xf32>
      %157 = arith.mulf %156, %155 : vector<2x256xf32>
      %158 = vector.extract_strided_slice %150 {offsets = [1, 0, 0], sizes = [1, 2, 256], strides = [1, 1, 1]} : vector<2x2x256xf32> to vector<1x2x256xf32>
      %159 = vector.shape_cast %158 : vector<1x2x256xf32> to vector<2x256xf32>
      %160 = vector.broadcast %152 : f32 to vector<2x256xf32>
      %161 = arith.mulf %160, %159 : vector<2x256xf32>
      %162 = arith.addf %157, %161 : vector<2x256xf32>
      %163 = vector.broadcast %153 : vector<1x256xf32> to vector<2x256xf32>
      %164 = arith.mulf %163, %162 : vector<2x256xf32>
      %165 = arith.addf %149, %164 : vector<2x256xf32>
      %c0_71 = arith.constant 0 : index
      %c0_72 = arith.constant 0 : index
      %c17 = arith.constant 17 : index
      %166 = vector.load %arg8[%c0_71, %c0_72, %c17] : memref<2x2x358xf32, #tpu.memory_space<vmem>>, vector<2x2x256xf32>
      %c8_73 = arith.constant 8 : index
      %167 = memref.load %arg3[%c8_73] : memref<98xf32, #tpu.memory_space<smem>>
      %c57 = arith.constant 57 : index
      %168 = memref.load %arg3[%c57] : memref<98xf32, #tpu.memory_space<smem>>
      %169 = arith.mulf %24, %31 : vector<1x256xf32>
      %170 = vector.extract_strided_slice %166 {offsets = [0, 0, 0], sizes = [1, 2, 256], strides = [1, 1, 1]} : vector<2x2x256xf32> to vector<1x2x256xf32>
      %171 = vector.shape_cast %170 : vector<1x2x256xf32> to vector<2x256xf32>
      %172 = vector.broadcast %167 : f32 to vector<2x256xf32>
      %173 = arith.mulf %172, %171 : vector<2x256xf32>
      %174 = vector.extract_strided_slice %166 {offsets = [1, 0, 0], sizes = [1, 2, 256], strides = [1, 1, 1]} : vector<2x2x256xf32> to vector<1x2x256xf32>
      %175 = vector.shape_cast %174 : vector<1x2x256xf32> to vector<2x256xf32>
      %176 = vector.broadcast %168 : f32 to vector<2x256xf32>
      %177 = arith.mulf %176, %175 : vector<2x256xf32>
      %178 = arith.addf %173, %177 : vector<2x256xf32>
      %179 = vector.broadcast %169 : vector<1x256xf32> to vector<2x256xf32>
      %180 = arith.mulf %179, %178 : vector<2x256xf32>
      %181 = arith.addf %165, %180 : vector<2x256xf32>
      %c0_74 = arith.constant 0 : index
      %c0_75 = arith.constant 0 : index
      %c18 = arith.constant 18 : index
      %182 = vector.load %arg8[%c0_74, %c0_75, %c18] : memref<2x2x358xf32, #tpu.memory_space<vmem>>, vector<2x2x256xf32>
      %c9_76 = arith.constant 9 : index
      %183 = memref.load %arg3[%c9_76] : memref<98xf32, #tpu.memory_space<smem>>
      %c58 = arith.constant 58 : index
      %184 = memref.load %arg3[%c58] : memref<98xf32, #tpu.memory_space<smem>>
      %185 = arith.mulf %24, %32 : vector<1x256xf32>
      %186 = vector.extract_strided_slice %182 {offsets = [0, 0, 0], sizes = [1, 2, 256], strides = [1, 1, 1]} : vector<2x2x256xf32> to vector<1x2x256xf32>
      %187 = vector.shape_cast %186 : vector<1x2x256xf32> to vector<2x256xf32>
      %188 = vector.broadcast %183 : f32 to vector<2x256xf32>
      %189 = arith.mulf %188, %187 : vector<2x256xf32>
      %190 = vector.extract_strided_slice %182 {offsets = [1, 0, 0], sizes = [1, 2, 256], strides = [1, 1, 1]} : vector<2x2x256xf32> to vector<1x2x256xf32>
      %191 = vector.shape_cast %190 : vector<1x2x256xf32> to vector<2x256xf32>
      %192 = vector.broadcast %184 : f32 to vector<2x256xf32>
      %193 = arith.mulf %192, %191 : vector<2x256xf32>
      %194 = arith.addf %189, %193 : vector<2x256xf32>
      %195 = vector.broadcast %185 : vector<1x256xf32> to vector<2x256xf32>
      %196 = arith.mulf %195, %194 : vector<2x256xf32>
      %197 = arith.addf %181, %196 : vector<2x256xf32>
      %c0_77 = arith.constant 0 : index
      %c0_78 = arith.constant 0 : index
      %c19 = arith.constant 19 : index
      %198 = vector.load %arg8[%c0_77, %c0_78, %c19] : memref<2x2x358xf32, #tpu.memory_space<vmem>>, vector<2x2x256xf32>
      %c10_79 = arith.constant 10 : index
      %199 = memref.load %arg3[%c10_79] : memref<98xf32, #tpu.memory_space<smem>>
      %c59 = arith.constant 59 : index
      %200 = memref.load %arg3[%c59] : memref<98xf32, #tpu.memory_space<smem>>
      %201 = arith.mulf %24, %33 : vector<1x256xf32>
      %202 = vector.extract_strided_slice %198 {offsets = [0, 0, 0], sizes = [1, 2, 256], strides = [1, 1, 1]} : vector<2x2x256xf32> to vector<1x2x256xf32>
      %203 = vector.shape_cast %202 : vector<1x2x256xf32> to vector<2x256xf32>
      %204 = vector.broadcast %199 : f32 to vector<2x256xf32>
      %205 = arith.mulf %204, %203 : vector<2x256xf32>
      %206 = vector.extract_strided_slice %198 {offsets = [1, 0, 0], sizes = [1, 2, 256], strides = [1, 1, 1]} : vector<2x2x256xf32> to vector<1x2x256xf32>
      %207 = vector.shape_cast %206 : vector<1x2x256xf32> to vector<2x256xf32>
      %208 = vector.broadcast %200 : f32 to vector<2x256xf32>
      %209 = arith.mulf %208, %207 : vector<2x256xf32>
      %210 = arith.addf %205, %209 : vector<2x256xf32>
      %211 = vector.broadcast %201 : vector<1x256xf32> to vector<2x256xf32>
      %212 = arith.mulf %211, %210 : vector<2x256xf32>
      %213 = arith.addf %197, %212 : vector<2x256xf32>
      %c0_80 = arith.constant 0 : index
      %c0_81 = arith.constant 0 : index
      %c20 = arith.constant 20 : index
      %214 = vector.load %arg8[%c0_80, %c0_81, %c20] : memref<2x2x358xf32, #tpu.memory_space<vmem>>, vector<2x2x256xf32>
      %c11_82 = arith.constant 11 : index
      %215 = memref.load %arg3[%c11_82] : memref<98xf32, #tpu.memory_space<smem>>
      %c60 = arith.constant 60 : index
      %216 = memref.load %arg3[%c60] : memref<98xf32, #tpu.memory_space<smem>>
      %217 = arith.mulf %24, %34 : vector<1x256xf32>
      %218 = vector.extract_strided_slice %214 {offsets = [0, 0, 0], sizes = [1, 2, 256], strides = [1, 1, 1]} : vector<2x2x256xf32> to vector<1x2x256xf32>
      %219 = vector.shape_cast %218 : vector<1x2x256xf32> to vector<2x256xf32>
      %220 = vector.broadcast %215 : f32 to vector<2x256xf32>
      %221 = arith.mulf %220, %219 : vector<2x256xf32>
      %222 = vector.extract_strided_slice %214 {offsets = [1, 0, 0], sizes = [1, 2, 256], strides = [1, 1, 1]} : vector<2x2x256xf32> to vector<1x2x256xf32>
      %223 = vector.shape_cast %222 : vector<1x2x256xf32> to vector<2x256xf32>
      %224 = vector.broadcast %216 : f32 to vector<2x256xf32>
      %225 = arith.mulf %224, %223 : vector<2x256xf32>
      %226 = arith.addf %221, %225 : vector<2x256xf32>
      %227 = vector.broadcast %217 : vector<1x256xf32> to vector<2x256xf32>
      %228 = arith.mulf %227, %226 : vector<2x256xf32>
      %229 = arith.addf %213, %228 : vector<2x256xf32>
      %c0_83 = arith.constant 0 : index
      %c0_84 = arith.constant 0 : index
      %c21 = arith.constant 21 : index
      %230 = vector.load %arg8[%c0_83, %c0_84, %c21] : memref<2x2x358xf32, #tpu.memory_space<vmem>>, vector<2x2x256xf32>
      %c12_85 = arith.constant 12 : index
      %231 = memref.load %arg3[%c12_85] : memref<98xf32, #tpu.memory_space<smem>>
      %c61 = arith.constant 61 : index
      %232 = memref.load %arg3[%c61] : memref<98xf32, #tpu.memory_space<smem>>
      %233 = arith.mulf %24, %35 : vector<1x256xf32>
      %234 = vector.extract_strided_slice %230 {offsets = [0, 0, 0], sizes = [1, 2, 256], strides = [1, 1, 1]} : vector<2x2x256xf32> to vector<1x2x256xf32>
      %235 = vector.shape_cast %234 : vector<1x2x256xf32> to vector<2x256xf32>
      %236 = vector.broadcast %231 : f32 to vector<2x256xf32>
      %237 = arith.mulf %236, %235 : vector<2x256xf32>
      %238 = vector.extract_strided_slice %230 {offsets = [1, 0, 0], sizes = [1, 2, 256], strides = [1, 1, 1]} : vector<2x2x256xf32> to vector<1x2x256xf32>
      %239 = vector.shape_cast %238 : vector<1x2x256xf32> to vector<2x256xf32>
      %240 = vector.broadcast %232 : f32 to vector<2x256xf32>
      %241 = arith.mulf %240, %239 : vector<2x256xf32>
      %242 = arith.addf %237, %241 : vector<2x256xf32>
      %243 = vector.broadcast %233 : vector<1x256xf32> to vector<2x256xf32>
      %244 = arith.mulf %243, %242 : vector<2x256xf32>
      %245 = arith.addf %229, %244 : vector<2x256xf32>
      %c0_86 = arith.constant 0 : index
      %c0_87 = arith.constant 0 : index
      %c22 = arith.constant 22 : index
      %246 = vector.load %arg8[%c0_86, %c0_87, %c22] : memref<2x2x358xf32, #tpu.memory_space<vmem>>, vector<2x2x256xf32>
      %c13_88 = arith.constant 13 : index
      %247 = memref.load %arg3[%c13_88] : memref<98xf32, #tpu.memory_space<smem>>
      %c62 = arith.constant 62 : index
      %248 = memref.load %arg3[%c62] : memref<98xf32, #tpu.memory_space<smem>>
      %249 = arith.mulf %24, %36 : vector<1x256xf32>
      %250 = vector.extract_strided_slice %246 {offsets = [0, 0, 0], sizes = [1, 2, 256], strides = [1, 1, 1]} : vector<2x2x256xf32> to vector<1x2x256xf32>
      %251 = vector.shape_cast %250 : vector<1x2x256xf32> to vector<2x256xf32>
      %252 = vector.broadcast %247 : f32 to vector<2x256xf32>
      %253 = arith.mulf %252, %251 : vector<2x256xf32>
      %254 = vector.extract_strided_slice %246 {offsets = [1, 0, 0], sizes = [1, 2, 256], strides = [1, 1, 1]} : vector<2x2x256xf32> to vector<1x2x256xf32>
      %255 = vector.shape_cast %254 : vector<1x2x256xf32> to vector<2x256xf32>
      %256 = vector.broadcast %248 : f32 to vector<2x256xf32>
      %257 = arith.mulf %256, %255 : vector<2x256xf32>
      %258 = arith.addf %253, %257 : vector<2x256xf32>
      %259 = vector.broadcast %249 : vector<1x256xf32> to vector<2x256xf32>
      %260 = arith.mulf %259, %258 : vector<2x256xf32>
      %261 = arith.addf %245, %260 : vector<2x256xf32>
      %c0_89 = arith.constant 0 : index
      %c0_90 = arith.constant 0 : index
      %c32 = arith.constant 32 : index
      %262 = vector.load %arg8[%c0_89, %c0_90, %c32] : memref<2x2x358xf32, #tpu.memory_space<vmem>>, vector<2x2x256xf32>
      %c14 = arith.constant 14 : index
      %263 = memref.load %arg3[%c14] : memref<98xf32, #tpu.memory_space<smem>>
      %c63 = arith.constant 63 : index
      %264 = memref.load %arg3[%c63] : memref<98xf32, #tpu.memory_space<smem>>
      %265 = arith.mulf %25, %30 : vector<1x256xf32>
      %266 = vector.extract_strided_slice %262 {offsets = [0, 0, 0], sizes = [1, 2, 256], strides = [1, 1, 1]} : vector<2x2x256xf32> to vector<1x2x256xf32>
      %267 = vector.shape_cast %266 : vector<1x2x256xf32> to vector<2x256xf32>
      %268 = vector.broadcast %263 : f32 to vector<2x256xf32>
      %269 = arith.mulf %268, %267 : vector<2x256xf32>
      %270 = vector.extract_strided_slice %262 {offsets = [1, 0, 0], sizes = [1, 2, 256], strides = [1, 1, 1]} : vector<2x2x256xf32> to vector<1x2x256xf32>
      %271 = vector.shape_cast %270 : vector<1x2x256xf32> to vector<2x256xf32>
      %272 = vector.broadcast %264 : f32 to vector<2x256xf32>
      %273 = arith.mulf %272, %271 : vector<2x256xf32>
      %274 = arith.addf %269, %273 : vector<2x256xf32>
      %275 = vector.broadcast %265 : vector<1x256xf32> to vector<2x256xf32>
      %276 = arith.mulf %275, %274 : vector<2x256xf32>
      %277 = arith.addf %261, %276 : vector<2x256xf32>
      %c0_91 = arith.constant 0 : index
      %c0_92 = arith.constant 0 : index
      %c33 = arith.constant 33 : index
      %278 = vector.load %arg8[%c0_91, %c0_92, %c33] : memref<2x2x358xf32, #tpu.memory_space<vmem>>, vector<2x2x256xf32>
      %c15 = arith.constant 15 : index
      %279 = memref.load %arg3[%c15] : memref<98xf32, #tpu.memory_space<smem>>
      %c64 = arith.constant 64 : index
      %280 = memref.load %arg3[%c64] : memref<98xf32, #tpu.memory_space<smem>>
      %281 = arith.mulf %25, %31 : vector<1x256xf32>
      %282 = vector.extract_strided_slice %278 {offsets = [0, 0, 0], sizes = [1, 2, 256], strides = [1, 1, 1]} : vector<2x2x256xf32> to vector<1x2x256xf32>
      %283 = vector.shape_cast %282 : vector<1x2x256xf32> to vector<2x256xf32>
      %284 = vector.broadcast %279 : f32 to vector<2x256xf32>
      %285 = arith.mulf %284, %283 : vector<2x256xf32>
      %286 = vector.extract_strided_slice %278 {offsets = [1, 0, 0], sizes = [1, 2, 256], strides = [1, 1, 1]} : vector<2x2x256xf32> to vector<1x2x256xf32>
      %287 = vector.shape_cast %286 : vector<1x2x256xf32> to vector<2x256xf32>
      %288 = vector.broadcast %280 : f32 to vector<2x256xf32>
      %289 = arith.mulf %288, %287 : vector<2x256xf32>
      %290 = arith.addf %285, %289 : vector<2x256xf32>
      %291 = vector.broadcast %281 : vector<1x256xf32> to vector<2x256xf32>
      %292 = arith.mulf %291, %290 : vector<2x256xf32>
      %293 = arith.addf %277, %292 : vector<2x256xf32>
      %c0_93 = arith.constant 0 : index
      %c0_94 = arith.constant 0 : index
      %c34 = arith.constant 34 : index
      %294 = vector.load %arg8[%c0_93, %c0_94, %c34] : memref<2x2x358xf32, #tpu.memory_space<vmem>>, vector<2x2x256xf32>
      %c16_95 = arith.constant 16 : index
      %295 = memref.load %arg3[%c16_95] : memref<98xf32, #tpu.memory_space<smem>>
      %c65 = arith.constant 65 : index
      %296 = memref.load %arg3[%c65] : memref<98xf32, #tpu.memory_space<smem>>
      %297 = arith.mulf %25, %32 : vector<1x256xf32>
      %298 = vector.extract_strided_slice %294 {offsets = [0, 0, 0], sizes = [1, 2, 256], strides = [1, 1, 1]} : vector<2x2x256xf32> to vector<1x2x256xf32>
      %299 = vector.shape_cast %298 : vector<1x2x256xf32> to vector<2x256xf32>
      %300 = vector.broadcast %295 : f32 to vector<2x256xf32>
      %301 = arith.mulf %300, %299 : vector<2x256xf32>
      %302 = vector.extract_strided_slice %294 {offsets = [1, 0, 0], sizes = [1, 2, 256], strides = [1, 1, 1]} : vector<2x2x256xf32> to vector<1x2x256xf32>
      %303 = vector.shape_cast %302 : vector<1x2x256xf32> to vector<2x256xf32>
      %304 = vector.broadcast %296 : f32 to vector<2x256xf32>
      %305 = arith.mulf %304, %303 : vector<2x256xf32>
      %306 = arith.addf %301, %305 : vector<2x256xf32>
      %307 = vector.broadcast %297 : vector<1x256xf32> to vector<2x256xf32>
      %308 = arith.mulf %307, %306 : vector<2x256xf32>
      %309 = arith.addf %293, %308 : vector<2x256xf32>
      %c0_96 = arith.constant 0 : index
      %c0_97 = arith.constant 0 : index
      %c35 = arith.constant 35 : index
      %310 = vector.load %arg8[%c0_96, %c0_97, %c35] : memref<2x2x358xf32, #tpu.memory_space<vmem>>, vector<2x2x256xf32>
      %c17_98 = arith.constant 17 : index
      %311 = memref.load %arg3[%c17_98] : memref<98xf32, #tpu.memory_space<smem>>
      %c66 = arith.constant 66 : index
      %312 = memref.load %arg3[%c66] : memref<98xf32, #tpu.memory_space<smem>>
      %313 = arith.mulf %25, %33 : vector<1x256xf32>
      %314 = vector.extract_strided_slice %310 {offsets = [0, 0, 0], sizes = [1, 2, 256], strides = [1, 1, 1]} : vector<2x2x256xf32> to vector<1x2x256xf32>
      %315 = vector.shape_cast %314 : vector<1x2x256xf32> to vector<2x256xf32>
      %316 = vector.broadcast %311 : f32 to vector<2x256xf32>
      %317 = arith.mulf %316, %315 : vector<2x256xf32>
      %318 = vector.extract_strided_slice %310 {offsets = [1, 0, 0], sizes = [1, 2, 256], strides = [1, 1, 1]} : vector<2x2x256xf32> to vector<1x2x256xf32>
      %319 = vector.shape_cast %318 : vector<1x2x256xf32> to vector<2x256xf32>
      %320 = vector.broadcast %312 : f32 to vector<2x256xf32>
      %321 = arith.mulf %320, %319 : vector<2x256xf32>
      %322 = arith.addf %317, %321 : vector<2x256xf32>
      %323 = vector.broadcast %313 : vector<1x256xf32> to vector<2x256xf32>
      %324 = arith.mulf %323, %322 : vector<2x256xf32>
      %325 = arith.addf %309, %324 : vector<2x256xf32>
      %c0_99 = arith.constant 0 : index
      %c0_100 = arith.constant 0 : index
      %c36 = arith.constant 36 : index
      %326 = vector.load %arg8[%c0_99, %c0_100, %c36] : memref<2x2x358xf32, #tpu.memory_space<vmem>>, vector<2x2x256xf32>
      %c18_101 = arith.constant 18 : index
      %327 = memref.load %arg3[%c18_101] : memref<98xf32, #tpu.memory_space<smem>>
      %c67 = arith.constant 67 : index
      %328 = memref.load %arg3[%c67] : memref<98xf32, #tpu.memory_space<smem>>
      %329 = arith.mulf %25, %34 : vector<1x256xf32>
      %330 = vector.extract_strided_slice %326 {offsets = [0, 0, 0], sizes = [1, 2, 256], strides = [1, 1, 1]} : vector<2x2x256xf32> to vector<1x2x256xf32>
      %331 = vector.shape_cast %330 : vector<1x2x256xf32> to vector<2x256xf32>
      %332 = vector.broadcast %327 : f32 to vector<2x256xf32>
      %333 = arith.mulf %332, %331 : vector<2x256xf32>
      %334 = vector.extract_strided_slice %326 {offsets = [1, 0, 0], sizes = [1, 2, 256], strides = [1, 1, 1]} : vector<2x2x256xf32> to vector<1x2x256xf32>
      %335 = vector.shape_cast %334 : vector<1x2x256xf32> to vector<2x256xf32>
      %336 = vector.broadcast %328 : f32 to vector<2x256xf32>
      %337 = arith.mulf %336, %335 : vector<2x256xf32>
      %338 = arith.addf %333, %337 : vector<2x256xf32>
      %339 = vector.broadcast %329 : vector<1x256xf32> to vector<2x256xf32>
      %340 = arith.mulf %339, %338 : vector<2x256xf32>
      %341 = arith.addf %325, %340 : vector<2x256xf32>
      %c0_102 = arith.constant 0 : index
      %c0_103 = arith.constant 0 : index
      %c37 = arith.constant 37 : index
      %342 = vector.load %arg8[%c0_102, %c0_103, %c37] : memref<2x2x358xf32, #tpu.memory_space<vmem>>, vector<2x2x256xf32>
      %c19_104 = arith.constant 19 : index
      %343 = memref.load %arg3[%c19_104] : memref<98xf32, #tpu.memory_space<smem>>
      %c68 = arith.constant 68 : index
      %344 = memref.load %arg3[%c68] : memref<98xf32, #tpu.memory_space<smem>>
      %345 = arith.mulf %25, %35 : vector<1x256xf32>
      %346 = vector.extract_strided_slice %342 {offsets = [0, 0, 0], sizes = [1, 2, 256], strides = [1, 1, 1]} : vector<2x2x256xf32> to vector<1x2x256xf32>
      %347 = vector.shape_cast %346 : vector<1x2x256xf32> to vector<2x256xf32>
      %348 = vector.broadcast %343 : f32 to vector<2x256xf32>
      %349 = arith.mulf %348, %347 : vector<2x256xf32>
      %350 = vector.extract_strided_slice %342 {offsets = [1, 0, 0], sizes = [1, 2, 256], strides = [1, 1, 1]} : vector<2x2x256xf32> to vector<1x2x256xf32>
      %351 = vector.shape_cast %350 : vector<1x2x256xf32> to vector<2x256xf32>
      %352 = vector.broadcast %344 : f32 to vector<2x256xf32>
      %353 = arith.mulf %352, %351 : vector<2x256xf32>
      %354 = arith.addf %349, %353 : vector<2x256xf32>
      %355 = vector.broadcast %345 : vector<1x256xf32> to vector<2x256xf32>
      %356 = arith.mulf %355, %354 : vector<2x256xf32>
      %357 = arith.addf %341, %356 : vector<2x256xf32>
      %c0_105 = arith.constant 0 : index
      %c0_106 = arith.constant 0 : index
      %c38 = arith.constant 38 : index
      %358 = vector.load %arg8[%c0_105, %c0_106, %c38] : memref<2x2x358xf32, #tpu.memory_space<vmem>>, vector<2x2x256xf32>
      %c20_107 = arith.constant 20 : index
      %359 = memref.load %arg3[%c20_107] : memref<98xf32, #tpu.memory_space<smem>>
      %c69 = arith.constant 69 : index
      %360 = memref.load %arg3[%c69] : memref<98xf32, #tpu.memory_space<smem>>
      %361 = arith.mulf %25, %36 : vector<1x256xf32>
      %362 = vector.extract_strided_slice %358 {offsets = [0, 0, 0], sizes = [1, 2, 256], strides = [1, 1, 1]} : vector<2x2x256xf32> to vector<1x2x256xf32>
      %363 = vector.shape_cast %362 : vector<1x2x256xf32> to vector<2x256xf32>
      %364 = vector.broadcast %359 : f32 to vector<2x256xf32>
      %365 = arith.mulf %364, %363 : vector<2x256xf32>
      %366 = vector.extract_strided_slice %358 {offsets = [1, 0, 0], sizes = [1, 2, 256], strides = [1, 1, 1]} : vector<2x2x256xf32> to vector<1x2x256xf32>
      %367 = vector.shape_cast %366 : vector<1x2x256xf32> to vector<2x256xf32>
      %368 = vector.broadcast %360 : f32 to vector<2x256xf32>
      %369 = arith.mulf %368, %367 : vector<2x256xf32>
      %370 = arith.addf %365, %369 : vector<2x256xf32>
      %371 = vector.broadcast %361 : vector<1x256xf32> to vector<2x256xf32>
      %372 = arith.mulf %371, %370 : vector<2x256xf32>
      %373 = arith.addf %357, %372 : vector<2x256xf32>
      %c0_108 = arith.constant 0 : index
      %c0_109 = arith.constant 0 : index
      %c48 = arith.constant 48 : index
      %374 = vector.load %arg8[%c0_108, %c0_109, %c48] : memref<2x2x358xf32, #tpu.memory_space<vmem>>, vector<2x2x256xf32>
      %c21_110 = arith.constant 21 : index
      %375 = memref.load %arg3[%c21_110] : memref<98xf32, #tpu.memory_space<smem>>
      %c70 = arith.constant 70 : index
      %376 = memref.load %arg3[%c70] : memref<98xf32, #tpu.memory_space<smem>>
      %377 = arith.mulf %26, %30 : vector<1x256xf32>
      %378 = vector.extract_strided_slice %374 {offsets = [0, 0, 0], sizes = [1, 2, 256], strides = [1, 1, 1]} : vector<2x2x256xf32> to vector<1x2x256xf32>
      %379 = vector.shape_cast %378 : vector<1x2x256xf32> to vector<2x256xf32>
      %380 = vector.broadcast %375 : f32 to vector<2x256xf32>
      %381 = arith.mulf %380, %379 : vector<2x256xf32>
      %382 = vector.extract_strided_slice %374 {offsets = [1, 0, 0], sizes = [1, 2, 256], strides = [1, 1, 1]} : vector<2x2x256xf32> to vector<1x2x256xf32>
      %383 = vector.shape_cast %382 : vector<1x2x256xf32> to vector<2x256xf32>
      %384 = vector.broadcast %376 : f32 to vector<2x256xf32>
      %385 = arith.mulf %384, %383 : vector<2x256xf32>
      %386 = arith.addf %381, %385 : vector<2x256xf32>
      %387 = vector.broadcast %377 : vector<1x256xf32> to vector<2x256xf32>
      %388 = arith.mulf %387, %386 : vector<2x256xf32>
      %389 = arith.addf %373, %388 : vector<2x256xf32>
      %c0_111 = arith.constant 0 : index
      %c0_112 = arith.constant 0 : index
      %c49_113 = arith.constant 49 : index
      %390 = vector.load %arg8[%c0_111, %c0_112, %c49_113] : memref<2x2x358xf32, #tpu.memory_space<vmem>>, vector<2x2x256xf32>
      %c22_114 = arith.constant 22 : index
      %391 = memref.load %arg3[%c22_114] : memref<98xf32, #tpu.memory_space<smem>>
      %c71 = arith.constant 71 : index
      %392 = memref.load %arg3[%c71] : memref<98xf32, #tpu.memory_space<smem>>
      %393 = arith.mulf %26, %31 : vector<1x256xf32>
      %394 = vector.extract_strided_slice %390 {offsets = [0, 0, 0], sizes = [1, 2, 256], strides = [1, 1, 1]} : vector<2x2x256xf32> to vector<1x2x256xf32>
      %395 = vector.shape_cast %394 : vector<1x2x256xf32> to vector<2x256xf32>
      %396 = vector.broadcast %391 : f32 to vector<2x256xf32>
      %397 = arith.mulf %396, %395 : vector<2x256xf32>
      %398 = vector.extract_strided_slice %390 {offsets = [1, 0, 0], sizes = [1, 2, 256], strides = [1, 1, 1]} : vector<2x2x256xf32> to vector<1x2x256xf32>
      %399 = vector.shape_cast %398 : vector<1x2x256xf32> to vector<2x256xf32>
      %400 = vector.broadcast %392 : f32 to vector<2x256xf32>
      %401 = arith.mulf %400, %399 : vector<2x256xf32>
      %402 = arith.addf %397, %401 : vector<2x256xf32>
      %403 = vector.broadcast %393 : vector<1x256xf32> to vector<2x256xf32>
      %404 = arith.mulf %403, %402 : vector<2x256xf32>
      %405 = arith.addf %389, %404 : vector<2x256xf32>
      %c0_115 = arith.constant 0 : index
      %c0_116 = arith.constant 0 : index
      %c50_117 = arith.constant 50 : index
      %406 = vector.load %arg8[%c0_115, %c0_116, %c50_117] : memref<2x2x358xf32, #tpu.memory_space<vmem>>, vector<2x2x256xf32>
      %c23 = arith.constant 23 : index
      %407 = memref.load %arg3[%c23] : memref<98xf32, #tpu.memory_space<smem>>
      %c72 = arith.constant 72 : index
      %408 = memref.load %arg3[%c72] : memref<98xf32, #tpu.memory_space<smem>>
      %409 = arith.mulf %26, %32 : vector<1x256xf32>
      %410 = vector.extract_strided_slice %406 {offsets = [0, 0, 0], sizes = [1, 2, 256], strides = [1, 1, 1]} : vector<2x2x256xf32> to vector<1x2x256xf32>
      %411 = vector.shape_cast %410 : vector<1x2x256xf32> to vector<2x256xf32>
      %412 = vector.broadcast %407 : f32 to vector<2x256xf32>
      %413 = arith.mulf %412, %411 : vector<2x256xf32>
      %414 = vector.extract_strided_slice %406 {offsets = [1, 0, 0], sizes = [1, 2, 256], strides = [1, 1, 1]} : vector<2x2x256xf32> to vector<1x2x256xf32>
      %415 = vector.shape_cast %414 : vector<1x2x256xf32> to vector<2x256xf32>
      %416 = vector.broadcast %408 : f32 to vector<2x256xf32>
      %417 = arith.mulf %416, %415 : vector<2x256xf32>
      %418 = arith.addf %413, %417 : vector<2x256xf32>
      %419 = vector.broadcast %409 : vector<1x256xf32> to vector<2x256xf32>
      %420 = arith.mulf %419, %418 : vector<2x256xf32>
      %421 = arith.addf %405, %420 : vector<2x256xf32>
      %c0_118 = arith.constant 0 : index
      %c0_119 = arith.constant 0 : index
      %c51_120 = arith.constant 51 : index
      %422 = vector.load %arg8[%c0_118, %c0_119, %c51_120] : memref<2x2x358xf32, #tpu.memory_space<vmem>>, vector<2x2x256xf32>
      %c24 = arith.constant 24 : index
      %423 = memref.load %arg3[%c24] : memref<98xf32, #tpu.memory_space<smem>>
      %c73 = arith.constant 73 : index
      %424 = memref.load %arg3[%c73] : memref<98xf32, #tpu.memory_space<smem>>
      %425 = arith.mulf %26, %33 : vector<1x256xf32>
      %426 = vector.extract_strided_slice %422 {offsets = [0, 0, 0], sizes = [1, 2, 256], strides = [1, 1, 1]} : vector<2x2x256xf32> to vector<1x2x256xf32>
      %427 = vector.shape_cast %426 : vector<1x2x256xf32> to vector<2x256xf32>
      %428 = vector.broadcast %423 : f32 to vector<2x256xf32>
      %429 = arith.mulf %428, %427 : vector<2x256xf32>
      %430 = vector.extract_strided_slice %422 {offsets = [1, 0, 0], sizes = [1, 2, 256], strides = [1, 1, 1]} : vector<2x2x256xf32> to vector<1x2x256xf32>
      %431 = vector.shape_cast %430 : vector<1x2x256xf32> to vector<2x256xf32>
      %432 = vector.broadcast %424 : f32 to vector<2x256xf32>
      %433 = arith.mulf %432, %431 : vector<2x256xf32>
      %434 = arith.addf %429, %433 : vector<2x256xf32>
      %435 = vector.broadcast %425 : vector<1x256xf32> to vector<2x256xf32>
      %436 = arith.mulf %435, %434 : vector<2x256xf32>
      %437 = arith.addf %421, %436 : vector<2x256xf32>
      %c0_121 = arith.constant 0 : index
      %c0_122 = arith.constant 0 : index
      %c52_123 = arith.constant 52 : index
      %438 = vector.load %arg8[%c0_121, %c0_122, %c52_123] : memref<2x2x358xf32, #tpu.memory_space<vmem>>, vector<2x2x256xf32>
      %c25 = arith.constant 25 : index
      %439 = memref.load %arg3[%c25] : memref<98xf32, #tpu.memory_space<smem>>
      %c74 = arith.constant 74 : index
      %440 = memref.load %arg3[%c74] : memref<98xf32, #tpu.memory_space<smem>>
      %441 = arith.mulf %26, %34 : vector<1x256xf32>
      %442 = vector.extract_strided_slice %438 {offsets = [0, 0, 0], sizes = [1, 2, 256], strides = [1, 1, 1]} : vector<2x2x256xf32> to vector<1x2x256xf32>
      %443 = vector.shape_cast %442 : vector<1x2x256xf32> to vector<2x256xf32>
      %444 = vector.broadcast %439 : f32 to vector<2x256xf32>
      %445 = arith.mulf %444, %443 : vector<2x256xf32>
      %446 = vector.extract_strided_slice %438 {offsets = [1, 0, 0], sizes = [1, 2, 256], strides = [1, 1, 1]} : vector<2x2x256xf32> to vector<1x2x256xf32>
      %447 = vector.shape_cast %446 : vector<1x2x256xf32> to vector<2x256xf32>
      %448 = vector.broadcast %440 : f32 to vector<2x256xf32>
      %449 = arith.mulf %448, %447 : vector<2x256xf32>
      %450 = arith.addf %445, %449 : vector<2x256xf32>
      %451 = vector.broadcast %441 : vector<1x256xf32> to vector<2x256xf32>
      %452 = arith.mulf %451, %450 : vector<2x256xf32>
      %453 = arith.addf %437, %452 : vector<2x256xf32>
      %c0_124 = arith.constant 0 : index
      %c0_125 = arith.constant 0 : index
      %c53_126 = arith.constant 53 : index
      %454 = vector.load %arg8[%c0_124, %c0_125, %c53_126] : memref<2x2x358xf32, #tpu.memory_space<vmem>>, vector<2x2x256xf32>
      %c26 = arith.constant 26 : index
      %455 = memref.load %arg3[%c26] : memref<98xf32, #tpu.memory_space<smem>>
      %c75 = arith.constant 75 : index
      %456 = memref.load %arg3[%c75] : memref<98xf32, #tpu.memory_space<smem>>
      %457 = arith.mulf %26, %35 : vector<1x256xf32>
      %458 = vector.extract_strided_slice %454 {offsets = [0, 0, 0], sizes = [1, 2, 256], strides = [1, 1, 1]} : vector<2x2x256xf32> to vector<1x2x256xf32>
      %459 = vector.shape_cast %458 : vector<1x2x256xf32> to vector<2x256xf32>
      %460 = vector.broadcast %455 : f32 to vector<2x256xf32>
      %461 = arith.mulf %460, %459 : vector<2x256xf32>
      %462 = vector.extract_strided_slice %454 {offsets = [1, 0, 0], sizes = [1, 2, 256], strides = [1, 1, 1]} : vector<2x2x256xf32> to vector<1x2x256xf32>
      %463 = vector.shape_cast %462 : vector<1x2x256xf32> to vector<2x256xf32>
      %464 = vector.broadcast %456 : f32 to vector<2x256xf32>
      %465 = arith.mulf %464, %463 : vector<2x256xf32>
      %466 = arith.addf %461, %465 : vector<2x256xf32>
      %467 = vector.broadcast %457 : vector<1x256xf32> to vector<2x256xf32>
      %468 = arith.mulf %467, %466 : vector<2x256xf32>
      %469 = arith.addf %453, %468 : vector<2x256xf32>
      %c0_127 = arith.constant 0 : index
      %c0_128 = arith.constant 0 : index
      %c54_129 = arith.constant 54 : index
      %470 = vector.load %arg8[%c0_127, %c0_128, %c54_129] : memref<2x2x358xf32, #tpu.memory_space<vmem>>, vector<2x2x256xf32>
      %c27 = arith.constant 27 : index
      %471 = memref.load %arg3[%c27] : memref<98xf32, #tpu.memory_space<smem>>
      %c76 = arith.constant 76 : index
      %472 = memref.load %arg3[%c76] : memref<98xf32, #tpu.memory_space<smem>>
      %473 = arith.mulf %26, %36 : vector<1x256xf32>
      %474 = vector.extract_strided_slice %470 {offsets = [0, 0, 0], sizes = [1, 2, 256], strides = [1, 1, 1]} : vector<2x2x256xf32> to vector<1x2x256xf32>
      %475 = vector.shape_cast %474 : vector<1x2x256xf32> to vector<2x256xf32>
      %476 = vector.broadcast %471 : f32 to vector<2x256xf32>
      %477 = arith.mulf %476, %475 : vector<2x256xf32>
      %478 = vector.extract_strided_slice %470 {offsets = [1, 0, 0], sizes = [1, 2, 256], strides = [1, 1, 1]} : vector<2x2x256xf32> to vector<1x2x256xf32>
      %479 = vector.shape_cast %478 : vector<1x2x256xf32> to vector<2x256xf32>
      %480 = vector.broadcast %472 : f32 to vector<2x256xf32>
      %481 = arith.mulf %480, %479 : vector<2x256xf32>
      %482 = arith.addf %477, %481 : vector<2x256xf32>
      %483 = vector.broadcast %473 : vector<1x256xf32> to vector<2x256xf32>
      %484 = arith.mulf %483, %482 : vector<2x256xf32>
      %485 = arith.addf %469, %484 : vector<2x256xf32>
      %c0_130 = arith.constant 0 : index
      %c0_131 = arith.constant 0 : index
      %c64_132 = arith.constant 64 : index
      %486 = vector.load %arg8[%c0_130, %c0_131, %c64_132] : memref<2x2x358xf32, #tpu.memory_space<vmem>>, vector<2x2x256xf32>
      %c28 = arith.constant 28 : index
      %487 = memref.load %arg3[%c28] : memref<98xf32, #tpu.memory_space<smem>>
      %c77 = arith.constant 77 : index
      %488 = memref.load %arg3[%c77] : memref<98xf32, #tpu.memory_space<smem>>
      %489 = arith.mulf %27, %30 : vector<1x256xf32>
      %490 = vector.extract_strided_slice %486 {offsets = [0, 0, 0], sizes = [1, 2, 256], strides = [1, 1, 1]} : vector<2x2x256xf32> to vector<1x2x256xf32>
      %491 = vector.shape_cast %490 : vector<1x2x256xf32> to vector<2x256xf32>
      %492 = vector.broadcast %487 : f32 to vector<2x256xf32>
      %493 = arith.mulf %492, %491 : vector<2x256xf32>
      %494 = vector.extract_strided_slice %486 {offsets = [1, 0, 0], sizes = [1, 2, 256], strides = [1, 1, 1]} : vector<2x2x256xf32> to vector<1x2x256xf32>
      %495 = vector.shape_cast %494 : vector<1x2x256xf32> to vector<2x256xf32>
      %496 = vector.broadcast %488 : f32 to vector<2x256xf32>
      %497 = arith.mulf %496, %495 : vector<2x256xf32>
      %498 = arith.addf %493, %497 : vector<2x256xf32>
      %499 = vector.broadcast %489 : vector<1x256xf32> to vector<2x256xf32>
      %500 = arith.mulf %499, %498 : vector<2x256xf32>
      %501 = arith.addf %485, %500 : vector<2x256xf32>
      %c0_133 = arith.constant 0 : index
      %c0_134 = arith.constant 0 : index
      %c65_135 = arith.constant 65 : index
      %502 = vector.load %arg8[%c0_133, %c0_134, %c65_135] : memref<2x2x358xf32, #tpu.memory_space<vmem>>, vector<2x2x256xf32>
      %c29 = arith.constant 29 : index
      %503 = memref.load %arg3[%c29] : memref<98xf32, #tpu.memory_space<smem>>
      %c78 = arith.constant 78 : index
      %504 = memref.load %arg3[%c78] : memref<98xf32, #tpu.memory_space<smem>>
      %505 = arith.mulf %27, %31 : vector<1x256xf32>
      %506 = vector.extract_strided_slice %502 {offsets = [0, 0, 0], sizes = [1, 2, 256], strides = [1, 1, 1]} : vector<2x2x256xf32> to vector<1x2x256xf32>
      %507 = vector.shape_cast %506 : vector<1x2x256xf32> to vector<2x256xf32>
      %508 = vector.broadcast %503 : f32 to vector<2x256xf32>
      %509 = arith.mulf %508, %507 : vector<2x256xf32>
      %510 = vector.extract_strided_slice %502 {offsets = [1, 0, 0], sizes = [1, 2, 256], strides = [1, 1, 1]} : vector<2x2x256xf32> to vector<1x2x256xf32>
      %511 = vector.shape_cast %510 : vector<1x2x256xf32> to vector<2x256xf32>
      %512 = vector.broadcast %504 : f32 to vector<2x256xf32>
      %513 = arith.mulf %512, %511 : vector<2x256xf32>
      %514 = arith.addf %509, %513 : vector<2x256xf32>
      %515 = vector.broadcast %505 : vector<1x256xf32> to vector<2x256xf32>
      %516 = arith.mulf %515, %514 : vector<2x256xf32>
      %517 = arith.addf %501, %516 : vector<2x256xf32>
      %c0_136 = arith.constant 0 : index
      %c0_137 = arith.constant 0 : index
      %c66_138 = arith.constant 66 : index
      %518 = vector.load %arg8[%c0_136, %c0_137, %c66_138] : memref<2x2x358xf32, #tpu.memory_space<vmem>>, vector<2x2x256xf32>
      %c30 = arith.constant 30 : index
      %519 = memref.load %arg3[%c30] : memref<98xf32, #tpu.memory_space<smem>>
      %c79 = arith.constant 79 : index
      %520 = memref.load %arg3[%c79] : memref<98xf32, #tpu.memory_space<smem>>
      %521 = arith.mulf %27, %32 : vector<1x256xf32>
      %522 = vector.extract_strided_slice %518 {offsets = [0, 0, 0], sizes = [1, 2, 256], strides = [1, 1, 1]} : vector<2x2x256xf32> to vector<1x2x256xf32>
      %523 = vector.shape_cast %522 : vector<1x2x256xf32> to vector<2x256xf32>
      %524 = vector.broadcast %519 : f32 to vector<2x256xf32>
      %525 = arith.mulf %524, %523 : vector<2x256xf32>
      %526 = vector.extract_strided_slice %518 {offsets = [1, 0, 0], sizes = [1, 2, 256], strides = [1, 1, 1]} : vector<2x2x256xf32> to vector<1x2x256xf32>
      %527 = vector.shape_cast %526 : vector<1x2x256xf32> to vector<2x256xf32>
      %528 = vector.broadcast %520 : f32 to vector<2x256xf32>
      %529 = arith.mulf %528, %527 : vector<2x256xf32>
      %530 = arith.addf %525, %529 : vector<2x256xf32>
      %531 = vector.broadcast %521 : vector<1x256xf32> to vector<2x256xf32>
      %532 = arith.mulf %531, %530 : vector<2x256xf32>
      %533 = arith.addf %517, %532 : vector<2x256xf32>
      %c0_139 = arith.constant 0 : index
      %c0_140 = arith.constant 0 : index
      %c67_141 = arith.constant 67 : index
      %534 = vector.load %arg8[%c0_139, %c0_140, %c67_141] : memref<2x2x358xf32, #tpu.memory_space<vmem>>, vector<2x2x256xf32>
      %c31 = arith.constant 31 : index
      %535 = memref.load %arg3[%c31] : memref<98xf32, #tpu.memory_space<smem>>
      %c80 = arith.constant 80 : index
      %536 = memref.load %arg3[%c80] : memref<98xf32, #tpu.memory_space<smem>>
      %537 = arith.mulf %27, %33 : vector<1x256xf32>
      %538 = vector.extract_strided_slice %534 {offsets = [0, 0, 0], sizes = [1, 2, 256], strides = [1, 1, 1]} : vector<2x2x256xf32> to vector<1x2x256xf32>
      %539 = vector.shape_cast %538 : vector<1x2x256xf32> to vector<2x256xf32>
      %540 = vector.broadcast %535 : f32 to vector<2x256xf32>
      %541 = arith.mulf %540, %539 : vector<2x256xf32>
      %542 = vector.extract_strided_slice %534 {offsets = [1, 0, 0], sizes = [1, 2, 256], strides = [1, 1, 1]} : vector<2x2x256xf32> to vector<1x2x256xf32>
      %543 = vector.shape_cast %542 : vector<1x2x256xf32> to vector<2x256xf32>
      %544 = vector.broadcast %536 : f32 to vector<2x256xf32>
      %545 = arith.mulf %544, %543 : vector<2x256xf32>
      %546 = arith.addf %541, %545 : vector<2x256xf32>
      %547 = vector.broadcast %537 : vector<1x256xf32> to vector<2x256xf32>
      %548 = arith.mulf %547, %546 : vector<2x256xf32>
      %549 = arith.addf %533, %548 : vector<2x256xf32>
      %c0_142 = arith.constant 0 : index
      %c0_143 = arith.constant 0 : index
      %c68_144 = arith.constant 68 : index
      %550 = vector.load %arg8[%c0_142, %c0_143, %c68_144] : memref<2x2x358xf32, #tpu.memory_space<vmem>>, vector<2x2x256xf32>
      %c32_145 = arith.constant 32 : index
      %551 = memref.load %arg3[%c32_145] : memref<98xf32, #tpu.memory_space<smem>>
      %c81 = arith.constant 81 : index
      %552 = memref.load %arg3[%c81] : memref<98xf32, #tpu.memory_space<smem>>
      %553 = arith.mulf %27, %34 : vector<1x256xf32>
      %554 = vector.extract_strided_slice %550 {offsets = [0, 0, 0], sizes = [1, 2, 256], strides = [1, 1, 1]} : vector<2x2x256xf32> to vector<1x2x256xf32>
      %555 = vector.shape_cast %554 : vector<1x2x256xf32> to vector<2x256xf32>
      %556 = vector.broadcast %551 : f32 to vector<2x256xf32>
      %557 = arith.mulf %556, %555 : vector<2x256xf32>
      %558 = vector.extract_strided_slice %550 {offsets = [1, 0, 0], sizes = [1, 2, 256], strides = [1, 1, 1]} : vector<2x2x256xf32> to vector<1x2x256xf32>
      %559 = vector.shape_cast %558 : vector<1x2x256xf32> to vector<2x256xf32>
      %560 = vector.broadcast %552 : f32 to vector<2x256xf32>
      %561 = arith.mulf %560, %559 : vector<2x256xf32>
      %562 = arith.addf %557, %561 : vector<2x256xf32>
      %563 = vector.broadcast %553 : vector<1x256xf32> to vector<2x256xf32>
      %564 = arith.mulf %563, %562 : vector<2x256xf32>
      %565 = arith.addf %549, %564 : vector<2x256xf32>
      %c0_146 = arith.constant 0 : index
      %c0_147 = arith.constant 0 : index
      %c69_148 = arith.constant 69 : index
      %566 = vector.load %arg8[%c0_146, %c0_147, %c69_148] : memref<2x2x358xf32, #tpu.memory_space<vmem>>, vector<2x2x256xf32>
      %c33_149 = arith.constant 33 : index
      %567 = memref.load %arg3[%c33_149] : memref<98xf32, #tpu.memory_space<smem>>
      %c82 = arith.constant 82 : index
      %568 = memref.load %arg3[%c82] : memref<98xf32, #tpu.memory_space<smem>>
      %569 = arith.mulf %27, %35 : vector<1x256xf32>
      %570 = vector.extract_strided_slice %566 {offsets = [0, 0, 0], sizes = [1, 2, 256], strides = [1, 1, 1]} : vector<2x2x256xf32> to vector<1x2x256xf32>
      %571 = vector.shape_cast %570 : vector<1x2x256xf32> to vector<2x256xf32>
      %572 = vector.broadcast %567 : f32 to vector<2x256xf32>
      %573 = arith.mulf %572, %571 : vector<2x256xf32>
      %574 = vector.extract_strided_slice %566 {offsets = [1, 0, 0], sizes = [1, 2, 256], strides = [1, 1, 1]} : vector<2x2x256xf32> to vector<1x2x256xf32>
      %575 = vector.shape_cast %574 : vector<1x2x256xf32> to vector<2x256xf32>
      %576 = vector.broadcast %568 : f32 to vector<2x256xf32>
      %577 = arith.mulf %576, %575 : vector<2x256xf32>
      %578 = arith.addf %573, %577 : vector<2x256xf32>
      %579 = vector.broadcast %569 : vector<1x256xf32> to vector<2x256xf32>
      %580 = arith.mulf %579, %578 : vector<2x256xf32>
      %581 = arith.addf %565, %580 : vector<2x256xf32>
      %c0_150 = arith.constant 0 : index
      %c0_151 = arith.constant 0 : index
      %c70_152 = arith.constant 70 : index
      %582 = vector.load %arg8[%c0_150, %c0_151, %c70_152] : memref<2x2x358xf32, #tpu.memory_space<vmem>>, vector<2x2x256xf32>
      %c34_153 = arith.constant 34 : index
      %583 = memref.load %arg3[%c34_153] : memref<98xf32, #tpu.memory_space<smem>>
      %c83 = arith.constant 83 : index
      %584 = memref.load %arg3[%c83] : memref<98xf32, #tpu.memory_space<smem>>
      %585 = arith.mulf %27, %36 : vector<1x256xf32>
      %586 = vector.extract_strided_slice %582 {offsets = [0, 0, 0], sizes = [1, 2, 256], strides = [1, 1, 1]} : vector<2x2x256xf32> to vector<1x2x256xf32>
      %587 = vector.shape_cast %586 : vector<1x2x256xf32> to vector<2x256xf32>
      %588 = vector.broadcast %583 : f32 to vector<2x256xf32>
      %589 = arith.mulf %588, %587 : vector<2x256xf32>
      %590 = vector.extract_strided_slice %582 {offsets = [1, 0, 0], sizes = [1, 2, 256], strides = [1, 1, 1]} : vector<2x2x256xf32> to vector<1x2x256xf32>
      %591 = vector.shape_cast %590 : vector<1x2x256xf32> to vector<2x256xf32>
      %592 = vector.broadcast %584 : f32 to vector<2x256xf32>
      %593 = arith.mulf %592, %591 : vector<2x256xf32>
      %594 = arith.addf %589, %593 : vector<2x256xf32>
      %595 = vector.broadcast %585 : vector<1x256xf32> to vector<2x256xf32>
      %596 = arith.mulf %595, %594 : vector<2x256xf32>
      %597 = arith.addf %581, %596 : vector<2x256xf32>
      %c0_154 = arith.constant 0 : index
      %c0_155 = arith.constant 0 : index
      %c80_156 = arith.constant 80 : index
      %598 = vector.load %arg8[%c0_154, %c0_155, %c80_156] : memref<2x2x358xf32, #tpu.memory_space<vmem>>, vector<2x2x256xf32>
      %c35_157 = arith.constant 35 : index
      %599 = memref.load %arg3[%c35_157] : memref<98xf32, #tpu.memory_space<smem>>
      %c84 = arith.constant 84 : index
      %600 = memref.load %arg3[%c84] : memref<98xf32, #tpu.memory_space<smem>>
      %601 = arith.mulf %28, %30 : vector<1x256xf32>
      %602 = vector.extract_strided_slice %598 {offsets = [0, 0, 0], sizes = [1, 2, 256], strides = [1, 1, 1]} : vector<2x2x256xf32> to vector<1x2x256xf32>
      %603 = vector.shape_cast %602 : vector<1x2x256xf32> to vector<2x256xf32>
      %604 = vector.broadcast %599 : f32 to vector<2x256xf32>
      %605 = arith.mulf %604, %603 : vector<2x256xf32>
      %606 = vector.extract_strided_slice %598 {offsets = [1, 0, 0], sizes = [1, 2, 256], strides = [1, 1, 1]} : vector<2x2x256xf32> to vector<1x2x256xf32>
      %607 = vector.shape_cast %606 : vector<1x2x256xf32> to vector<2x256xf32>
      %608 = vector.broadcast %600 : f32 to vector<2x256xf32>
      %609 = arith.mulf %608, %607 : vector<2x256xf32>
      %610 = arith.addf %605, %609 : vector<2x256xf32>
      %611 = vector.broadcast %601 : vector<1x256xf32> to vector<2x256xf32>
      %612 = arith.mulf %611, %610 : vector<2x256xf32>
      %613 = arith.addf %597, %612 : vector<2x256xf32>
      %c0_158 = arith.constant 0 : index
      %c0_159 = arith.constant 0 : index
      %c81_160 = arith.constant 81 : index
      %614 = vector.load %arg8[%c0_158, %c0_159, %c81_160] : memref<2x2x358xf32, #tpu.memory_space<vmem>>, vector<2x2x256xf32>
      %c36_161 = arith.constant 36 : index
      %615 = memref.load %arg3[%c36_161] : memref<98xf32, #tpu.memory_space<smem>>
      %c85 = arith.constant 85 : index
      %616 = memref.load %arg3[%c85] : memref<98xf32, #tpu.memory_space<smem>>
      %617 = arith.mulf %28, %31 : vector<1x256xf32>
      %618 = vector.extract_strided_slice %614 {offsets = [0, 0, 0], sizes = [1, 2, 256], strides = [1, 1, 1]} : vector<2x2x256xf32> to vector<1x2x256xf32>
      %619 = vector.shape_cast %618 : vector<1x2x256xf32> to vector<2x256xf32>
      %620 = vector.broadcast %615 : f32 to vector<2x256xf32>
      %621 = arith.mulf %620, %619 : vector<2x256xf32>
      %622 = vector.extract_strided_slice %614 {offsets = [1, 0, 0], sizes = [1, 2, 256], strides = [1, 1, 1]} : vector<2x2x256xf32> to vector<1x2x256xf32>
      %623 = vector.shape_cast %622 : vector<1x2x256xf32> to vector<2x256xf32>
      %624 = vector.broadcast %616 : f32 to vector<2x256xf32>
      %625 = arith.mulf %624, %623 : vector<2x256xf32>
      %626 = arith.addf %621, %625 : vector<2x256xf32>
      %627 = vector.broadcast %617 : vector<1x256xf32> to vector<2x256xf32>
      %628 = arith.mulf %627, %626 : vector<2x256xf32>
      %629 = arith.addf %613, %628 : vector<2x256xf32>
      %c0_162 = arith.constant 0 : index
      %c0_163 = arith.constant 0 : index
      %c82_164 = arith.constant 82 : index
      %630 = vector.load %arg8[%c0_162, %c0_163, %c82_164] : memref<2x2x358xf32, #tpu.memory_space<vmem>>, vector<2x2x256xf32>
      %c37_165 = arith.constant 37 : index
      %631 = memref.load %arg3[%c37_165] : memref<98xf32, #tpu.memory_space<smem>>
      %c86 = arith.constant 86 : index
      %632 = memref.load %arg3[%c86] : memref<98xf32, #tpu.memory_space<smem>>
      %633 = arith.mulf %28, %32 : vector<1x256xf32>
      %634 = vector.extract_strided_slice %630 {offsets = [0, 0, 0], sizes = [1, 2, 256], strides = [1, 1, 1]} : vector<2x2x256xf32> to vector<1x2x256xf32>
      %635 = vector.shape_cast %634 : vector<1x2x256xf32> to vector<2x256xf32>
      %636 = vector.broadcast %631 : f32 to vector<2x256xf32>
      %637 = arith.mulf %636, %635 : vector<2x256xf32>
      %638 = vector.extract_strided_slice %630 {offsets = [1, 0, 0], sizes = [1, 2, 256], strides = [1, 1, 1]} : vector<2x2x256xf32> to vector<1x2x256xf32>
      %639 = vector.shape_cast %638 : vector<1x2x256xf32> to vector<2x256xf32>
      %640 = vector.broadcast %632 : f32 to vector<2x256xf32>
      %641 = arith.mulf %640, %639 : vector<2x256xf32>
      %642 = arith.addf %637, %641 : vector<2x256xf32>
      %643 = vector.broadcast %633 : vector<1x256xf32> to vector<2x256xf32>
      %644 = arith.mulf %643, %642 : vector<2x256xf32>
      %645 = arith.addf %629, %644 : vector<2x256xf32>
      %c0_166 = arith.constant 0 : index
      %c0_167 = arith.constant 0 : index
      %c83_168 = arith.constant 83 : index
      %646 = vector.load %arg8[%c0_166, %c0_167, %c83_168] : memref<2x2x358xf32, #tpu.memory_space<vmem>>, vector<2x2x256xf32>
      %c38_169 = arith.constant 38 : index
      %647 = memref.load %arg3[%c38_169] : memref<98xf32, #tpu.memory_space<smem>>
      %c87 = arith.constant 87 : index
      %648 = memref.load %arg3[%c87] : memref<98xf32, #tpu.memory_space<smem>>
      %649 = arith.mulf %28, %33 : vector<1x256xf32>
      %650 = vector.extract_strided_slice %646 {offsets = [0, 0, 0], sizes = [1, 2, 256], strides = [1, 1, 1]} : vector<2x2x256xf32> to vector<1x2x256xf32>
      %651 = vector.shape_cast %650 : vector<1x2x256xf32> to vector<2x256xf32>
      %652 = vector.broadcast %647 : f32 to vector<2x256xf32>
      %653 = arith.mulf %652, %651 : vector<2x256xf32>
      %654 = vector.extract_strided_slice %646 {offsets = [1, 0, 0], sizes = [1, 2, 256], strides = [1, 1, 1]} : vector<2x2x256xf32> to vector<1x2x256xf32>
      %655 = vector.shape_cast %654 : vector<1x2x256xf32> to vector<2x256xf32>
      %656 = vector.broadcast %648 : f32 to vector<2x256xf32>
      %657 = arith.mulf %656, %655 : vector<2x256xf32>
      %658 = arith.addf %653, %657 : vector<2x256xf32>
      %659 = vector.broadcast %649 : vector<1x256xf32> to vector<2x256xf32>
      %660 = arith.mulf %659, %658 : vector<2x256xf32>
      %661 = arith.addf %645, %660 : vector<2x256xf32>
      %c0_170 = arith.constant 0 : index
      %c0_171 = arith.constant 0 : index
      %c84_172 = arith.constant 84 : index
      %662 = vector.load %arg8[%c0_170, %c0_171, %c84_172] : memref<2x2x358xf32, #tpu.memory_space<vmem>>, vector<2x2x256xf32>
      %c39 = arith.constant 39 : index
      %663 = memref.load %arg3[%c39] : memref<98xf32, #tpu.memory_space<smem>>
      %c88 = arith.constant 88 : index
      %664 = memref.load %arg3[%c88] : memref<98xf32, #tpu.memory_space<smem>>
      %665 = arith.mulf %28, %34 : vector<1x256xf32>
      %666 = vector.extract_strided_slice %662 {offsets = [0, 0, 0], sizes = [1, 2, 256], strides = [1, 1, 1]} : vector<2x2x256xf32> to vector<1x2x256xf32>
      %667 = vector.shape_cast %666 : vector<1x2x256xf32> to vector<2x256xf32>
      %668 = vector.broadcast %663 : f32 to vector<2x256xf32>
      %669 = arith.mulf %668, %667 : vector<2x256xf32>
      %670 = vector.extract_strided_slice %662 {offsets = [1, 0, 0], sizes = [1, 2, 256], strides = [1, 1, 1]} : vector<2x2x256xf32> to vector<1x2x256xf32>
      %671 = vector.shape_cast %670 : vector<1x2x256xf32> to vector<2x256xf32>
      %672 = vector.broadcast %664 : f32 to vector<2x256xf32>
      %673 = arith.mulf %672, %671 : vector<2x256xf32>
      %674 = arith.addf %669, %673 : vector<2x256xf32>
      %675 = vector.broadcast %665 : vector<1x256xf32> to vector<2x256xf32>
      %676 = arith.mulf %675, %674 : vector<2x256xf32>
      %677 = arith.addf %661, %676 : vector<2x256xf32>
      %c0_173 = arith.constant 0 : index
      %c0_174 = arith.constant 0 : index
      %c85_175 = arith.constant 85 : index
      %678 = vector.load %arg8[%c0_173, %c0_174, %c85_175] : memref<2x2x358xf32, #tpu.memory_space<vmem>>, vector<2x2x256xf32>
      %c40 = arith.constant 40 : index
      %679 = memref.load %arg3[%c40] : memref<98xf32, #tpu.memory_space<smem>>
      %c89 = arith.constant 89 : index
      %680 = memref.load %arg3[%c89] : memref<98xf32, #tpu.memory_space<smem>>
      %681 = arith.mulf %28, %35 : vector<1x256xf32>
      %682 = vector.extract_strided_slice %678 {offsets = [0, 0, 0], sizes = [1, 2, 256], strides = [1, 1, 1]} : vector<2x2x256xf32> to vector<1x2x256xf32>
      %683 = vector.shape_cast %682 : vector<1x2x256xf32> to vector<2x256xf32>
      %684 = vector.broadcast %679 : f32 to vector<2x256xf32>
      %685 = arith.mulf %684, %683 : vector<2x256xf32>
      %686 = vector.extract_strided_slice %678 {offsets = [1, 0, 0], sizes = [1, 2, 256], strides = [1, 1, 1]} : vector<2x2x256xf32> to vector<1x2x256xf32>
      %687 = vector.shape_cast %686 : vector<1x2x256xf32> to vector<2x256xf32>
      %688 = vector.broadcast %680 : f32 to vector<2x256xf32>
      %689 = arith.mulf %688, %687 : vector<2x256xf32>
      %690 = arith.addf %685, %689 : vector<2x256xf32>
      %691 = vector.broadcast %681 : vector<1x256xf32> to vector<2x256xf32>
      %692 = arith.mulf %691, %690 : vector<2x256xf32>
      %693 = arith.addf %677, %692 : vector<2x256xf32>
      %c0_176 = arith.constant 0 : index
      %c0_177 = arith.constant 0 : index
      %c86_178 = arith.constant 86 : index
      %694 = vector.load %arg8[%c0_176, %c0_177, %c86_178] : memref<2x2x358xf32, #tpu.memory_space<vmem>>, vector<2x2x256xf32>
      %c41 = arith.constant 41 : index
      %695 = memref.load %arg3[%c41] : memref<98xf32, #tpu.memory_space<smem>>
      %c90 = arith.constant 90 : index
      %696 = memref.load %arg3[%c90] : memref<98xf32, #tpu.memory_space<smem>>
      %697 = arith.mulf %28, %36 : vector<1x256xf32>
      %698 = vector.extract_strided_slice %694 {offsets = [0, 0, 0], sizes = [1, 2, 256], strides = [1, 1, 1]} : vector<2x2x256xf32> to vector<1x2x256xf32>
      %699 = vector.shape_cast %698 : vector<1x2x256xf32> to vector<2x256xf32>
      %700 = vector.broadcast %695 : f32 to vector<2x256xf32>
      %701 = arith.mulf %700, %699 : vector<2x256xf32>
      %702 = vector.extract_strided_slice %694 {offsets = [1, 0, 0], sizes = [1, 2, 256], strides = [1, 1, 1]} : vector<2x2x256xf32> to vector<1x2x256xf32>
      %703 = vector.shape_cast %702 : vector<1x2x256xf32> to vector<2x256xf32>
      %704 = vector.broadcast %696 : f32 to vector<2x256xf32>
      %705 = arith.mulf %704, %703 : vector<2x256xf32>
      %706 = arith.addf %701, %705 : vector<2x256xf32>
      %707 = vector.broadcast %697 : vector<1x256xf32> to vector<2x256xf32>
      %708 = arith.mulf %707, %706 : vector<2x256xf32>
      %709 = arith.addf %693, %708 : vector<2x256xf32>
      %c0_179 = arith.constant 0 : index
      %c0_180 = arith.constant 0 : index
      %c96 = arith.constant 96 : index
      %710 = vector.load %arg8[%c0_179, %c0_180, %c96] : memref<2x2x358xf32, #tpu.memory_space<vmem>>, vector<2x2x256xf32>
      %c42 = arith.constant 42 : index
      %711 = memref.load %arg3[%c42] : memref<98xf32, #tpu.memory_space<smem>>
      %c91 = arith.constant 91 : index
      %712 = memref.load %arg3[%c91] : memref<98xf32, #tpu.memory_space<smem>>
      %713 = arith.mulf %29, %30 : vector<1x256xf32>
      %714 = vector.extract_strided_slice %710 {offsets = [0, 0, 0], sizes = [1, 2, 256], strides = [1, 1, 1]} : vector<2x2x256xf32> to vector<1x2x256xf32>
      %715 = vector.shape_cast %714 : vector<1x2x256xf32> to vector<2x256xf32>
      %716 = vector.broadcast %711 : f32 to vector<2x256xf32>
      %717 = arith.mulf %716, %715 : vector<2x256xf32>
      %718 = vector.extract_strided_slice %710 {offsets = [1, 0, 0], sizes = [1, 2, 256], strides = [1, 1, 1]} : vector<2x2x256xf32> to vector<1x2x256xf32>
      %719 = vector.shape_cast %718 : vector<1x2x256xf32> to vector<2x256xf32>
      %720 = vector.broadcast %712 : f32 to vector<2x256xf32>
      %721 = arith.mulf %720, %719 : vector<2x256xf32>
      %722 = arith.addf %717, %721 : vector<2x256xf32>
      %723 = vector.broadcast %713 : vector<1x256xf32> to vector<2x256xf32>
      %724 = arith.mulf %723, %722 : vector<2x256xf32>
      %725 = arith.addf %709, %724 : vector<2x256xf32>
      %c0_181 = arith.constant 0 : index
      %c0_182 = arith.constant 0 : index
      %c97 = arith.constant 97 : index
      %726 = vector.load %arg8[%c0_181, %c0_182, %c97] : memref<2x2x358xf32, #tpu.memory_space<vmem>>, vector<2x2x256xf32>
      %c43 = arith.constant 43 : index
      %727 = memref.load %arg3[%c43] : memref<98xf32, #tpu.memory_space<smem>>
      %c92 = arith.constant 92 : index
      %728 = memref.load %arg3[%c92] : memref<98xf32, #tpu.memory_space<smem>>
      %729 = arith.mulf %29, %31 : vector<1x256xf32>
      %730 = vector.extract_strided_slice %726 {offsets = [0, 0, 0], sizes = [1, 2, 256], strides = [1, 1, 1]} : vector<2x2x256xf32> to vector<1x2x256xf32>
      %731 = vector.shape_cast %730 : vector<1x2x256xf32> to vector<2x256xf32>
      %732 = vector.broadcast %727 : f32 to vector<2x256xf32>
      %733 = arith.mulf %732, %731 : vector<2x256xf32>
      %734 = vector.extract_strided_slice %726 {offsets = [1, 0, 0], sizes = [1, 2, 256], strides = [1, 1, 1]} : vector<2x2x256xf32> to vector<1x2x256xf32>
      %735 = vector.shape_cast %734 : vector<1x2x256xf32> to vector<2x256xf32>
      %736 = vector.broadcast %728 : f32 to vector<2x256xf32>
      %737 = arith.mulf %736, %735 : vector<2x256xf32>
      %738 = arith.addf %733, %737 : vector<2x256xf32>
      %739 = vector.broadcast %729 : vector<1x256xf32> to vector<2x256xf32>
      %740 = arith.mulf %739, %738 : vector<2x256xf32>
      %741 = arith.addf %725, %740 : vector<2x256xf32>
      %c0_183 = arith.constant 0 : index
      %c0_184 = arith.constant 0 : index
      %c98 = arith.constant 98 : index
      %742 = vector.load %arg8[%c0_183, %c0_184, %c98] : memref<2x2x358xf32, #tpu.memory_space<vmem>>, vector<2x2x256xf32>
      %c44 = arith.constant 44 : index
      %743 = memref.load %arg3[%c44] : memref<98xf32, #tpu.memory_space<smem>>
      %c93 = arith.constant 93 : index
      %744 = memref.load %arg3[%c93] : memref<98xf32, #tpu.memory_space<smem>>
      %745 = arith.mulf %29, %32 : vector<1x256xf32>
      %746 = vector.extract_strided_slice %742 {offsets = [0, 0, 0], sizes = [1, 2, 256], strides = [1, 1, 1]} : vector<2x2x256xf32> to vector<1x2x256xf32>
      %747 = vector.shape_cast %746 : vector<1x2x256xf32> to vector<2x256xf32>
      %748 = vector.broadcast %743 : f32 to vector<2x256xf32>
      %749 = arith.mulf %748, %747 : vector<2x256xf32>
      %750 = vector.extract_strided_slice %742 {offsets = [1, 0, 0], sizes = [1, 2, 256], strides = [1, 1, 1]} : vector<2x2x256xf32> to vector<1x2x256xf32>
      %751 = vector.shape_cast %750 : vector<1x2x256xf32> to vector<2x256xf32>
      %752 = vector.broadcast %744 : f32 to vector<2x256xf32>
      %753 = arith.mulf %752, %751 : vector<2x256xf32>
      %754 = arith.addf %749, %753 : vector<2x256xf32>
      %755 = vector.broadcast %745 : vector<1x256xf32> to vector<2x256xf32>
      %756 = arith.mulf %755, %754 : vector<2x256xf32>
      %757 = arith.addf %741, %756 : vector<2x256xf32>
      %c0_185 = arith.constant 0 : index
      %c0_186 = arith.constant 0 : index
      %c99 = arith.constant 99 : index
      %758 = vector.load %arg8[%c0_185, %c0_186, %c99] : memref<2x2x358xf32, #tpu.memory_space<vmem>>, vector<2x2x256xf32>
      %c45 = arith.constant 45 : index
      %759 = memref.load %arg3[%c45] : memref<98xf32, #tpu.memory_space<smem>>
      %c94 = arith.constant 94 : index
      %760 = memref.load %arg3[%c94] : memref<98xf32, #tpu.memory_space<smem>>
      %761 = arith.mulf %29, %33 : vector<1x256xf32>
      %762 = vector.extract_strided_slice %758 {offsets = [0, 0, 0], sizes = [1, 2, 256], strides = [1, 1, 1]} : vector<2x2x256xf32> to vector<1x2x256xf32>
      %763 = vector.shape_cast %762 : vector<1x2x256xf32> to vector<2x256xf32>
      %764 = vector.broadcast %759 : f32 to vector<2x256xf32>
      %765 = arith.mulf %764, %763 : vector<2x256xf32>
      %766 = vector.extract_strided_slice %758 {offsets = [1, 0, 0], sizes = [1, 2, 256], strides = [1, 1, 1]} : vector<2x2x256xf32> to vector<1x2x256xf32>
      %767 = vector.shape_cast %766 : vector<1x2x256xf32> to vector<2x256xf32>
      %768 = vector.broadcast %760 : f32 to vector<2x256xf32>
      %769 = arith.mulf %768, %767 : vector<2x256xf32>
      %770 = arith.addf %765, %769 : vector<2x256xf32>
      %771 = vector.broadcast %761 : vector<1x256xf32> to vector<2x256xf32>
      %772 = arith.mulf %771, %770 : vector<2x256xf32>
      %773 = arith.addf %757, %772 : vector<2x256xf32>
      %c0_187 = arith.constant 0 : index
      %c0_188 = arith.constant 0 : index
      %c100 = arith.constant 100 : index
      %774 = vector.load %arg8[%c0_187, %c0_188, %c100] : memref<2x2x358xf32, #tpu.memory_space<vmem>>, vector<2x2x256xf32>
      %c46 = arith.constant 46 : index
      %775 = memref.load %arg3[%c46] : memref<98xf32, #tpu.memory_space<smem>>
      %c95 = arith.constant 95 : index
      %776 = memref.load %arg3[%c95] : memref<98xf32, #tpu.memory_space<smem>>
      %777 = arith.mulf %29, %34 : vector<1x256xf32>
      %778 = vector.extract_strided_slice %774 {offsets = [0, 0, 0], sizes = [1, 2, 256], strides = [1, 1, 1]} : vector<2x2x256xf32> to vector<1x2x256xf32>
      %779 = vector.shape_cast %778 : vector<1x2x256xf32> to vector<2x256xf32>
      %780 = vector.broadcast %775 : f32 to vector<2x256xf32>
      %781 = arith.mulf %780, %779 : vector<2x256xf32>
      %782 = vector.extract_strided_slice %774 {offsets = [1, 0, 0], sizes = [1, 2, 256], strides = [1, 1, 1]} : vector<2x2x256xf32> to vector<1x2x256xf32>
      %783 = vector.shape_cast %782 : vector<1x2x256xf32> to vector<2x256xf32>
      %784 = vector.broadcast %776 : f32 to vector<2x256xf32>
      %785 = arith.mulf %784, %783 : vector<2x256xf32>
      %786 = arith.addf %781, %785 : vector<2x256xf32>
      %787 = vector.broadcast %777 : vector<1x256xf32> to vector<2x256xf32>
      %788 = arith.mulf %787, %786 : vector<2x256xf32>
      %789 = arith.addf %773, %788 : vector<2x256xf32>
      %c0_189 = arith.constant 0 : index
      %c0_190 = arith.constant 0 : index
      %c101 = arith.constant 101 : index
      %790 = vector.load %arg8[%c0_189, %c0_190, %c101] : memref<2x2x358xf32, #tpu.memory_space<vmem>>, vector<2x2x256xf32>
      %c47 = arith.constant 47 : index
      %791 = memref.load %arg3[%c47] : memref<98xf32, #tpu.memory_space<smem>>
      %c96_191 = arith.constant 96 : index
      %792 = memref.load %arg3[%c96_191] : memref<98xf32, #tpu.memory_space<smem>>
      %793 = arith.mulf %29, %35 : vector<1x256xf32>
      %794 = vector.extract_strided_slice %790 {offsets = [0, 0, 0], sizes = [1, 2, 256], strides = [1, 1, 1]} : vector<2x2x256xf32> to vector<1x2x256xf32>
      %795 = vector.shape_cast %794 : vector<1x2x256xf32> to vector<2x256xf32>
      %796 = vector.broadcast %791 : f32 to vector<2x256xf32>
      %797 = arith.mulf %796, %795 : vector<2x256xf32>
      %798 = vector.extract_strided_slice %790 {offsets = [1, 0, 0], sizes = [1, 2, 256], strides = [1, 1, 1]} : vector<2x2x256xf32> to vector<1x2x256xf32>
      %799 = vector.shape_cast %798 : vector<1x2x256xf32> to vector<2x256xf32>
      %800 = vector.broadcast %792 : f32 to vector<2x256xf32>
      %801 = arith.mulf %800, %799 : vector<2x256xf32>
      %802 = arith.addf %797, %801 : vector<2x256xf32>
      %803 = vector.broadcast %793 : vector<1x256xf32> to vector<2x256xf32>
      %804 = arith.mulf %803, %802 : vector<2x256xf32>
      %805 = arith.addf %789, %804 : vector<2x256xf32>
      %c0_192 = arith.constant 0 : index
      %c0_193 = arith.constant 0 : index
      %c102 = arith.constant 102 : index
      %806 = vector.load %arg8[%c0_192, %c0_193, %c102] : memref<2x2x358xf32, #tpu.memory_space<vmem>>, vector<2x2x256xf32>
      %c48_194 = arith.constant 48 : index
      %807 = memref.load %arg3[%c48_194] : memref<98xf32, #tpu.memory_space<smem>>
      %c97_195 = arith.constant 97 : index
      %808 = memref.load %arg3[%c97_195] : memref<98xf32, #tpu.memory_space<smem>>
      %809 = arith.mulf %29, %36 : vector<1x256xf32>
      %810 = vector.extract_strided_slice %806 {offsets = [0, 0, 0], sizes = [1, 2, 256], strides = [1, 1, 1]} : vector<2x2x256xf32> to vector<1x2x256xf32>
      %811 = vector.shape_cast %810 : vector<1x2x256xf32> to vector<2x256xf32>
      %812 = vector.broadcast %807 : f32 to vector<2x256xf32>
      %813 = arith.mulf %812, %811 : vector<2x256xf32>
      %814 = vector.extract_strided_slice %806 {offsets = [1, 0, 0], sizes = [1, 2, 256], strides = [1, 1, 1]} : vector<2x2x256xf32> to vector<1x2x256xf32>
      %815 = vector.shape_cast %814 : vector<1x2x256xf32> to vector<2x256xf32>
      %816 = vector.broadcast %808 : f32 to vector<2x256xf32>
      %817 = arith.mulf %816, %815 : vector<2x256xf32>
      %818 = arith.addf %813, %817 : vector<2x256xf32>
      %819 = vector.broadcast %809 : vector<1x256xf32> to vector<2x256xf32>
      %820 = arith.mulf %819, %818 : vector<2x256xf32>
      %821 = arith.addf %805, %820 : vector<2x256xf32>
      %822 = arith.negf %821 : vector<2x256xf32>
      %823 = math.exp %822 : vector<2x256xf32>
      %cst_196 = arith.constant 1.000000e+00 : f32
      %824 = vector.broadcast %cst_196 : f32 to vector<2x256xf32>
      %825 = arith.addf %824, %823 : vector<2x256xf32>
      %826 = arith.divf %824, %825 : vector<2x256xf32>
      %c0_197 = arith.constant 0 : index
      %c0_198 = arith.constant 0 : index
      %827 = vector.load %arg5[%c0_197, %c0_198] : memref<2x256xf32, #tpu.memory_space<vmem>>, vector<2x256xf32>
      tpu.vector_store %arg5[%c0_197, %c0_198], %826 {strides = array<i32>} : memref<2x256xf32, #tpu.memory_space<vmem>>, vector<2x256xf32>,
    } else {
    }
    return
  }
  func.func @transform_0(%arg0: i32, %arg1: i32) -> (i32, i32, i32) {
    %c0_i32 = arith.constant 0 : i32
    %c0_i32_0 = arith.constant 0 : i32
    return %arg0, %arg1, %c0_i32 : i32, i32, i32
  }
  func.func @transform_1(%arg0: i32, %arg1: i32) -> i32 {
    %c0_i32 = arith.constant 0 : i32
    %c0_i32_0 = arith.constant 0 : i32
    return %c0_i32 : i32
  }
  func.func @transform_2(%arg0: i32, %arg1: i32) -> (i32, i32) {
    %c0_i32 = arith.constant 0 : i32
    %c0_i32_0 = arith.constant 0 : i32
    %c0_i32_1 = arith.constant 0 : i32
    return %c0_i32, %c0_i32_0 : i32, i32
  }
  func.func @transform_3(%arg0: i32, %arg1: i32) -> (i32, i32) {
    %c0_i32 = arith.constant 0 : i32
    %c0_i32_0 = arith.constant 0 : i32
    return %arg0, %c0_i32 : i32, i32
  }
}

</mosaic_0001>

<bundles_post_ra>
// kernel: tpu_custom_call.1
= control target key start
LH: loop header
LB: loop body
LE: loop exit
PB: predicated region body
PF: predicated region fallthrough
CT: control target
= control target key end

     0   :  { %8 = vsyncpa [#allocation6], 0  ;;  %s4897_s0 = inlined_call_operand.hbm [shape: f32[2,4,256], index: 0, kind: input, shape index: {}]   ;;  %s4898_s1 = inlined_call_operand.vmem [shape: f32[98], index: 1, kind: input, shape index: {}]   ;;  %s4899_s2 = inlined_call_operand.hbm [shape: f32[14,256], index: 2, kind: input, shape index: {}]   ;;  %s4900_s3 = inlined_call_operand.hbm [shape: f32[2,256], index: 3, kind: output, shape index: {}]  }
   0x1   :  { %9 = vsyncpa [#allocation8], 0 }
   0x2   :  { %10 = vsyncpa [#allocation11], 0 }
   0x3   :  { %11 = vsyncpa [#allocation7], 0  ;;  %s3138_s12 = smov [#allocation5]   ;;  %s30_s16 = sshll.u32 %s4898_s1, 4  ;;  %s31_s16 = int_to_ptr.vmem [resolvable:$true] %s30_s16 }
   0x4   :  { %s17_s13 = sshll.u32 %s3138_s12, 4  ;;  %s3052_s19 = scalar_lea.hbm %s4897_s0, 256  ;;  %s18_s13 = int_to_ptr.vmem [resolvable:$true] %s17_s13 }
   0x5   :  { %p3053_p0 = scmp.ne.s32.totalorder %s4897_s0, %s3052_s19  ;;  %p3056_p1 = scmp.lt.u32.totalorder %s3052_s19, %s4897_s0 }
   0x7   :  { %p3058_p2 = pnand %p3056_p1, %p3053_p0 }
   0x9   :  { %3061 = shalt.err (!%p3058_p2)
}
   0xa   :  { %s3062_s24 = scalar_lea.vmem %s18_s13, 256  ;;  %p3067_p4 = scmp.lt.s32.totalorder %s18_s13, %s18_s13 }
   0xb   :  { %p3063_p3 = scmp.ne.s32.totalorder %s18_s13, %s3062_s24  ;;  %p3068_p5 = scmp.lt.s32.totalorder %s3062_s24, %s3062_s24 }
   0xd   :  { %p3069_p6 = por %p3068_p5, %p3067_p4 }
   0xf   :  { %p3070_p7 = pnand %p3069_p6, %p3063_p3 }
  0x11   :  { %3073 = shalt.err (!%p3070_p7)
}
  0x12   :  { %s3139_s1 = smov 128   ;;  %s3140_s25 = smov 8  }
  0x13   :  { %23 = dma.hbm_to_vmem [thread:$0]  %s4897_s0, 256, %s18_s13, [#allocation6], %s3139_s1, %s3139_s1, %s3140_s25  }
  0x14   :  { %s3074_s28 = scalar_lea.vmem %s31_s16, 16  ;;  %p3079_p9 = scmp.lt.s32.totalorder %s31_s16, %s31_s16 }
  0x15   :  { %p3075_p8 = scmp.ne.s32.totalorder %s31_s16, %s3074_s28  ;;  %p3080_p10 = scmp.lt.s32.totalorder %s3074_s28, %s3074_s28 }
  0x17   :  { %p3081_p11 = por %p3080_p10, %p3079_p9 }
  0x19   :  { %p3082_p12 = pnand %p3081_p11, %p3075_p8 }
  0x1b   :  { %3085 = shalt.err (!%p3082_p12)
}
  0x1c   :  { %s3141_s29 = smov [#allocation9]   ;;  %s3142_s30 = smov [#allocation10]  }
  0x1d   :  { %33 = dma.vmem_to_smem %s31_s16, 16, %s3141_s29, [#allocation8]  }
  0x1e   :  { %s39_s4 = sshll.u32 %s3142_s30, 4  ;;  %s3086_s7 = scalar_lea.hbm %s4899_s2, 512  ;;  %s40_s4 = int_to_ptr.vmem [resolvable:$true] %s39_s4 }
  0x1f   :  { %p3087_p13 = scmp.ne.s32.totalorder %s4899_s2, %s3086_s7  ;;  %p3090_p0 = scmp.lt.u32.totalorder %s3086_s7, %s4899_s2 }
  0x21   :  { %p3092_p1 = pnand %p3090_p0, %p3087_p13 }
  0x23   :  { %3095 = shalt.err (!%p3092_p1)
}
  0x24   :  { %s3096_s11 = scalar_lea.vmem %s40_s4, 512  ;;  %p3101_p3 = scmp.lt.s32.totalorder %s40_s4, %s40_s4 }
  0x25   :  { %p3097_p2 = scmp.ne.s32.totalorder %s40_s4, %s3096_s11  ;;  %p3102_p4 = scmp.lt.s32.totalorder %s3096_s11, %s3096_s11 }
  0x27   :  { %p3103_p5 = por %p3102_p4, %p3101_p3 }
  0x29   :  { %p3104_p6 = pnand %p3103_p5, %p3097_p2 }
  0x2b   :  { %3107 = shalt.err (!%p3104_p6)
}
  0x2c   :  { %s3143_s12 = smov 256   ;;  %s3144_s13 = smov 16  }
  0x2d   :  { %45 = dma.hbm_to_vmem [thread:$0]  %s4899_s2, 512, %s40_s4, [#allocation11], %s3143_s12, %s3143_s12, %s3144_s13  }
  0x2e   :  { %3130 = dma.done.wait [#allocation6], 256  }
  0x2f   :  { %3131 = vsyncadd [#allocation6], 4294967040 }
  0x30   :  { %3132 = dma.done.wait [#allocation8], 16  }
  0x31   :  { %3133 = vsyncadd [#allocation8], 4294967280 }
  0x32   :  { %3134 = dma.done.wait [#allocation11], 512  }
  0x33   :  { %3135 = vsyncadd [#allocation11], 4294966784 }
  0x34   :  { %55 = sfence }
  0x35   :  { %v68_v0 = vld [vmem:[#allocation5] sm:$0xff]  ;;  %v69_v1 = vld [vmem:[#allocation5 + $0x8] sm:$0xff]  ;;  %vm76_vm0 = vcmask 1043456   ;;  %v142_v2 = vlaneseq  ;;  %v3145_v3 = vmov 0.0   ;;  %v3146_v10 = vmov 1983009808  }
  0x36   :  { %60 = vst [vmem:[#allocation2] sm:$0xf] %v3145_v3  ;;  %v72_v4 = vcombine.high %v68_v0, %v68_v0  ;;  %v73_v5 = vcombine.high %v69_v1, %v69_v1  ;;  %v77_v6 = vsel %vm76_vm0, %v68_v0, 0.0  ;;  %v91_v7 = vsel %vm76_vm0, %v69_v1, 0.0  ;;  %s3148_s2 = smov 51   ;;  %s3280_s16 = sld [smem:[#allocation9 + $0x3]] }
  0x37   :  { %v78_v8 = vrot.slane %v77_v6, 4  ;;  %v92_v9 = vrot.slane %v91_v7, 4  ;;  %v140_v11 = vunpack.c.l.s4 %v3146_v10  ;;  %v3250_v14 = vshrl.u32 %v142_v2, 7  ;;  %s3282_s17 = sld [smem:[#allocation9 + $0x1]]  ;;  %s3284_s18 = sld [smem:[#allocation9 + $0x34]] }
  0x38   :  { %v84_v12 = vsel %vm76_vm0, %v72_v4, 0.0  ;;  %v98_v13 = vsel %vm76_vm0, %v73_v5, 0.0  ;;  %v3147_v24 = vmov -inf   ;;  %v105_v26 = vsel %vm76_vm0, %v68_v0, -inf  ;;  %s3286_s19 = sld [smem:[#allocation9 + $0x5]]  ;;  %s3288_s20 = sld [smem:[#allocation9 + $0x32]] }
  0x39   :  { %4907 = vst [vmem:[#allocation17_spill] sm:$0xff] %v3250_v14  ;;  %v79_v15 = vadd.f32 %v78_v8, %v77_v6  ;;  %v85_v16 = vrot.slane %v84_v12, 4  ;;  %v93_v17 = vadd.f32 %v92_v9, %v91_v7  ;;  %v99_v18 = vrot.slane %v98_v13, 4  ;;  %61 = vst [vmem:[#allocation3] sm:$0xf] %v3147_v24  ;;  %s3290_s21 = sld [smem:[#allocation9 + $0x36]] }
  0x3a   :  { %v141_v19 = vunpack.c.0.s8 %v140_v11  ;;  %v112_v27 = vsel %vm76_vm0, %v72_v4, -inf  ;;  %v119_v28 = vsel %vm76_vm0, %v69_v1, -inf  ;;  %v106_v33 = vrot.slane %v105_v26, 4  ;;  %s3292_s22 = sld [smem:[#allocation9 + $0x2]]  ;;  %s3294_s23 = sld [smem:[#allocation9 + $0x33]] }
  0x3b   :  { %v80_v20 = vrot.slane %v79_v15, 2  ;;  %v86_v21 = vadd.f32 %v85_v16, %v84_v12  ;;  %v94_v22 = vrot.slane %v93_v17, 2  ;;  %v100_v23 = vadd.f32 %v99_v18, %v98_v13  ;;  %s3297_s24 = sld [smem:[#allocation9 + $0x38]]  ;;  %s3299_s1 = sld [smem:[#allocation9 + $0x35]] }
  0x3c   :  { %v3253_v25 = vsub.s32 %v141_v19, %v3250_v14  ;;  %v113_v34 = vrot.slane %v112_v27, 4  ;;  %v120_v35 = vrot.slane %v119_v28, 4  ;;  %v126_v36 = vsel %vm76_vm0, %v73_v5, -inf  ;;  %s3303_s25 = sld [smem:[#allocation9 + $0x7]]  ;;  %s3305_s26 = sld [smem:[#allocation9 + $0x4]] }
  0x3d   :  { %v81_v29 = vadd.f32 %v80_v20, %v79_v15  ;;  %v87_v30 = vrot.slane %v86_v21, 2  ;;  %v95_v31 = vadd.f32 %v94_v22, %v93_v17  ;;  %v101_v32 = vrot.slane %v100_v23, 2  ;;  %v133_v11 = vld [vmem:[#allocation2] sm:$0xf]  ;;  %s3307_s27 = sld [smem:[#allocation9 + $0x3a]]  ;;  %s3310_s28 = sld [smem:[#allocation9 + $0x9]] }
  0x3e   :  { %v107_v41 = vmax.f32 %v105_v26, %v106_v33  ;;  %v114_v42 = vmax.f32 %v112_v27, %v113_v34  ;;  %v121_v43 = vmax.f32 %v119_v28, %v120_v35  ;;  %v127_v44 = vrot.slane %v126_v36, 4  ;;  %s3316_s29 = sld [smem:[#allocation9 + $0x6]]  ;;  %s3318_s30 = sld [smem:[#allocation9 + $0x37]] }
  0x3f   :  { %v82_v37 = vrot.slane %v81_v29, 1  ;;  %v88_v38 = vadd.f32 %v87_v30, %v86_v21  ;;  %v96_v39 = vrot.slane %v95_v31, 1  ;;  %v102_v40 = vadd.f32 %v101_v32, %v100_v23  ;;  %s3322_s4 = sld [smem:[#allocation9 + $0xb]]  ;;  %s3328_s5 = sld [smem:[#allocation9 + $0x3c]] }
  0x40   :  { %v108_v49 = vrot.slane %v107_v41, 2  ;;  %v115_v50 = vrot.slane %v114_v42, 2  ;;  %v122_v51 = vrot.slane %v121_v43, 2  ;;  %v128_v52 = vmax.f32 %v126_v36, %v127_v44  ;;  %v170_v22 = vld [vmem:[#allocation3] sm:$0xf]  ;;  %s3330_s6 = sld [smem:[#allocation9 + $0x39]] }
  0x41   :  { %v83_v45 = vadd.f32 %v82_v37, %v81_v29  ;;  %v89_v46 = vrot.slane %v88_v38, 1  ;;  %v97_v47 = vadd.f32 %v96_v39, %v95_v31  ;;  %v103_v48 = vrot.slane %v102_v40, 1  ;;  %s3336_s7 = sld [smem:[#allocation9 + $0x8]]  ;;  %s3338_s8 = sld [smem:[#allocation9 + $0x3e]] }
  0x42   :  { %vm62_vm1 = vcmask 410624   ;;  %vm65_vm2 = vcmask 828824   ;;  %v109_v55 = vmax.f32 %v107_v41, %v108_v49  ;;  %v116_v56 = vmax.f32 %v114_v42, %v115_v50  ;;  %s3354_s9 = sld [smem:[#allocation9 + $0xd]]  ;;  %s3357_s0 = sld [smem:[#allocation9 + $0xa]] }
  0x43   :  { %v90_v53 = vadd.f32 %v89_v46, %v88_v38  ;;  %v104_v54 = vadd.f32 %v103_v48, %v102_v40  ;;  %v123_v57 = vmax.f32 %v121_v43, %v122_v51  ;;  %v129_v58 = vrot.slane %v128_v52, 2  ;;  %63 = vst.msk [vmem:[#allocation4] sm:$0x3] %vm62_vm1, %v3145_v3  ;;  %64 = vst.msk [vmem:[#allocation4 + $0x6] sm:$0x3] %vm62_vm1, %v3145_v3  ;;  %s3359_s10 = sld [smem:[#allocation9 + $0x3b]] }
  0x44   :  { %66 = vst.msk [vmem:[#allocation4 + $0x4] sm:$0x3] %vm65_vm2, %v3145_v3  ;;  %67 = vst.msk [vmem:[#allocation4 + $0xa] sm:$0x3] %vm65_vm2, %v3145_v3  ;;  %v110_v61 = vrot.slane %v109_v55, 1  ;;  %v117_v62 = vrot.slane %v116_v56, 1  ;;  %v401_v38 = vstv %s3280_s16  ;;  %v403_v39 = vstv %s3284_s18 }
  0x45   :  { %v138_v59 = vcombine.low %v83_v45, %v90_v53  ;;  %v146_v60 = vcombine.low %v97_v47, %v104_v54  ;;  %v124_v63 = vrot.slane %v123_v57, 1  ;;  %v130_v0 = vmax.f32 %v128_v52, %v129_v58  ;;  %s3149_s11 = smov 125   ;;  %s3150_s12 = smov 127  }
  0x46   :  { %vm159_vm3 = vcmask 1041409   ;;  %v111_v4 = vmax.f32 %v109_v55, %v110_v61  ;;  %v118_v5 = vmax.f32 %v116_v56, %v117_v62  ;;  %vm161_vm4 = vcmask 1043459   ;;  %s3366_s13 = sld [smem:[#allocation9 + $0x40]]  ;;  %s3368_s14 = sld [smem:[#allocation9 + $0x3d]] }
  0x47   :  { %v145_v1 = vrot.slane %v138_v59, %v3253_v25  ;;  %v153_v2 = vrot.slane %v146_v60, %v3253_v25  ;;  %v125_v6 = vmax.f32 %v123_v57, %v124_v63  ;;  %v131_v7 = vrot.slane %v130_v0, 1  ;;  %s3385_s15 = sld [smem:[#allocation9 + $0xf]]  ;;  %s3152_s16 = smov 126  }
  0x48   :  { %vm163_vm5 = vcmask 1045509   ;;  %v175_v3 = vcombine.low %v111_v4, %v118_v5  ;;  %vm165_vm6 = vcmask 1047559   ;;  %vm212_vm7 = vcmask 1041816   ;;  %s3394_s18 = sld [smem:[#allocation9 + $0x42]] }
  0x49   :  { %v158_v8 = vrot.slane %v153_v2, 7  ;;  %v132_v9 = vmax.f32 %v130_v0, %v131_v7  ;;  %vm213_vm8 = vcmask 1043458   ;;  %vm215_vm10 = vcmask 414724  }
  0x4a   :  { %v182_v17 = vrot.slane %v175_v3, %v3253_v25  ;;  %vm214_vm9 = vmor %vm213_vm8, %vm212_vm7  ;;  %vm209_vm11 = vcmask 416768   ;;  %v295_v41 = vstv %s3282_s17  ;;  %v297_v42 = vstv %s3288_s20  ;;  %s3392_s17 = sld [smem:[#allocation9 + $0xc]]  ;;  %s3153_s20 = smov 112  }
  0x4b   :  { %v160_v10 = vsel %vm159_vm3, %v158_v8, %v145_v1  ;;  %v183_v13 = vcombine.low %v125_v6, %v132_v9  ;;  %vm3273_vm12 = vmor %vm215_vm10, %vm214_vm9  ;;  %v509_v43 = vstv %s3290_s21  ;;  %v507_v45 = vstv %s3286_s19  ;;  %s3411_s19 = sld [smem:[#allocation9 + $0x3f]]  ;;  %s3154_s21 = smov 124  }
  0x4c   :  { %v162_v12 = vsel %vm161_vm4, %v158_v8, %v160_v10  ;;  %v350_v47 = vstv %s3294_s23  ;;  %v348_v52 = vstv %s3292_s22  ;;  %v615_v53 = vstv %s3297_s24  ;;  %s3419_s22 = sld [smem:[#allocation9 + $0x11]]  ;;  %s3421_s23 = sld [smem:[#allocation9 + $0xe]] }
  0x4d   :  { %v164_v15 = vsel %vm163_vm5, %v158_v8, %v162_v12  ;;  %v190_v18 = vrot.slane %v183_v13, %v3253_v25  ;;  %v456_v54 = vstv %s3299_s1  ;;  %v613_v63 = vstv %s3303_s25  ;;  %s3437_s24 = sld [smem:[#allocation9 + $0x13]]  ;;  %s3439_s1 = sld [smem:[#allocation9 + $0x44]] }
  0x4e   :  { %v166_v16 = vsel %vm165_vm6, %v158_v8, %v164_v15  ;;  %v454_v8 = vstv %s3305_s26  ;;  %v721_v3 = vstv %s3307_s27  ;;  %s3441_s25 = sld [smem:[#allocation9 + $0x41]]  ;;  %s3155_s26 = smov 110   ;;  %vm334_vm13 = vcmask 1039360  }
  0x4f   :  { %v168_v19 = vadd.f32 %v166_v16, %v133_v11  ;;  %v193_v20 = vrot.slane %v190_v18, 7  ;;  %v562_v18 = vstv %s3318_s30  ;;  %s3156_s27 = smov 122   ;;  %s3467_s30 = sld [smem:[#allocation9 + $0x15]]  ;;  %vm387_vm14 = vcmask 1031168  }
  0x50   :  { %vm440_vm15 = vcmask 1022976   ;;  %vm493_vm0 = vcmask 1014784   ;;  %vm546_vm1 = vcmask 1006592   ;;  %vm599_vm2 = vcmask 998400  }
  0x51   :  { %169 = vst [vmem:[#allocation2] sm:$0xf] %v168_v19  ;;  %v194_v21 = vsel %vm159_vm3, %v193_v20, %v182_v17  ;;  %vm652_vm3 = vcmask 916480   ;;  %vm917_vm7 = vcmask 875520   ;;  %vm864_vm8 = vcmask 883712  }
  0x52   :  { %v195_v23 = vsel %vm161_vm4, %v193_v20, %v194_v21  ;;  %v719_v21 = vstv %s3310_s28  ;;  %s3448_s28 = sld [smem:[#allocation9 + $0x10]]  ;;  %vm705_vm4 = vcmask 908288   ;;  %vm1023_vm9 = vcmask 785408  }
  0x53   :  { %v196_v24 = vsel %vm163_vm5, %v193_v20, %v195_v23  ;;  %vm758_vm5 = vcmask 900096   ;;  %vm970_vm10 = vcmask 867328  }
  0x54   :  { %v197_v26 = vsel %vm165_vm6, %v193_v20, %v196_v24  ;;  %vm811_vm6 = vcmask 891904  }
  0x55   :  { %v199_v27 = vmax.f32 %v170_v22, %v197_v26  ;;  %v560_v26 = vstv %s3316_s29  ;;  %s3450_s29 = sld [smem:[#allocation9 + $0x46]] }
  0x57   :  { %200 = vst [vmem:[#allocation3] sm:$0xf] %v199_v27 }
  0x58   :  { %v204_v28 = vld [vmem:[#allocation2] sm:$0xf] }
  0x59   :  { %206 = vrot.lane.b32.xlu0 %v204_v28, %s3148_s2 }
  0x5e   :  { %v218_v29 = vld [vmem:[#allocation3] sm:$0xf] }
  0x5f   :  { %220 = vrot.lane.b32.xlu0 %v218_v29, %s3148_s2  ;;  %s3151_s2 = smov 123  }
  0xcb   :  { %v207_v30 = vpop.permute.xlu0 %206 }
  0xcc   :  { %v208_v32 = vrot.slane %v207_v30, 6 }
  0xce   :  { %v210_v33 = vsel %vm209_vm11, %v208_v32, %v207_v30 }
  0xcf   :  { %217 = vst.msk [vmem:[#allocation4] sm:$0x3f] %vm3273_vm12, %v210_v33  ;;  %v827_v33 = vstv %s3328_s5  ;;  %s3157_s5 = smov 108  }
  0xd1   :  { %v221_v34 = vpop.permute.xlu0 %220 }
  0xd2   :  { %v222_v35 = vrot.slane %v221_v34, 6 }
  0xd4   :  { %v223_v36 = vsel %vm209_vm11, %v222_v35, %v221_v34  ;;  %v668_v35 = vstv %s3330_s6  ;;  %s3158_s6 = smov 111   ;;  %vm1129_vm11 = vcmask 769024  }
  0xd5   :  { %226 = vst.msk [vmem:[#allocation4 + $0x6] sm:$0x3f] %vm3273_vm12, %v223_v36  ;;  %vm1076_vm12 = vcmask 777216  }
  0xd6   :  { %v396_v37 = vld [vmem:[#allocation4] sm:$0x3f] }
  0xd7   :  { %v290_v40 = vld [vmem:[#allocation4] sm:$0x3f]  ;;  %v402_v49 = vmul.f32 %v401_v38, %v396_v37  ;;  %v825_v37 = vstv %s3322_s4  ;;  %s3469_s4 = sld [smem:[#allocation9 + $0x43]] }
  0xd8   :  { %v502_v44 = vld [vmem:[#allocation4] sm:$0x3f]  ;;  %v296_v56 = vmul.f32 %v295_v41, %v290_v40 }
  0xd9   :  { %v343_v46 = vld [vmem:[#allocation4] sm:$0x3f]  ;;  %v508_v2 = vmul.f32 %v507_v45, %v502_v44 }
  0xda   :  { %v349_v4 = vmul.f32 %v348_v52, %v343_v46  ;;  %v608_v5 = vld [vmem:[#allocation4] sm:$0x3f] }
  0xdb   :  { %v449_v7 = vld [vmem:[#allocation4] sm:$0x3f]  ;;  %v614_v16 = vmul.f32 %v613_v63, %v608_v5 }
  0xdc   :  { %v397_v48 = vld [vmem:[#allocation4 + $0x6] sm:$0x3f]  ;;  %v455_v19 = vmul.f32 %v454_v8, %v449_v7  ;;  %v714_v20 = vld [vmem:[#allocation4] sm:$0x3f] }
  0xdd   :  { %v291_v50 = vld [vmem:[#allocation4 + $0x6] sm:$0x3f]  ;;  %v404_v55 = vmul.f32 %v403_v39, %v397_v48  ;;  %v555_v24 = vld [vmem:[#allocation4] sm:$0x3f]  ;;  %v720_v31 = vmul.f32 %v719_v21, %v714_v20 }
  0xde   :  { %v503_v51 = vld [vmem:[#allocation4 + $0x6] sm:$0x3f]  ;;  %v298_v57 = vmul.f32 %v297_v42, %v291_v50  ;;  %v561_v36 = vmul.f32 %v560_v26, %v555_v24  ;;  %v820_v40 = vld [vmem:[#allocation4] sm:$0x3f]  ;;  %v666_v42 = vstv %s3336_s7  ;;  %v774_v50 = vstv %s3359_s10  ;;  %s3476_s7 = sld [smem:[#allocation9 + $0x12]]  ;;  %s3160_s10 = smov 109  }
  0xdf   :  { %v510_v58 = vmul.f32 %v509_v43, %v503_v51  ;;  %v344_v59 = vld [vmem:[#allocation4 + $0x6] sm:$0x3f]  ;;  %v3332_v0 = vadd.f32 %v404_v55, %v402_v49  ;;  %v661_v41 = vld [vmem:[#allocation4] sm:$0x3f]  ;;  %v933_v43 = vstv %s3338_s8  ;;  %v826_v51 = vmul.f32 %v825_v37, %v820_v40  ;;  %s3478_s8 = sld [smem:[#allocation9 + $0x48]] }
  0xe0   :  { %v609_v60 = vld [vmem:[#allocation4 + $0x6] sm:$0x3f]  ;;  %v351_v62 = vmul.f32 %v350_v47, %v344_v59  ;;  %v3334_v1 = vadd.f32 %v298_v57, %v296_v56  ;;  %v667_v52 = vmul.f32 %v666_v42, %v661_v41  ;;  %v926_v56 = vld [vmem:[#allocation4] sm:$0x3f]  ;;  %v1039_v59 = vstv %s3366_s13  ;;  %s3502_s13 = sld [smem:[#allocation9 + $0x17]] }
  0xe1   :  { %v450_v61 = vld [vmem:[#allocation4 + $0x6] sm:$0x3f]  ;;  %v616_v6 = vmul.f32 %v615_v53, %v609_v60  ;;  %v3344_v10 = vrot.slane %v3332_v0, %v3253_v25  ;;  %v3350_v12 = vadd.f32 %v510_v58, %v508_v2  ;;  %v931_v53 = vstv %s3354_s9  ;;  %v767_v58 = vld [vmem:[#allocation4] sm:$0x3f]  ;;  %s3495_s9 = sld [smem:[#allocation9 + $0x45]] }
  0xe2   :  { %v457_v9 = vmul.f32 %v456_v54, %v450_v61  ;;  %v3348_v11 = vrot.slane %v3334_v1, %v3253_v25  ;;  %v3352_v13 = vadd.f32 %v351_v62, %v349_v4  ;;  %v715_v15 = vld [vmem:[#allocation4 + $0x6] sm:$0x3f]  ;;  %v772_v54 = vstv %s3357_s0  ;;  %v1032_v8 = vld [vmem:[#allocation4] sm:$0x3f]  ;;  %s3159_s0 = smov 106  }
  0xe3   :  { %v556_v17 = vld [vmem:[#allocation4 + $0x6] sm:$0x3f]  ;;  %434 = vrot.lane.b32.xlu0 %v3344_v10, %s3149_s11  ;;  %v3370_v22 = vadd.f32 %v616_v6, %v614_v16  ;;  %v722_v23 = vmul.f32 %v721_v3, %v715_v15  ;;  %v3375_v27 = vrot.slane %v3350_v12, %v3253_v25  ;;  %v880_v60 = vstv %s3368_s14  ;;  %v873_v15 = vld [vmem:[#allocation4] sm:$0x3f]  ;;  %s3504_s14 = sld [smem:[#allocation9 + $0x14]] }
  0xe4   :  { %328 = vrot.lane.b32.xlu1 %v3348_v11, %s3150_s12  ;;  %v3379_v28 = vrot.slane %v3352_v13, %v3253_v25  ;;  %v3381_v29 = vadd.f32 %v457_v9, %v455_v19  ;;  %v563_v30 = vmul.f32 %v562_v18, %v556_v17  ;;  %v821_v32 = vld [vmem:[#allocation4 + $0x6] sm:$0x3f]  ;;  %v932_v6 = vmul.f32 %v931_v53, %v926_v56  ;;  %v979_v37 = vld [vmem:[#allocation4] sm:$0x3f] }
  0xe5   :  { %v662_v34 = vld [vmem:[#allocation4 + $0x6] sm:$0x3f]  ;;  %v3398_v38 = vrot.slane %v3370_v22, %v3253_v25  ;;  %v3400_v39 = vadd.f32 %v722_v23, %v720_v31  ;;  %v828_v46 = vmul.f32 %v827_v33, %v821_v32  ;;  %v773_v7 = vmul.f32 %v772_v54, %v767_v58  ;;  %v1138_v33 = vld [vmem:[#allocation4] sm:$0x3f] }
  0xe6   :  { %v3406_v44 = vrot.slane %v3381_v29, %v3253_v25  ;;  %v3408_v45 = vadd.f32 %v563_v30, %v561_v36  ;;  %v669_v47 = vmul.f32 %v668_v35, %v662_v34  ;;  %v927_v48 = vld [vmem:[#allocation4 + $0x6] sm:$0x3f]  ;;  %v1037_v9 = vstv %s3385_s15  ;;  %v1085_v58 = vld [vmem:[#allocation4] sm:$0x3f]  ;;  %s3520_s15 = sld [smem:[#allocation9 + $0x19]] }
  0xe7   :  { %540 = vrot.lane.b32.xlu0 %v3375_v27, %s3151_s2  ;;  %v768_v49 = vld [vmem:[#allocation4 + $0x6] sm:$0x3f]  ;;  %v3425_v55 = vrot.slane %v3400_v39, %v3253_v25  ;;  %v934_v57 = vmul.f32 %v933_v43, %v927_v48  ;;  %v3433_v62 = vadd.f32 %v828_v46, %v826_v51  ;;  %v878_v16 = vstv %s3392_s17  ;;  %s3523_s17 = sld [smem:[#allocation9 + $0x4a]] }
  0xe8   :  { %381 = vrot.lane.b32.xlu1 %v3379_v28, %s3152_s16  ;;  %v3431_v61 = vrot.slane %v3408_v45, %v3253_v25  ;;  %v3435_v63 = vadd.f32 %v669_v47, %v667_v52  ;;  %v775_v2 = vmul.f32 %v774_v50, %v768_v49  ;;  %v1033_v4 = vld [vmem:[#allocation4 + $0x6] sm:$0x3f]  ;;  %v1145_v18 = vstv %s3394_s18  ;;  %s3525_s18 = sld [smem:[#allocation9 + $0x47]] }
  0xe9   :  { %v874_v5 = vld [vmem:[#allocation4 + $0x6] sm:$0x3f]  ;;  %v1040_v3 = vmul.f32 %v1039_v59, %v1033_v4  ;;  %v3456_v19 = vrot.slane %v3433_v62, %v3253_v25  ;;  %v3462_v21 = vadd.f32 %v934_v57, %v932_v6  ;;  %v1038_v26 = vmul.f32 %v1037_v9, %v1032_v8  ;;  %v1244_v57 = vld [vmem:[#allocation4] sm:$0x3f] }
  0xea   :  { %v881_v17 = vmul.f32 %v880_v60, %v874_v5  ;;  %v3460_v20 = vrot.slane %v3435_v63, %v3253_v25  ;;  %v3464_v23 = vadd.f32 %v775_v2, %v773_v7  ;;  %v1139_v24 = vld [vmem:[#allocation4 + $0x6] sm:$0x3f]  ;;  %v986_v31 = vstv %s3411_s19  ;;  %s3161_s19 = smov 95  }
  0xeb   :  { %646 = vrot.lane.b32.xlu0 %v3398_v38, %s3153_s20  ;;  %v980_v30 = vld [vmem:[#allocation4 + $0x6] sm:$0x3f]  ;;  %v879_v32 = vmul.f32 %v878_v16, %v873_v15  ;;  %v1143_v34 = vstv %s3419_s22  ;;  %v3480_v35 = vadd.f32 %v1040_v3, %v1038_v26  ;;  %v1146_v36 = vmul.f32 %v1145_v18, %v1139_v24  ;;  %s3162_s22 = smov 107   ;;  %v1350_v16 = vld [vmem:[#allocation4] sm:$0x3f] }
  0xec   :  { %487 = vrot.lane.b32.xlu1 %v3406_v44, %s3154_s21  ;;  %v984_v40 = vstv %s3421_s23  ;;  %v3485_v41 = vrot.slane %v3462_v21, %v3253_v25  ;;  %v3489_v42 = vrot.slane %v3464_v23, %v3253_v25  ;;  %v987_v46 = vmul.f32 %v986_v31, %v980_v30  ;;  %v1245_v48 = vld [vmem:[#allocation4 + $0x6] sm:$0x3f]  ;;  %s3532_s23 = sld [smem:[#allocation9 + $0x16]]  ;;  %v1191_v26 = vld [vmem:[#allocation4] sm:$0x3f] }
  0xed   :  { %v3491_v43 = vadd.f32 %v881_v17, %v879_v32  ;;  %v1144_v47 = vmul.f32 %v1143_v34, %v1138_v33  ;;  %v1251_v49 = vstv %s3439_s1  ;;  %v1086_v50 = vld [vmem:[#allocation4 + $0x6] sm:$0x3f]  ;;  %v1092_v51 = vstv %s3441_s25  ;;  %s3551_s1 = sld [smem:[#allocation9 + $0x49]]  ;;  %s3163_s25 = smov 93  }
  0xee   :  { %v985_v52 = vmul.f32 %v984_v40, %v979_v37  ;;  %v1249_v53 = vstv %s3437_s24  ;;  %v3508_v54 = vrot.slane %v3480_v35, %v3253_v25  ;;  %v1090_v59 = vstv %s3448_s28  ;;  %v1351_v7 = vld [vmem:[#allocation4 + $0x6] sm:$0x3f]  ;;  %s3534_s24 = sld [smem:[#allocation9 + $0x4c]]  ;;  %s3164_s28 = smov 96  }
  0xef   :  { %752 = vrot.lane.b32.xlu0 %v3425_v55, %s3155_s26  ;;  %v3510_v56 = vadd.f32 %v1146_v36, %v1144_v47  ;;  %v1357_v60 = vstv %s3450_s29  ;;  %v3516_v2 = vrot.slane %v3491_v43, %v3253_v25  ;;  %v1252_v5 = vmul.f32 %v1251_v49, %v1245_v48  ;;  %v1192_v8 = vld [vmem:[#allocation4 + $0x6] sm:$0x3f]  ;;  %v1456_v49 = vld [vmem:[#allocation4] sm:$0x3f]  ;;  %s3558_s29 = sld [smem:[#allocation9 + $0x1b]] }
  0xf0   :  { %593 = vrot.lane.b32.xlu1 %v3431_v61, %s3156_s27  ;;  %v3518_v4 = vadd.f32 %v987_v46, %v985_v52  ;;  %v1093_v6 = vmul.f32 %v1092_v51, %v1086_v50  ;;  %v1198_v9 = vstv %s3469_s4  ;;  %v1250_v3 = vmul.f32 %v1249_v53, %v1244_v57  ;;  %v1457_v37 = vld [vmem:[#allocation4 + $0x6] sm:$0x3f]  ;;  %v1297_v53 = vld [vmem:[#allocation4] sm:$0x3f]  ;;  %s3577_s4 = sld [smem:[#allocation9 + $0x4b]] }
  0xf1   :  { %v1091_v15 = vmul.f32 %v1090_v59, %v1085_v58  ;;  %v1355_v17 = vstv %s3467_s30  ;;  %v3538_v18 = vrot.slane %v3510_v56, %v3253_v25  ;;  %v1358_v24 = vmul.f32 %v1357_v60, %v1351_v7  ;;  %v1298_v46 = vld [vmem:[#allocation4 + $0x6] sm:$0x3f]  ;;  %s3560_s30 = sld [smem:[#allocation9 + $0x18]] }
  0xf2   :  { %v1196_v30 = vstv %s3476_s7  ;;  %v1463_v31 = vstv %s3478_s8  ;;  %v3544_v32 = vrot.slane %v3518_v4, %v3253_v25  ;;  %v3546_v33 = vadd.f32 %v1252_v5, %v1250_v3  ;;  %v1563_v7 = vld [vmem:[#allocation4 + $0x6] sm:$0x3f]  ;;  %s3165_s7 = smov 91   ;;  %s3166_s8 = smov 94  }
  0xf3   :  { %858 = vrot.lane.b32.xlu0 %v3456_v19, %s3157_s5  ;;  %v3548_v34 = vadd.f32 %v1093_v6, %v1091_v15  ;;  %v1199_v36 = vmul.f32 %v1198_v9, %v1192_v8  ;;  %v1356_v40 = vmul.f32 %v1355_v17, %v1350_v16  ;;  %v1304_v47 = vstv %s3495_s9  ;;  %v1404_v9 = vld [vmem:[#allocation4 + $0x6] sm:$0x3f]  ;;  %s3584_s9 = sld [smem:[#allocation9 + $0x1a]] }
  0xf4   :  { %699 = vrot.lane.b32.xlu1 %v3460_v20, %s3158_s6  ;;  %v1197_v48 = vmul.f32 %v1196_v30, %v1191_v26  ;;  %v1461_v50 = vstv %s3502_s13  ;;  %v1464_v52 = vmul.f32 %v1463_v31, %v1457_v37  ;;  %v1302_v57 = vstv %s3504_s14  ;;  %v1562_v26 = vld [vmem:[#allocation4] sm:$0x3f]  ;;  %s3601_s13 = sld [smem:[#allocation9 + $0x4d]]  ;;  %s3167_s14 = smov 80  }
  0xf5   :  { %v3562_v51 = vadd.f32 %v1358_v24, %v1356_v40  ;;  %v3567_v58 = vrot.slane %v3546_v33, %v3253_v25  ;;  %v3571_v59 = vrot.slane %v3548_v34, %v3253_v25  ;;  %v1305_v5 = vmul.f32 %v1304_v47, %v1298_v46  ;;  %v1403_v30 = vld [vmem:[#allocation4] sm:$0x3f] }
  0xf6   :  { %v3573_v60 = vadd.f32 %v1199_v36, %v1197_v48  ;;  %v1462_v6 = vmul.f32 %v1461_v50, %v1456_v49  ;;  %v1569_v8 = vstv %s3523_s17  ;;  %v1410_v3 = vstv %s3525_s18  ;;  %v1669_v48 = vld [vmem:[#allocation4 + $0x6] sm:$0x3f]  ;;  %s3608_s17 = sld [smem:[#allocation9 + $0x1c]]  ;;  %s3169_s18 = smov 78  }
  0xf7   :  { %964 = vrot.lane.b32.xlu0 %v3485_v41, %s3159_s0  ;;  %v1303_v15 = vmul.f32 %v1302_v57, %v1297_v53  ;;  %v1567_v16 = vstv %s3520_s15  ;;  %v3588_v17 = vrot.slane %v3562_v51, %v3253_v25  ;;  %v1408_v31 = vstv %s3532_s23  ;;  %v1510_v49 = vld [vmem:[#allocation4 + $0x6] sm:$0x3f]  ;;  %s3168_s15 = smov 92   ;;  %v1668_v57 = vld [vmem:[#allocation4] sm:$0x3f]  ;;  %s3170_s23 = smov 90  }
  0xf8   :  { %805 = vrot.lane.b32.xlu1 %v3489_v42, %s3160_s10  ;;  %v3590_v24 = vadd.f32 %v1464_v52, %v1462_v6  ;;  %v1675_v36 = vstv %s3534_s24  ;;  %v3596_v37 = vrot.slane %v3573_v60, %v3253_v25  ;;  %v1570_v46 = vmul.f32 %v1569_v8, %v1563_v7  ;;  %v1509_v8 = vld [vmem:[#allocation4] sm:$0x3f]  ;;  %s3171_s24 = smov 76  }
  0xf9   :  { %v3598_v40 = vadd.f32 %v1305_v5, %v1303_v15  ;;  %v1411_v47 = vmul.f32 %v1410_v3, %v1404_v9  ;;  %v1516_v50 = vstv %s3551_s1  ;;  %v1568_v52 = vmul.f32 %v1567_v16, %v1562_v26  ;;  %s3172_s1 = smov 79  }
  0xfa   :  { %v1409_v53 = vmul.f32 %v1408_v31, %v1403_v30  ;;  %v1673_v5 = vstv %s3558_s29  ;;  %v3612_v6 = vrot.slane %v3590_v24, %v3253_v25  ;;  %v1676_v7 = vmul.f32 %v1675_v36, %v1669_v48  ;;  %v1616_v31 = vld [vmem:[#allocation4 + $0x6] sm:$0x3f]  ;;  %s3173_s29 = smov 74  }
  0xfb   :  { %1070 = vrot.lane.b32.xlu0 %v3508_v54, %s3161_s19  ;;  %v1514_v9 = vstv %s3560_s30  ;;  %v3617_v3 = vrot.slane %v3598_v40, %v3253_v25  ;;  %v3619_v15 = vadd.f32 %v1570_v46, %v1568_v52  ;;  %v1517_v26 = vmul.f32 %v1516_v50, %v1510_v49  ;;  %v1615_v46 = vld [vmem:[#allocation4] sm:$0x3f]  ;;  %s3174_s30 = smov 77  }
  0xfc   :  { %911 = vrot.lane.b32.xlu1 %v3516_v2, %s3162_s22  ;;  %v3621_v16 = vadd.f32 %v1411_v47, %v1409_v53  ;;  %v1674_v30 = vmul.f32 %v1673_v5, %v1668_v57  ;;  %v1622_v14 = vstv %s3577_s4  ;;  %v1515_v36 = vmul.f32 %v1514_v9, %v1509_v8  ;;  %v1722_v57 = vld [vmem:[#allocation4 + $0x6] sm:$0x3f]  ;;  %v1721_v9 = vld [vmem:[#allocation4] sm:$0x3f]  ;;  %s3175_s4 = smov 75  }
  0xfd   :  { %v1620_v47 = vstv %s3584_s9  ;;  %v3633_v49 = vrot.slane %v3619_v15, %v3253_v25  ;;  %v1623_v53 = vmul.f32 %v1622_v14, %v1616_v31  ;;  %v1728_v5 = vstv %s3601_s13  ;;  %s3176_s9 = smov 64   ;;  %s3974_s13 = sld [smem:[#allocation9 + $0x25]] }
  0xfe   :  { %v3628_v48 = vadd.f32 %v1676_v7, %v1674_v30  ;;  %v3637_v50 = vrot.slane %v3621_v16, %v3253_v25  ;;  %v3639_v52 = vadd.f32 %v1517_v26, %v1515_v36  ;;  %v1621_v7 = vmul.f32 %v1620_v47, %v1615_v46 }
  0xff   :  { %1176 = vrot.lane.b32.xlu0 %v3538_v18, %s3163_s25  ;;  %4910 = vst [vmem:[#allocation18_spill] sm:$0xff] %v3633_v49  ;;  %v312_v8 = vcombine.high %v3334_v1, %v3334_v1  ;;  %v1726_v30 = vstv %s3608_s17  ;;  %v1729_v36 = vmul.f32 %v1728_v5, %v1722_v57  ;;  %v380_v57 = vcombine.high %v3379_v28, %v3379_v28  ;;  %s3993_s17 = sld [smem:[#allocation9 + $0x26]] }
 0x100   :  { %1017 = vrot.lane.b32.xlu1 %v3544_v32, %s3164_s28  ;;  %v3651_v26 = vrot.slane %v3628_v48, %v3253_v25  ;;  %v3655_v14 = vrot.slane %v3639_v52, %v3253_v25  ;;  %v3657_v31 = vadd.f32 %v1623_v53, %v1621_v7  ;;  %v1727_v1 = vmul.f32 %v1726_v30, %v1721_v9 }
 0x101   :  { %v326_v47 = vrot.slane %v312_v8, %v3253_v25  ;;  %v418_v5 = vcombine.high %v3332_v0, %v3332_v0  ;;  %v327_v7 = vcombine.high %v3348_v11, %v3348_v11  ;;  %v365_v9 = vcombine.high %v3352_v13, %v3352_v13 }
 0x102   :  { %v3665_v46 = vrot.slane %v3657_v31, %v3253_v25  ;;  %v486_v28 = vcombine.high %v3406_v44, %v3406_v44  ;;  %v524_v30 = vcombine.high %v3350_v12, %v3350_v12  ;;  %v433_v11 = vcombine.high %v3344_v10, %v3344_v10 }
 0x103   :  { %1282 = vrot.lane.b32.xlu0 %v3567_v58, %s3165_s7  ;;  %v432_v8 = vrot.slane %v418_v5, %v3253_v25  ;;  %v379_v0 = vrot.slane %v365_v9, %v3253_v25  ;;  %v592_v12 = vcombine.high %v3431_v61, %v3431_v61  ;;  %v539_v10 = vcombine.high %v3375_v27, %v3375_v27 }
 0x104   :  { %1123 = vrot.lane.b32.xlu1 %v3571_v59, %s3166_s8  ;;  %v538_v13 = vrot.slane %v524_v30, %v3253_v25  ;;  %v645_v27 = vcombine.high %v3398_v38, %v3398_v38  ;;  %v683_v5 = vcombine.high %v3435_v63, %v3435_v63  ;;  %v751_v38 = vcombine.high %v3425_v55, %v3425_v55 }
 0x105   :  { %v948_v9 = vcombine.high %v3462_v21, %v3462_v21  ;;  %v857_v55 = vcombine.high %v3456_v19, %v3456_v19  ;;  %v1016_v21 = vcombine.high %v3544_v32, %v3544_v32  ;;  %v963_v19 = vcombine.high %v3485_v41, %v3485_v41 }
 0x106   :  { %v1001_v30 = vcombine.high %v3518_v4, %v3518_v4  ;;  %v1069_v4 = vcombine.high %v3508_v54, %v3508_v54  ;;  %v1266_v54 = vcombine.high %v3546_v33, %v3546_v33 }
 0x107   :  { %1388 = vrot.lane.b32.xlu0 %v3588_v17, %s3167_s14 }
 0x108   :  { %1229 = vrot.lane.b32.xlu1 %v3596_v37, %s3168_s15  ;;  %v1015_v32 = vrot.slane %v1001_v30, %v3253_v25 }
 0x10b   :  { %1494 = vrot.lane.b32.xlu0 %v3612_v6, %s3169_s18 }
 0x10c   :  { %1335 = vrot.lane.b32.xlu1 %v3617_v3, %s3170_s23 }
 0x10f   :  { %1600 = vrot.lane.b32.xlu0 %v3633_v49, %s3171_s24  ;;  %v3668_v49 = vadd.f32 %v1729_v36, %v1727_v1  ;;  %v471_v36 = vcombine.high %v3381_v29, %v3381_v29  ;;  %v630_v1 = vcombine.high %v3370_v22, %v3370_v22  ;;  %v698_v22 = vcombine.high %v3460_v20, %v3460_v20 }
 0x110   :  { %1441 = vrot.lane.b32.xlu1 %v3637_v50, %s3172_s1  ;;  %v697_v20 = vrot.slane %v683_v5, %v3253_v25 }
 0x111   :  { %v3675_v53 = vrot.slane %v3668_v49, %v3253_v25  ;;  %v485_v44 = vrot.slane %v471_v36, %v3253_v25  ;;  %v644_v29 = vrot.slane %v630_v1, %v3253_v25  ;;  %v1228_v1 = vcombine.high %v3596_v37, %v3596_v37 }
 0x113   :  { %1706 = vrot.lane.b32.xlu0 %v3651_v26, %s3173_s29 }
 0x114   :  { %1547 = vrot.lane.b32.xlu1 %v3655_v14, %s3174_s30 }
 0x117   :  { %332 = vrot.lane.b32.xlu0 %v326_v47, %s3150_s12  ;;  %v577_v47 = vcombine.high %v3408_v45, %v3408_v45 }
 0x118   :  { %1653 = vrot.lane.b32.xlu1 %v3665_v46, %s3175_s4 }
 0x119   :  { %v591_v61 = vrot.slane %v577_v47, %v3253_v25  ;;  %v1280_v47 = vrot.slane %v1266_v54, %v3253_v25  ;;  %v1827_v54 = vld [vmem:[#allocation4] sm:$0x3f] }
 0x11b   :  { %383 = vrot.lane.b32.xlu0 %v380_v57, %s3152_s16  ;;  %v736_v57 = vcombine.high %v3400_v39, %v3400_v39  ;;  %v804_v39 = vcombine.high %v3489_v42, %v3489_v42 }
 0x11c   :  { %1759 = vrot.lane.b32.xlu1 %v3675_v53, %s3176_s9 }
 0x11d   :  { %v750_v45 = vrot.slane %v736_v57, %v3253_v25  ;;  %v1334_v57 = vcombine.high %v3617_v3, %v3617_v3 }
 0x11f   :  { %438 = vrot.lane.b32.xlu0 %v432_v8, %s3149_s11  ;;  %v789_v8 = vcombine.high %v3464_v23, %v3464_v23  ;;  %v962_v23 = vrot.slane %v948_v9, %v3253_v25  ;;  %v1546_v9 = vcombine.high %v3655_v14, %v3655_v14 }
 0x120   :  { %330 = vrot.lane.b32.xlu1 %v327_v7, %s3150_s12  ;;  %v842_v7 = vcombine.high %v3433_v62, %v3433_v62  ;;  %v910_v62 = vcombine.high %v3516_v2, %v3516_v2  ;;  %s3870_s12 = sld [smem:[#allocation9 + $0x1d]] }
 0x121   :  { %v803_v42 = vrot.slane %v789_v8, %v3253_v25 }
 0x122   :  { %v856_v63 = vrot.slane %v842_v7, %v3253_v25  ;;  %v1440_v7 = vcombine.high %v3637_v50, %v3637_v50 }
 0x123   :  { %489 = vrot.lane.b32.xlu0 %v486_v28, %s3154_s21  ;;  %v1054_v28 = vcombine.high %v3480_v35, %v3480_v35  ;;  %v1122_v35 = vcombine.high %v3571_v59, %v3571_v59 }
 0x124   :  { %385 = vrot.lane.b32.xlu1 %v379_v0, %s3152_s16  ;;  %v895_v0 = vcombine.high %v3491_v43, %v3491_v43  ;;  %s3885_s16 = sld [smem:[#allocation9 + $0x1e]] }
 0x125   :  { %v1068_v43 = vrot.slane %v1054_v28, %v3253_v25  ;;  %v1775_v28 = vld [vmem:[#allocation4 + $0x6] sm:$0x3f] }
 0x126   :  { %v909_v2 = vrot.slane %v895_v0, %v3253_v25  ;;  %v1779_v30 = vstv %s3870_s12  ;;  %s3183_s12 = smov 48  }
 0x127   :  { %544 = vrot.lane.b32.xlu0 %v538_v13, %s3151_s2 }
 0x128   :  { %436 = vrot.lane.b32.xlu1 %v433_v11, %s3149_s11  ;;  %v1160_v11 = vcombine.high %v3510_v56, %v3510_v56  ;;  %s2933_s11 = sld [smem:[#allocation9 + $0x4e]] }
 0x12a   :  { %v1174_v36 = vrot.slane %v1160_v11, %v3253_v25 }
 0x12b   :  { %595 = vrot.lane.b32.xlu0 %v592_v12, %s3156_s27 }
 0x12c   :  { %491 = vrot.lane.b32.xlu1 %v485_v44, %s3154_s21  ;;  %v1107_v44 = vcombine.high %v3548_v34, %v3548_v34  ;;  %s3911_s21 = sld [smem:[#allocation9 + $0x50]] }
 0x12e   :  { %v1121_v12 = vrot.slane %v1107_v44, %v3253_v25  ;;  %v1828_v44 = vld [vmem:[#allocation4 + $0x6] sm:$0x3f] }
 0x12f   :  { %650 = vrot.lane.b32.xlu0 %v644_v29, %s3153_s20  ;;  %v1175_v29 = vcombine.high %v3538_v18, %v3538_v18  ;;  %v1372_v18 = vcombine.high %v3562_v51, %v3562_v51 }
 0x130   :  { %542 = vrot.lane.b32.xlu1 %v539_v10, %s3151_s2  ;;  %s3881_s2 = sld [smem:[#allocation9 + $0x4f]] }
 0x131   :  { %v1386_v5 = vrot.slane %v1372_v18, %v3253_v25 }
 0x133   :  { %701 = vrot.lane.b32.xlu0 %v698_v22, %s3158_s6 }
 0x134   :  { %597 = vrot.lane.b32.xlu1 %v591_v61, %s3156_s27  ;;  %v1213_v61 = vcombine.high %v3573_v60, %v3573_v60  ;;  %s3918_s27 = sld [smem:[#allocation9 + $0x1f]] }
 0x136   :  { %v1227_v22 = vrot.slane %v1213_v61, %v3253_v25 }
 0x137   :  { %756 = vrot.lane.b32.xlu0 %v750_v45, %s3155_s26  ;;  %v1281_v45 = vcombine.high %v3567_v58, %v3567_v58  ;;  %v1478_v58 = vcombine.high %v3590_v24, %v3590_v24 }
 0x138   :  { %648 = vrot.lane.b32.xlu1 %v645_v27, %s3153_s20  ;;  %s3899_s20 = sld [smem:[#allocation9 + $0x31]] }
 0x139   :  { %v1492_v8 = vrot.slane %v1478_v58, %v3253_v25 }
 0x13b   :  { %807 = vrot.lane.b32.xlu0 %v804_v39, %s3160_s10 }
 0x13c   :  { %703 = vrot.lane.b32.xlu1 %v697_v20, %s3158_s6  ;;  %v1319_v20 = vcombine.high %v3598_v40, %v3598_v40  ;;  %s3929_s6 = sld [smem:[#allocation9 + $0x51]] }
 0x13e   :  { %v1333_v39 = vrot.slane %v1319_v20, %v3253_v25  ;;  %v3943_v20 = vld [vmem:[#allocation10 + $0x7] ss:$8 sm:$0x3] }
 0x13f   :  { %862 = vrot.lane.b32.xlu0 %v856_v63, %s3157_s5  ;;  %v1387_v63 = vcombine.high %v3588_v17, %v3588_v17  ;;  %v1584_v17 = vcombine.high %v3619_v15, %v3619_v15  ;;  %v1531_v15 = vcombine.high %v3639_v52, %v3639_v52  ;;  %v1690_v52 = vcombine.high %v3628_v48, %v3628_v48 }
 0x140   :  { %754 = vrot.lane.b32.xlu1 %v751_v38, %s3155_s26  ;;  %s3915_s26 = sld [smem:[#allocation9]] }
 0x141   :  { %v1598_v0 = vrot.slane %v1584_v17, %v3253_v25  ;;  %v1704_v48 = vrot.slane %v1690_v52, %v3253_v25  ;;  %v1887_v17 = vstv %s3911_s21  ;;  %s3185_s21 = smov 46  }
 0x143   :  { %913 = vrot.lane.b32.xlu0 %v910_v62, %s3162_s22 }
 0x144   :  { %809 = vrot.lane.b32.xlu1 %v803_v42, %s3160_s10  ;;  %v1425_v42 = vcombine.high %v3621_v16, %v3621_v16  ;;  %s3933_s10 = sld [smem:[#allocation9 + $0x22]] }
 0x146   :  { %v1439_v62 = vrot.slane %v1425_v42, %v3253_v25 }
 0x147   :  { %968 = vrot.lane.b32.xlu0 %v962_v23, %s3159_s0  ;;  %v1493_v23 = vcombine.high %v3612_v6, %v3612_v6  ;;  %v1545_v6 = vrot.slane %v1531_v15, %v3253_v25 }
 0x148   :  { %860 = vrot.lane.b32.xlu1 %v857_v55, %s3157_s5  ;;  %s3927_s5 = sld [smem:[#allocation9 + $0x20]] }
 0x14b   :  { %1019 = vrot.lane.b32.xlu0 %v1016_v21, %s3164_s28  ;;  %v1652_v21 = vcombine.high %v3665_v46, %v3665_v46  ;;  %v4922_v46 = vld [vmem:[#allocation18_spill] sm:$0xff] }
 0x14c   :  { %915 = vrot.lane.b32.xlu1 %v909_v2, %s3162_s22  ;;  %v1599_v11 = vcombine.high %v4922_v46, %v4922_v46  ;;  %s3946_s22 = sld [smem:[#allocation9 + $0x52]] }
 0x14f   :  { %1074 = vrot.lane.b32.xlu0 %v1068_v43, %s3161_s19  ;;  %v1774_v43 = vld [vmem:[#allocation4] sm:$0x3f] }
 0x150   :  { %966 = vrot.lane.b32.xlu1 %v963_v19, %s3159_s0  ;;  %v1781_v19 = vstv %s2933_s11  ;;  %s3931_s0 = sld [smem:[#allocation9 + $0x21]]  ;;  %s3182_s11 = smov 58  }
 0x153   :  { %1125 = vrot.lane.b32.xlu0 %v1122_v35, %s3166_s8 }
 0x154   :  { %1021 = vrot.lane.b32.xlu1 %v1015_v32, %s3164_s28  ;;  %s3960_s28 = sld [smem:[#allocation9 + $0x53]] }
 0x155   :  { %v3782_v41 = vpop.permute.xlu0 %434 }
 0x156   :  { %v3784_v13 = vpop.permute.xlu1 %328 }
 0x157   :  { %1180 = vrot.lane.b32.xlu0 %v1174_v36, %s3163_s25  ;;  %v1782_v36 = vmul.f32 %v1781_v19, %v1775_v28  ;;  %v1880_v28 = vld [vmem:[#allocation4] sm:$0x3f]  ;;  %v1885_v19 = vstv %s3918_s27  ;;  %s4321_s27 = sld [smem:[#allocation9 + $0x5a]] }
 0x158   :  { %1072 = vrot.lane.b32.xlu1 %v1069_v4, %s3161_s19  ;;  %v1637_v4 = vcombine.high %v3657_v31, %v3657_v31  ;;  %s3939_s19 = sld [smem:[#allocation9 + $0x23]] }
 0x159   :  { %v3793_v56 = vpop.permute.xlu0 %540 }
 0x15a   :  { %v3795_v59 = vpop.permute.xlu1 %381  ;;  %v1651_v31 = vrot.slane %v1637_v4, %v3253_v25 }
 0x15b   :  { %1231 = vrot.lane.b32.xlu0 %v1228_v1, %s3168_s15  ;;  %v1780_v1 = vmul.f32 %v1779_v30, %v1774_v43 }
 0x15c   :  { %1127 = vrot.lane.b32.xlu1 %v1121_v12, %s3166_s8  ;;  %v1834_v12 = vstv %s3881_s2  ;;  %s3177_s8 = smov 63   ;;  %s4252_s2 = sld [smem:[#allocation9 + $0x59]] }
 0x15d   :  { %v3804_v34 = vpop.permute.xlu0 %646  ;;  %v1835_v18 = vmul.f32 %v1834_v12, %v1828_v44  ;;  %v1934_v44 = vld [vmem:[#allocation4 + $0x6] sm:$0x3f]  ;;  %v1940_v12 = vstv %s3929_s6  ;;  %s3186_s6 = smov 45  }
 0x15e   :  { %v3806_v10 = vpop.permute.xlu1 %487 }
 0x15f   :  { %1286 = vrot.lane.b32.xlu0 %v1280_v47, %s3165_s7 }
 0x160   :  { %1178 = vrot.lane.b32.xlu1 %v1175_v29, %s3163_s25  ;;  %v1832_v29 = vstv %s3885_s16  ;;  %s3957_s25 = sld [smem:[#allocation9 + $0x24]]  ;;  %s3184_s16 = smov 47  }
 0x161   :  { %v3815_v33 = vpop.permute.xlu0 %752 }
 0x162   :  { %v3817_v37 = vpop.permute.xlu1 %593 }
 0x163   :  { %1337 = vrot.lane.b32.xlu0 %v1334_v57, %s3170_s23  ;;  %v1783_v57 = vadd.f32 %v1782_v36, %v1780_v1 }
 0x164   :  { %1233 = vrot.lane.b32.xlu1 %v1227_v22, %s3168_s15  ;;  %v1758_v22 = vcombine.high %v3675_v53, %v3675_v53  ;;  %v1705_v53 = vcombine.high %v3651_v26, %v3651_v26  ;;  %v1881_v26 = vld [vmem:[#allocation4 + $0x6] sm:$0x3f]  ;;  %s3990_s15 = sld [smem:[#allocation9 + $0x56]] }
 0x165   :  { %v3826_v60 = vpop.permute.xlu0 %858  ;;  %v1796_v42 = vcombine.high %v1783_v57, %v1783_v57  ;;  %v1888_v4 = vmul.f32 %v1887_v17, %v1881_v26 }
 0x166   :  { %4911 = vst [vmem:[#allocation19_spill] sm:$0xff] %v3826_v60  ;;  %v3828_v27 = vpop.permute.xlu1 %699  ;;  %v4937_v60 = vstv %s3993_s17  ;;  %s3190_s17 = smov 32  }
 0x167   :  { %1392 = vrot.lane.b32.xlu0 %v1386_v5, %s3167_s14  ;;  %v1833_v5 = vmul.f32 %v1832_v29, %v1827_v54  ;;  %v1886_v54 = vmul.f32 %v1885_v19, %v1880_v28  ;;  %v1933_v29 = vld [vmem:[#allocation4] sm:$0x3f]  ;;  %v2046_v19 = vstv %s3960_s28  ;;  %s3188_s28 = smov 43  }
 0x168   :  { %1284 = vrot.lane.b32.xlu1 %v1281_v45, %s3165_s7  ;;  %v3937_v45 = vld [vmem:[#allocation10] ss:$8 sm:$0x3]  ;;  %s3962_s7 = sld [smem:[#allocation9 + $0x54]] }
 0x169   :  { %v3837_v51 = vpop.permute.xlu0 %964  ;;  %v3971_v15 = vmul.f32 %v3943_v20, %v3937_v45 }
 0x16a   :  { %4912 = vst [vmem:[#allocation20_spill] sm:$0xff] %v3837_v51  ;;  %v3839_v3 = vpop.permute.xlu1 %805 }
 0x16b   :  { %1443 = vrot.lane.b32.xlu0 %v1440_v7, %s3172_s1 }
 0x16c   :  { %1339 = vrot.lane.b32.xlu1 %v1333_v39, %s3170_s23  ;;  %v261_v39 = vstv %s3899_s20  ;;  %s4003_s23 = sld [smem:[#allocation9 + $0x57]]  ;;  %s4285_s20 = sld [smem:[#allocation9 + $0x29]] }
 0x16d   :  { %v3848_v40 = vpop.permute.xlu0 %1070 }
 0x16e   :  { %4913 = vst [vmem:[#allocation21_spill] sm:$0xff] %v3848_v40  ;;  %v3850_v38 = vpop.permute.xlu1 %911  ;;  %v2251_v40 = vld [vmem:[#allocation4] sm:$0x3f] }
 0x16f   :  { %1498 = vrot.lane.b32.xlu0 %v1492_v8, %s3169_s18  ;;  %v1743_v8 = vcombine.high %v3668_v49, %v3668_v49 }
 0x170   :  { %1390 = vrot.lane.b32.xlu1 %v1387_v63, %s3167_s14  ;;  %v1803_v63 = vrot.slane %v1783_v57, %v3253_v25  ;;  %s3980_s14 = sld [smem:[#allocation9 + $0x55]]  ;;  %v4005_v57 = vld [vmem:[#allocation10 + $0x11] ss:$8 sm:$0x3] }
 0x171   :  { %v3859_v24 = vpop.permute.xlu0 %1176  ;;  %v1757_v46 = vrot.slane %v1743_v8, %v3253_v25  ;;  %v2097_v8 = vstv %s3939_s19  ;;  %s4370_s19 = sld [smem:[#allocation9 + $0x5c]] }
 0x172   :  { %4914 = vst [vmem:[#allocation22_spill] sm:$0xff] %v3859_v24  ;;  %v3861_v50 = vpop.permute.xlu1 %1017  ;;  %v1811_v26 = vcombine.high %v1803_v63, %v1803_v63 }
 0x173   :  { %4915 = vst [vmem:[#allocation23_spill] sm:$0xff] %v3861_v50  ;;  %1549 = vrot.lane.b32.xlu0 %v1546_v9, %s3174_s30  ;;  %v255_v9 = vld [vmem:[#allocation4 + $0x6] sm:$0xf] }
 0x174   :  { %1445 = vrot.lane.b32.xlu1 %v1439_v62, %s3172_s1  ;;  %v3955_v62 = vadd.f32 %v1835_v18, %v1833_v5  ;;  %v262_v52 = vmul.f32 %v261_v39, %v255_v9  ;;  %v1987_v5 = vld [vmem:[#allocation4 + $0x6] sm:$0x3f]  ;;  %v2044_v39 = vstv %s3933_s10  ;;  %s3179_s1 = smov 61   ;;  %s3187_s10 = smov 44  }
 0x175   :  { %v3872_v16 = vpop.permute.xlu0 %1282 }
 0x176   :  { %4916 = vst [vmem:[#allocation24_spill] sm:$0xff] %v3872_v16  ;;  %v3874_v55 = vpop.permute.xlu1 %1123  ;;  %v1849_v28 = vcombine.high %v3955_v62, %v3955_v62 }
 0x177   :  { %4917 = vst [vmem:[#allocation25_spill] sm:$0xff] %v3874_v55  ;;  %1604 = vrot.lane.b32.xlu0 %v1598_v0, %s3171_s24  ;;  %v254_v0 = vld [vmem:[#allocation4] sm:$0xf] }
 0x178   :  { %1496 = vrot.lane.b32.xlu1 %v1493_v23, %s3169_s18  ;;  %v4927_v23 = vld [vmem:[#allocation17_spill] sm:$0xff]  ;;  %s3995_s18 = sld [smem:[#allocation9 + $0x27]] }
 0x179   :  { %v3887_v14 = vpop.permute.xlu0 %1388  ;;  %v3967_v49 = vsub.s32 0, %v4927_v23 }
 0x17a   :  { %4918 = vst [vmem:[#allocation26_spill] sm:$0xff] %v3887_v14  ;;  %v3889_v2 = vpop.permute.xlu1 %1229 }
 0x17b   :  { %4919 = vst [vmem:[#allocation27_spill] sm:$0xff] %v3889_v2  ;;  %1655 = vrot.lane.b32.xlu0 %v1652_v21, %s3175_s4  ;;  %v3977_v21 = vsub.s32 1, %v4927_v23  ;;  %v4014_v23 = vld [vmem:[#allocation10 + $0x10] ss:$8 sm:$0x3] }
 0x17c   :  { %1551 = vrot.lane.b32.xlu1 %v1545_v6, %s3174_s30  ;;  %v259_v6 = vstv %s3915_s26  ;;  %s3180_s30 = smov 60   ;;  %s4315_s26 = sld [smem:[#allocation9 + $0x2a]] }
 0x17d   :  { %v3901_v32 = vpop.permute.xlu0 %1494  ;;  %v260_v36 = vmul.f32 %v259_v6, %v254_v0  ;;  %v1889_v0 = vadd.f32 %v1888_v4, %v1886_v54  ;;  %v1941_v6 = vmul.f32 %v1940_v12, %v1934_v44  ;;  %v2040_v44 = vld [vmem:[#allocation4 + $0x6] sm:$0x3f]  ;;  %v4030_v54 = vmul.f32 %v4014_v23, %v3937_v45  ;;  %v2039_v12 = vld [vmem:[#allocation4] sm:$0x3f] }
 0x17e   :  { %4920 = vst [vmem:[#allocation28_spill] sm:$0xff] %v3901_v32  ;;  %v3903_v35 = vpop.permute.xlu1 %1335  ;;  %v4063_v32 = vld [vmem:[#allocation10 + $0x12] ss:$8 sm:$0x3] }
 0x17f   :  { %4921 = vst [vmem:[#allocation29_spill] sm:$0xff] %v3903_v35  ;;  %1710 = vrot.lane.b32.xlu0 %v1704_v48, %s3173_s29  ;;  %v1856_v48 = vrot.slane %v3955_v62, %v3253_v25  ;;  %v263_v18 = vadd.f32 %v262_v52, %v260_v36  ;;  %v1986_v52 = vld [vmem:[#allocation4] sm:$0x3f]  ;;  %v4023_v36 = vmul.f32 %v4005_v57, %v3937_v45  ;;  %v4934_v35 = vstv %s3990_s15  ;;  %s4441_s15 = sld [smem:[#allocation9 + $0x5f]] }
 0x180   :  { %1602 = vrot.lane.b32.xlu1 %v1599_v11, %s3171_s24  ;;  %v1810_v11 = vrot.slane %v1796_v42, %v3253_v25  ;;  %s3178_s24 = smov 62   ;;  %v2145_v62 = vld [vmem:[#allocation4] sm:$0x3f] }
 0x181   :  { %v3920_v47 = vpop.permute.xlu0 %1600  ;;  %v1864_v17 = vcombine.high %v1856_v48, %v1856_v48 }
 0x182   :  { %4923 = vst [vmem:[#allocation18_spill] sm:$0xff] %v3920_v47  ;;  %v3922_v61 = vpop.permute.xlu1 %1441 }
 0x183   :  { %4924 = vst [vmem:[#allocation30_spill] sm:$0xff] %v3922_v61  ;;  %1761 = vrot.lane.b32.xlu0 %v1758_v22, %s3176_s9  ;;  %v1991_v22 = vstv %s3931_s0  ;;  %s4353_s0 = sld [smem:[#allocation9 + $0x2b]] }
 0x184   :  { %1657 = vrot.lane.b32.xlu1 %v1651_v31, %s3175_s4  ;;  %v1938_v31 = vstv %s3927_s5  ;;  %s4109_s4 = sld [smem:[#allocation9 + $0x58]]  ;;  %s4333_s5 = sld [smem:[#allocation9 + $0x5b]] }
 0x185   :  { %v3948_v7 = vpop.permute.xlu0 %1706 }
 0x186   :  { %4925 = vst [vmem:[#allocation31_spill] sm:$0xff] %v3948_v7  ;;  %v3950_v58 = vpop.permute.xlu1 %1547  ;;  %v2093_v7 = vld [vmem:[#allocation4 + $0x6] sm:$0x3f] }
 0x187   :  { %4926 = vst [vmem:[#allocation32_spill] sm:$0xff] %v3950_v58  ;;  %1812 = vrot.lane.b32.xlu0 %v1803_v63, %s3177_s8  ;;  %v1939_v63 = vmul.f32 %v1938_v31, %v1933_v29  ;;  %v1909_v29 = vrot.slane %v1889_v0, %v3253_v25  ;;  %v1902_v31 = vcombine.high %v1889_v0, %v1889_v0  ;;  %v2092_v0 = vld [vmem:[#allocation4] sm:$0x3f]  ;;  %v4932_v58 = vstv %s3957_s25  ;;  %s4388_s25 = sld [smem:[#allocation9 + $0x5d]] }
 0x188   :  { %1708 = vrot.lane.b32.xlu1 %v1705_v53, %s3173_s29  ;;  %v1993_v53 = vstv %s3946_s22  ;;  %s4049_s29 = sld [smem:[#allocation9 + $0x28]]  ;;  %v2151_v14 = vmul.f32 %v4932_v58, %v2145_v62  ;;  %s4382_s22 = sld [smem:[#allocation9 + $0x2c]] }
 0x189   :  { %v3984_v30 = vpop.permute.xlu0 %332  ;;  %v1994_v4 = vmul.f32 %v1993_v53, %v1987_v5  ;;  %v1942_v5 = vadd.f32 %v1941_v6, %v1939_v63  ;;  %v1992_v53 = vmul.f32 %v1991_v22, %v1986_v52  ;;  %v304_v22 = vrot.slane %v4030_v54, %v3967_v49 }
 0x18a   :  { %v3982_v43 = vpop.permute.xlu1 %1653  ;;  %v2045_v52 = vmul.f32 %v2044_v39, %v2039_v12  ;;  %v4930_v6 = vrot.slane %v3971_v15, %v3967_v49  ;;  %v2098_v12 = vmul.f32 %v2097_v8, %v2092_v0  ;;  %v4083_v8 = vmul.f32 %v4063_v32, %v3937_v45 }
 0x18b   :  { %4928 = vst [vmem:[#allocation17_spill] sm:$0xff] %v3982_v43  ;;  %1816 = vrot.lane.b32.xlu0 %v1810_v11, %s3177_s8  ;;  %v282_v11 = vrot.slane %v263_v18, %v3253_v25  ;;  %v1962_v43 = vrot.slane %v1942_v5, %v3253_v25 }
 0x18c   :  { %1763 = vrot.lane.b32.xlu1 %v1757_v46, %s3176_s9  ;;  %v2099_v46 = vstv %s3962_s7  ;;  %s3181_s9 = smov 59   ;;  %s4400_s7 = sld [smem:[#allocation9 + $0x2d]] }
 0x18d   :  { %v4012_v9 = vpop.permute.xlu0 %383  ;;  %v283_v63 = vcombine.high %v282_v11, %v282_v11  ;;  %v286_v39 = vmul.f32 %v282_v11, %v4930_v6  ;;  %v2198_v6 = vld [vmem:[#allocation4] sm:$0x3f] }
 0x18e   :  { %v4010_v42 = vpop.permute.xlu1 %1759 }
 0x18f   :  { %4929 = vst [vmem:[#allocation33_spill] sm:$0xff] %v4010_v42  ;;  %1867 = vrot.lane.b32.xlu0 %v1864_v17, %s3178_s24  ;;  %v2047_v42 = vmul.f32 %v2046_v19, %v2040_v44  ;;  %v2100_v19 = vmul.f32 %v2099_v46, %v2093_v7  ;;  %v1955_v7 = vcombine.high %v1942_v5, %v1942_v5 }
 0x190   :  { %1814 = vrot.lane.b32.xlu1 %v1811_v26, %s3177_s8  ;;  %v1995_v26 = vadd.f32 %v1994_v4, %v1992_v53  ;;  %v1863_v4 = vrot.slane %v1849_v28, %v3253_v25  ;;  %v1916_v53 = vrot.slane %v1902_v31, %v3253_v25  ;;  %s3189_s8 = smov 42  }
 0x191   :  { %v4038_v17 = vpop.permute.xlu0 %438  ;;  %v2048_v46 = vadd.f32 %v2047_v42, %v2045_v52  ;;  %v1917_v42 = vcombine.high %v1909_v29, %v1909_v29  ;;  %v2101_v5 = vadd.f32 %v2100_v19, %v2098_v12  ;;  %v2199_v19 = vld [vmem:[#allocation4 + $0x6] sm:$0x3f] }
 0x192   :  { %v4036_v1 = vpop.permute.xlu1 %330  ;;  %v4075_v31 = vrot.slane %v1995_v26, %v3253_v25  ;;  %v2008_v47 = vcombine.high %v1995_v26, %v1995_v26  ;;  %v2206_v24 = vmul.f32 %v4934_v35, %v2199_v19 }
 0x193   :  { %1918 = vrot.lane.b32.xlu0 %v1909_v29, %s3179_s1  ;;  %v335_v28 = vsel %vm334_vm13, %v3784_v13, %v4036_v1  ;;  %v4931_v13 = vrot.slane %v3971_v15, %v3977_v21  ;;  %v1969_v29 = vrot.slane %v1955_v7, %v3253_v25  ;;  %v4100_v15 = vrot.slane %v2048_v46, %v3253_v25 }
 0x194   :  { %1865 = vrot.lane.b32.xlu1 %v1856_v48, %s3178_s24  ;;  %v4057_v48 = vld [vmem:[#allocation10 + $0x13] ss:$8 sm:$0x3]  ;;  %v339_v61 = vmul.f32 %v335_v28, %v304_v22  ;;  %v2022_v12 = vrot.slane %v2008_v47, %v3253_v25  ;;  %v2061_v62 = vcombine.high %v2048_v46, %v2048_v46  ;;  %v410_v28 = vrot.slane %v4083_v8, %v3967_v49 }
 0x195   :  { %v4059_v18 = vpop.permute.xlu0 %489  ;;  %v4079_v11 = vmul.f32 %v4057_v48, %v3937_v45  ;;  %v4088_v0 = vmul.f32 %v283_v63, %v4931_v13  ;;  %v4104_v63 = vld [vmem:[#allocation10 + $0x14] ss:$8 sm:$0x3]  ;;  %v4933_v13 = vstv %s3980_s14  ;;  %v388_v47 = vsel %vm387_vm14, %v3795_v59, %v4012_v9  ;;  %s4428_s14 = sld [smem:[#allocation9 + $0x5e]] }
 0x196   :  { %v4055_v44 = vpop.permute.xlu1 %385  ;;  %v2114_v16 = vcombine.high %v2101_v5, %v2101_v5  ;;  %v341_v2 = vadd.f32 %v339_v61, %v286_v39  ;;  %v2076_v59 = vcombine.high %v4100_v15, %v4100_v15  ;;  %v4145_v35 = vrot.slane %v2061_v62, %v3253_v25 }
 0x197   :  { %1922 = vrot.lane.b32.xlu0 %v1916_v53, %s3179_s1  ;;  %v2146_v53 = vld [vmem:[#allocation4 + $0x6] sm:$0x3f]  ;;  %v463_v7 = vrot.slane %v4079_v11, %v3967_v49  ;;  %v4935_v61 = vstv %s3974_s13  ;;  %s4424_s13 = sld [smem:[#allocation9 + $0x2e]] }
 0x198   :  { %1869 = vrot.lane.b32.xlu1 %v1863_v4, %s3178_s24  ;;  %v1970_v4 = vcombine.high %v1962_v43, %v1962_v43  ;;  %v2204_v39 = vmul.f32 %v4935_v61, %v2198_v6  ;;  %v4159_v62 = vrot.slane %v2114_v16, %v3253_v25  ;;  %v494_v16 = vsel %vm493_vm0, %v3806_v10, %v4059_v18  ;;  %s4478_s24 = sld [smem:[#allocation9 + $0x60]] }
 0x199   :  { %v4094_v26 = vpop.permute.xlu0 %544 }
 0x19a   :  { %v4092_v52 = vpop.permute.xlu1 %436  ;;  %v4163_v61 = vadd.f32 %v2206_v24, %v2204_v39 }
 0x19b   :  { %1973 = vrot.lane.b32.xlu0 %v1970_v4, %s3180_s30  ;;  %v2153_v4 = vmul.f32 %v4933_v13, %v2146_v53  ;;  %v441_v46 = vsel %vm440_vm15, %v3782_v41, %v4092_v52  ;;  %v414_v53 = vrot.slane %v4083_v8, %v3977_v21  ;;  %v4135_v13 = vmul.f32 %v4104_v63, %v3937_v45  ;;  %v2252_v8 = vld [vmem:[#allocation4 + $0x6] sm:$0x3f]  ;;  %v4152_v41 = vld [vmem:[#allocation10 + $0x15] ss:$8 sm:$0x3] }
 0x19c   :  { %1920 = vrot.lane.b32.xlu1 %v1917_v42, %s3179_s1  ;;  %v4117_v42 = vrot.slane %v2101_v5, %v3253_v25  ;;  %v4936_v5 = vrot.slane %v4023_v36, %v3967_v49  ;;  %v445_v55 = vmul.f32 %v441_v46, %v410_v28  ;;  %v336_v28 = vsel %vm334_vm13, %v4036_v1, %v3984_v30  ;;  %s4494_s1 = sld [smem:[#allocation9 + $0x61]] }
 0x19d   :  { %v4127_v58 = vpop.permute.xlu0 %595  ;;  %v4938_v46 = vstv %s4003_s23  ;;  %v4179_v24 = vmul.f32 %v4152_v41, %v3937_v45  ;;  %v389_v30 = vsel %vm387_vm14, %v4012_v9, %v4055_v44  ;;  %v498_v9 = vmul.f32 %v494_v16, %v463_v7  ;;  %s3191_s23 = smov 31  }
 0x19e   :  { %v492_v22 = vpop.permute.xlu1 %491  ;;  %v392_v19 = vmul.f32 %v388_v47, %v4936_v5  ;;  %v2129_v6 = vcombine.high %v4117_v42, %v4117_v42  ;;  %v2257_v47 = vmul.f32 %v4937_v60, %v2251_v40  ;;  %v2259_v5 = vmul.f32 %v4938_v46, %v2252_v8  ;;  %v4185_v40 = vld [vmem:[#allocation10 + $0x1] ss:$8 sm:$0x3] }
 0x19f   :  { %2024 = vrot.lane.b32.xlu0 %v4075_v31, %s3181_s9  ;;  %v4193_v10 = vmul.f32 %v3943_v20, %v4185_v40  ;;  %v4204_v8 = vrot.slane %v4163_v61, %v3253_v25  ;;  %v442_v44 = vsel %vm440_vm15, %v4092_v52, %v4038_v17  ;;  %v569_v46 = vrot.slane %v4179_v24, %v3967_v49 }
 0x1a0   :  { %1971 = vrot.lane.b32.xlu1 %v1962_v43, %s3180_s30  ;;  %v4154_v43 = vadd.f32 %v2153_v4, %v2151_v14  ;;  %v394_v14 = vadd.f32 %v392_v19, %v341_v2  ;;  %v516_v4 = vrot.slane %v4135_v13, %v3967_v49  ;;  %v2311_v2 = vstv %s4109_s4  ;;  %s3193_s4 = smov 29  }
 0x1a1   :  { %v4156_v50 = vpop.permute.xlu0 %650  ;;  %v2220_v19 = vcombine.high %v4163_v61, %v4163_v61  ;;  %v4223_v17 = vadd.f32 %v2259_v5, %v2257_v47  ;;  %v495_v7 = vsel %vm493_vm0, %v4059_v18, %v492_v22  ;;  %v520_v47 = vrot.slane %v4135_v13, %v3977_v21 }
 0x1a2   :  { %v543_v51 = vpop.permute.xlu1 %542  ;;  %v447_v1 = vadd.f32 %v445_v55, %v394_v14  ;;  %v2167_v55 = vcombine.high %v4154_v43, %v4154_v43  ;;  %v573_v13 = vrot.slane %v4179_v24, %v3977_v21  ;;  %v626_v24 = vrot.slane %v4193_v10, %v3977_v21 }
 0x1a3   :  { %v547_v60 = vsel %vm546_vm1, %v3793_v56, %v543_v51  ;;  %2028 = vrot.lane.b32.xlu0 %v2022_v12, %s3181_s9  ;;  %v4939_v56 = vrot.slane %v4030_v54, %v3977_v21  ;;  %v4200_v12 = vrot.slane %v4154_v43, %v3253_v25  ;;  %v548_v18 = vsel %vm546_vm1, %v543_v51, %v4094_v26  ;;  %v2305_v43 = vld [vmem:[#allocation4 + $0x6] sm:$0x3f] }
 0x1a4   :  { %1975 = vrot.lane.b32.xlu1 %v1969_v29, %s3180_s30  ;;  %v551_v54 = vmul.f32 %v547_v60, %v516_v4  ;;  %v500_v52 = vadd.f32 %v498_v9, %v447_v1  ;;  %v622_v4 = vrot.slane %v4193_v10, %v3967_v49  ;;  %v4942_v1 = vrot.slane %v4079_v11, %v3977_v21  ;;  %s4506_s30 = sld [smem:[#allocation9 + $0x30]] }
 0x1a5   :  { %v340_v45 = vmul.f32 %v336_v28, %v4939_v56  ;;  %v702_v39 = vpop.permute.xlu0 %701  ;;  %v4940_v28 = vrot.slane %v4023_v36, %v3977_v21  ;;  %v4941_v56 = vcombine.high %v4075_v31, %v4075_v31  ;;  %v665_v36 = vmul.f32 %v4014_v23, %v4185_v40 }
 0x1a6   :  { %v598_v29 = vpop.permute.xlu1 %597  ;;  %v446_v31 = vmul.f32 %v442_v44, %v414_v53  ;;  %v553_v22 = vadd.f32 %v551_v54, %v500_v52  ;;  %v552_v9 = vmul.f32 %v548_v18, %v520_v47  ;;  %v706_v52 = vsel %vm705_vm4, %v3828_v27, %v702_v39 }
 0x1a7   :  { %v393_v14 = vmul.f32 %v389_v30, %v4940_v28  ;;  %2079 = vrot.lane.b32.xlu0 %v2076_v59, %s3182_s11  ;;  %v342_v16 = vadd.f32 %v340_v45, %v4088_v0  ;;  %v600_v59 = vsel %vm599_vm2, %v3817_v37, %v4127_v58  ;;  %v718_v0 = vmul.f32 %v4005_v57, %v4185_v40 }
 0x1a8   :  { %2026 = vrot.lane.b32.xlu1 %v4941_v56, %s3181_s9  ;;  %v499_v37 = vmul.f32 %v495_v7, %v4942_v1  ;;  %v601_v51 = vsel %vm599_vm2, %v4127_v58, %v598_v29  ;;  %v675_v11 = vrot.slane %v665_v36, %v3967_v49  ;;  %v2182_v7 = vcombine.high %v4200_v12, %v4200_v12  ;;  %s3194_s9 = smov 28  }
 0x1a9   :  { %v757_v60 = vpop.permute.xlu0 %756  ;;  %v395_v53 = vadd.f32 %v393_v14, %v342_v16  ;;  %v728_v58 = vrot.slane %v718_v0, %v3967_v49  ;;  %v605_v56 = vmul.f32 %v601_v51, %v573_v13  ;;  %v732_v16 = vrot.slane %v718_v0, %v3977_v21  ;;  %v2304_v51 = vld [vmem:[#allocation4] sm:$0x3f] }
 0x1aa   :  { %v649_v5 = vpop.permute.xlu1 %648  ;;  %v877_v13 = vmul.f32 %v4104_v63, %v4185_v40  ;;  %vm1235_vm13 = vcmask 752640   ;;  %vm1182_vm14 = vcmask 760832   ;;  %vm1341_vm15 = vcmask 736256  }
 0x1ab   :  { %v653_v30 = vsel %vm652_vm3, %v3804_v34, %v649_v5  ;;  %2130 = vrot.lane.b32.xlu0 %v4117_v42, %s3183_s12  ;;  %v604_v34 = vmul.f32 %v600_v59, %v569_v46  ;;  %v448_v45 = vadd.f32 %v446_v31, %v395_v53  ;;  %v654_v14 = vsel %vm652_vm3, %v649_v5, %v4156_v50 }
 0x1ac   :  { %2077 = vrot.lane.b32.xlu1 %v4100_v15, %s3182_s11  ;;  %v657_v26 = vmul.f32 %v653_v30, %v622_v4  ;;  %v679_v15 = vrot.slane %v665_v36, %v3977_v21  ;;  %v771_v46 = vmul.f32 %v4063_v32, %v4185_v40  ;;  %v658_v4 = vmul.f32 %v654_v14, %v626_v24 }
 0x1ad   :  { %v808_v54 = vpop.permute.xlu0 %807  ;;  %v606_v28 = vadd.f32 %v604_v34, %v553_v22  ;;  %v501_v29 = vadd.f32 %v499_v37, %v448_v45  ;;  %v710_v59 = vmul.f32 %v706_v52, %v675_v11  ;;  %v2364_v30 = vstv %s4252_s2  ;;  %v4944_v52 = vld [vmem:[#allocation19_spill] sm:$0xff]  ;;  %s3197_s2 = smov [#allocation12]  }
 0x1ae   :  { %v704_v44 = vpop.permute.xlu1 %703  ;;  %v2234_v42 = vrot.slane %v2220_v19, %v3253_v25  ;;  %v812_v53 = vsel %vm811_vm6, %v3839_v3, %v808_v54  ;;  %v4943_v24 = vstv %s3995_s18  ;;  %vm1288_vm0 = vcmask 744448   ;;  %s4459_s18 = sld [smem:[#allocation9 + $0x2f]] }
 0x1af   :  { %2134 = vrot.lane.b32.xlu0 %v4159_v62, %s3183_s12  ;;  %v659_v10 = vadd.f32 %v657_v26, %v606_v28  ;;  %v707_v50 = vsel %vm705_vm4, %v702_v39, %v704_v44  ;;  %v554_v36 = vadd.f32 %v552_v9, %v501_v29  ;;  %v824_v39 = vmul.f32 %v4057_v48, %v4185_v40  ;;  %v2358_v29 = vld [vmem:[#allocation4 + $0x6] sm:$0x3f] }
 0x1b0   :  { %2081 = vrot.lane.b32.xlu1 %v4145_v35, %s3182_s11  ;;  %v785_v35 = vrot.slane %v771_v46, %v3977_v21  ;;  %v711_v18 = vmul.f32 %v707_v50, %v679_v15  ;;  %v4309_v9 = vrot.slane %v4223_v17, %v3253_v25  ;;  %v2310_v15 = vmul.f32 %v4943_v24, %v2304_v51  ;;  %s3195_s11 = smov 27  }
 0x1b1   :  { %v863_v31 = vpop.permute.xlu0 %862  ;;  %v607_v5 = vadd.f32 %v605_v56, %v554_v36  ;;  %v712_v0 = vadd.f32 %v710_v59, %v659_v10  ;;  %v834_v61 = vrot.slane %v824_v39, %v3967_v49  ;;  %v838_v3 = vrot.slane %v824_v39, %v3977_v21 }
 0x1b2   :  { %v755_v27 = vpop.permute.xlu1 %754  ;;  %v2312_v44 = vmul.f32 %v2311_v2, %v2305_v43  ;;  %v2365_v59 = vmul.f32 %v2364_v30, %v2358_v29  ;;  %vm1447_vm1 = vcmask 646144   ;;  %vm1394_vm2 = vcmask 654336  }
 0x1b3   :  { %v759_v62 = vsel %vm758_vm5, %v3815_v33, %v755_v27  ;;  %v760_v47 = vsel %vm758_vm5, %v755_v27, %v757_v60  ;;  %2185 = vrot.lane.b32.xlu0 %v2182_v7, %s3184_s16  ;;  %v781_v33 = vrot.slane %v771_v46, %v3967_v49  ;;  %v2181_v60 = vrot.slane %v2167_v55, %v3253_v25  ;;  %v4328_v7 = vld [vmem:[#allocation10 + $0x2] ss:$8 sm:$0x3] }
 0x1b4   :  { %v763_v22 = vmul.f32 %v759_v62, %v728_v58  ;;  %2132 = vrot.lane.b32.xlu1 %v2129_v6, %s3183_s12  ;;  %v660_v6 = vadd.f32 %v658_v4, %v607_v5  ;;  %v764_v1 = vmul.f32 %v760_v47, %v732_v16  ;;  %v891_v46 = vrot.slane %v877_v13, %v3977_v21  ;;  %s3196_s12 = smov 26  }
 0x1b5   :  { %v914_v34 = vpop.permute.xlu0 %913  ;;  %v816_v45 = vmul.f32 %v812_v53, %v781_v33  ;;  %v930_v58 = vmul.f32 %v4152_v41, %v4185_v40  ;;  %v2357_v40 = vld [vmem:[#allocation4] sm:$0x3f]  ;;  %v2415_v27 = vstv %s4285_s20  ;;  %v2273_v53 = vcombine.high %v4223_v17, %v4223_v17  ;;  %v4947_v17 = vld [vmem:[#allocation20_spill] sm:$0xff] }
 0x1b6   :  { %v810_v37 = vpop.permute.xlu1 %809  ;;  %v765_v55 = vadd.f32 %v763_v22, %v712_v0  ;;  %v713_v19 = vadd.f32 %v711_v18, %v660_v6  ;;  %v918_v56 = vsel %vm917_vm7, %v3850_v38, %v914_v34  ;;  %v2235_v38 = vcombine.high %v4204_v8, %v4204_v8 }
 0x1b7   :  { %v813_v11 = vsel %vm811_vm6, %v808_v54, %v810_v37  ;;  %2236 = vrot.lane.b32.xlu0 %v4204_v8, %s3185_s21  ;;  %v983_v18 = vmul.f32 %v3943_v20, %v4328_v7  ;;  %v940_v33 = vrot.slane %v930_v58, %v3967_v49  ;;  %v4945_v8 = vstv %s4049_s29  ;;  %s3192_s29 = smov 30  }
 0x1b8   :  { %v817_v26 = vmul.f32 %v813_v11, %v785_v35  ;;  %2183 = vrot.lane.b32.xlu1 %v4200_v12, %s3184_s16  ;;  %v766_v54 = vadd.f32 %v764_v1, %v713_v19  ;;  %v887_v12 = vrot.slane %v877_v13, %v3967_v49  ;;  %v818_v2 = vadd.f32 %v816_v45, %v765_v55 }
 0x1b9   :  { %v969_v14 = vpop.permute.xlu0 %968  ;;  %v2313_v35 = vadd.f32 %v2312_v44, %v2310_v15  ;;  %v944_v30 = vrot.slane %v930_v58, %v3977_v21  ;;  %v2468_v13 = vstv %s4315_s26  ;;  %v993_v51 = vrot.slane %v983_v18, %v3967_v49 }
 0x1ba   :  { %v861_v28 = vpop.permute.xlu1 %860  ;;  %v819_v36 = vadd.f32 %v817_v26, %v766_v54  ;;  %v922_v62 = vmul.f32 %v918_v56, %v887_v12  ;;  %v2417_v19 = vstv %s4321_s27  ;;  %v4946_v26 = vld [vmem:[#allocation23_spill] sm:$0xff]  ;;  %v1036_v15 = vmul.f32 %v4014_v23, %v4328_v7 }
 0x1bb   :  { %v865_v10 = vsel %vm864_vm8, %v4944_v52, %v861_v28  ;;  %v866_v50 = vsel %vm864_vm8, %v861_v28, %v863_v31  ;;  %2240 = vrot.lane.b32.xlu0 %v2234_v42, %s3185_s21  ;;  %v2288_v31 = vcombine.high %v4309_v9, %v4309_v9  ;;  %v2326_v1 = vcombine.high %v2313_v35, %v2313_v35  ;;  %v2410_v28 = vld [vmem:[#allocation4] sm:$0x3f] }
 0x1bc   :  { %v869_v4 = vmul.f32 %v865_v10, %v834_v61  ;;  %v870_v16 = vmul.f32 %v866_v50, %v838_v3  ;;  %2187 = vrot.lane.b32.xlu1 %v2181_v60, %s3184_s16  ;;  %v2363_v60 = vmul.f32 %v4945_v8, %v2357_v40  ;;  %v2333_v11 = vrot.slane %v2313_v35, %v3253_v25  ;;  %v2411_v61 = vld [vmem:[#allocation4 + $0x6] sm:$0x3f]  ;;  %s2864_s16 = sshll.u32 %s3197_s2, 4  ;;  %s2865_s16 = int_to_ptr.vmem [resolvable:$true] %s2864_s16 }
 0x1bd   :  { %v1020_v22 = vpop.permute.xlu0 %1019  ;;  %v997_v12 = vrot.slane %v983_v18, %v3977_v21  ;;  %v2340_v58 = vrot.slane %v2326_v1, %v3253_v25  ;;  %v2418_v56 = vmul.f32 %v2417_v19, %v2411_v61  ;;  %v1089_v50 = vmul.f32 %v4005_v57, %v4328_v7  ;;  %s3108_s20 = scalar_lea.vmem %s2865_s16, 64  ;;  %p3113_p8 = scmp.lt.s32.totalorder %s2865_s16, %s2865_s16 }
 0x1be   :  { %v871_v47 = vadd.f32 %v869_v4, %v818_v2  ;;  %v872_v39 = vadd.f32 %v870_v16, %v819_v36  ;;  %v916_v5 = vpop.permute.xlu1 %915  ;;  %v4350_v37 = vadd.f32 %v2365_v59, %v2363_v60  ;;  %v1024_v3 = vsel %vm1023_vm9, %v4946_v26, %v1020_v22  ;;  %v2463_v4 = vld [vmem:[#allocation4] sm:$0x3f]  ;;  %v2464_v16 = vld [vmem:[#allocation4 + $0x6] sm:$0x3f]  ;;  %p3109_p7 = scmp.ne.s32.totalorder %s2865_s16, %s3108_s20  ;;  %p3114_p9 = scmp.lt.s32.totalorder %s3108_s20, %s3108_s20 }
 0x1bf   :  { %v919_v0 = vsel %vm917_vm7, %v914_v34, %v916_v5  ;;  %2291 = vrot.lane.b32.xlu0 %v2288_v31, %s3186_s6  ;;  %v1028_v2 = vmul.f32 %v1024_v3, %v993_v51  ;;  %v2416_v31 = vmul.f32 %v2415_v27, %v2410_v28  ;;  %v1050_v59 = vrot.slane %v1036_v15, %v3977_v21 }
 0x1c0   :  { %v923_v42 = vmul.f32 %v919_v0, %v891_v46  ;;  %2238 = vrot.lane.b32.xlu1 %v2235_v38, %s3185_s21  ;;  %v924_v6 = vadd.f32 %v922_v62, %v871_v47  ;;  %v2470_v46 = vstv %s4333_s5  ;;  %v2386_v29 = vrot.slane %v4350_v37, %v3253_v25  ;;  %p3115_p10 = por %p3114_p9, %p3113_p8 }
 0x1c1   :  { %v1075_v55 = vpop.permute.xlu0 %1074  ;;  %v1046_v38 = vrot.slane %v1036_v15, %v3967_v49  ;;  %v2419_v47 = vadd.f32 %v2418_v56, %v2416_v31  ;;  %v2471_v5 = vmul.f32 %v2470_v46, %v2464_v16  ;;  %v2521_v18 = vstv %s4353_s0  ;;  %v2516_v46 = vld [vmem:[#allocation4] sm:$0x3f]  ;;  %v4950_v31 = vld [vmem:[#allocation27_spill] sm:$0xff] }
 0x1c2   :  { %v925_v34 = vadd.f32 %v923_v42, %v872_v39  ;;  %v967_v43 = vpop.permute.xlu1 %966  ;;  %v2469_v39 = vmul.f32 %v2468_v13, %v2463_v4  ;;  %v1099_v27 = vrot.slane %v1089_v50, %v3967_v49  ;;  %v2341_v8 = vcombine.high %v2333_v11, %v2333_v11  ;;  %v4948_v42 = vld [vmem:[#allocation25_spill] sm:$0xff]  ;;  %p3116_p11 = pnand %p3115_p10, %p3109_p7 }
 0x1c3   :  { %v971_v45 = vsel %vm970_vm10, %v4947_v17, %v967_v43  ;;  %v972_v24 = vsel %vm970_vm10, %v967_v43, %v969_v14  ;;  %2342 = vrot.lane.b32.xlu0 %v2333_v11, %s3187_s10  ;;  %v2287_v14 = vrot.slane %v2273_v53, %v3253_v25  ;;  %v2394_v60 = vcombine.high %v2386_v29, %v2386_v29 }
 0x1c4   :  { %v975_v44 = vmul.f32 %v971_v45, %v940_v33  ;;  %v976_v54 = vmul.f32 %v972_v24, %v944_v30  ;;  %2289 = vrot.lane.b32.xlu1 %v4309_v9, %s3186_s6  ;;  %v1142_v13 = vmul.f32 %v4063_v32, %v4328_v7  ;;  %v1103_v43 = vrot.slane %v1089_v50, %v3977_v21 }
 0x1c5   :  { %v1126_v36 = vpop.permute.xlu0 %1125  ;;  %v2523_v11 = vstv %s4370_s19  ;;  %v4403_v61 = vrot.slane %v2419_v47, %v3253_v25  ;;  %v2432_v19 = vcombine.high %v2419_v47, %v2419_v47  ;;  %v4407_v26 = vadd.f32 %v2471_v5, %v2469_v39 }
 0x1c6   :  { %v977_v9 = vadd.f32 %v975_v44, %v924_v6  ;;  %v978_v52 = vadd.f32 %v976_v54, %v925_v34  ;;  %v1022_v10 = vpop.permute.xlu1 %1021  ;;  %v1130_v30 = vsel %vm1129_vm11, %v4948_v42, %v1126_v36  ;;  %v4949_v6 = vld [vmem:[#allocation21_spill] sm:$0xff]  ;;  %v1195_v15 = vmul.f32 %v4057_v48, %v4328_v7 }
 0x1c7   :  { %v1025_v40 = vsel %vm1023_vm9, %v1020_v22, %v1022_v10  ;;  %2346 = vrot.lane.b32.xlu0 %v2340_v58, %s3187_s10  ;;  %v1134_v3 = vmul.f32 %v1130_v30, %v1099_v27  ;;  %v2517_v54 = vld [vmem:[#allocation4 + $0x6] sm:$0x3f]  ;;  %v1152_v28 = vrot.slane %v1142_v13, %v3967_v49  ;;  %v1156_v58 = vrot.slane %v1142_v13, %v3977_v21  ;;  %v2569_v27 = vld [vmem:[#allocation4] sm:$0x3f] }
 0x1c8   :  { %v1029_v35 = vmul.f32 %v1025_v40, %v997_v12  ;;  %2293 = vrot.lane.b32.xlu1 %v2287_v14, %s3186_s6  ;;  %v1030_v62 = vadd.f32 %v1028_v2, %v977_v9  ;;  %v4421_v9 = vrot.slane %v4407_v26, %v3253_v25  ;;  %v2576_v10 = vstv %s4388_s25 }
 0x1c9   :  { %v1181_v33 = vpop.permute.xlu0 %1180  ;;  %v2446_v16 = vrot.slane %v2432_v19, %v3253_v25  ;;  %v2522_v40 = vmul.f32 %v2521_v18, %v2516_v46  ;;  %v1248_v39 = vmul.f32 %v4104_v63, %v4328_v7  ;;  %v1209_v18 = vrot.slane %v1195_v15, %v3977_v21  ;;  %v2623_v46 = vld [vmem:[#allocation4 + $0x6] sm:$0x3f] }
 0x1ca   :  { %v1031_v22 = vadd.f32 %v1029_v35, %v978_v52  ;;  %v1073_v0 = vpop.permute.xlu1 %1072  ;;  %v2524_v52 = vmul.f32 %v2523_v11, %v2517_v54  ;;  %v1301_v13 = vmul.f32 %v4152_v41, %v4328_v7  ;;  %v2485_v7 = vcombine.high %v4407_v26, %v4407_v26 }
 0x1cb   :  { %v1077_v53 = vsel %vm1076_vm12, %v4949_v6, %v1073_v0  ;;  %v1078_v1 = vsel %vm1076_vm12, %v1073_v0, %v1075_v55  ;;  %2397 = vrot.lane.b32.xlu0 %v2394_v60, %s3188_s28  ;;  %v2379_v55 = vcombine.high %v4350_v37, %v4350_v37  ;;  %v2574_v37 = vstv %s4382_s22 }
 0x1cc   :  { %v1081_v34 = vmul.f32 %v1077_v53, %v1046_v38  ;;  %v1082_v51 = vmul.f32 %v1078_v1, %v1050_v59  ;;  %2344 = vrot.lane.b32.xlu1 %v2341_v8, %s3187_s10  ;;  %v2570_v38 = vld [vmem:[#allocation4 + $0x6] sm:$0x3f]  ;;  %v2627_v0 = vstv %s4400_s7  ;;  %v2447_v8 = vcombine.high %v4403_v61, %v4403_v61 }
 0x1cd   :  { %v1232_v44 = vpop.permute.xlu0 %1231  ;;  %v2393_v2 = vrot.slane %v2379_v55, %v3253_v25  ;;  %v4951_v59 = vld [vmem:[#allocation22_spill] sm:$0xff]  ;;  %v2525_v60 = vadd.f32 %v2524_v52, %v2522_v40  ;;  %v2577_v42 = vmul.f32 %v2576_v10, %v2570_v38  ;;  %v2575_v11 = vmul.f32 %v2574_v37, %v2569_v27  ;;  %v2675_v27 = vld [vmem:[#allocation4] sm:$0x3f] }
 0x1ce   :  { %v1083_v17 = vadd.f32 %v1081_v34, %v1030_v62  ;;  %v1084_v45 = vadd.f32 %v1082_v51, %v1031_v22  ;;  %v1128_v24 = vpop.permute.xlu1 %1127  ;;  %v1236_v35 = vsel %vm1235_vm13, %v4950_v31, %v1232_v44  ;;  %v1262_v55 = vrot.slane %v1248_v39, %v3977_v21 }
 0x1cf   :  { %v1131_v12 = vsel %vm1129_vm11, %v1126_v36, %v1128_v24  ;;  %2448 = vrot.lane.b32.xlu0 %v4403_v61, %s3189_s8  ;;  %v2629_v37 = vstv %s4428_s14  ;;  %vm1553_vm3 = vcmask 629760   ;;  %vm1500_vm4 = vcmask 637952  }
 0x1d0   :  { %v1135_v14 = vmul.f32 %v1131_v12, %v1103_v43  ;;  %2395 = vrot.lane.b32.xlu1 %v2386_v29, %s3188_s28  ;;  %v1136_v56 = vadd.f32 %v1134_v3, %v1083_v17  ;;  %v1205_v29 = vrot.slane %v1195_v15, %v3967_v49  ;;  %v1258_v43 = vrot.slane %v1248_v39, %v3967_v49  ;;  %v2676_v39 = vld [vmem:[#allocation4 + $0x6] sm:$0x3f] }
 0x1d1   :  { %v1287_v4 = vpop.permute.xlu0 %1286  ;;  %v2538_v3 = vcombine.high %v2525_v60, %v2525_v60  ;;  %v4456_v17 = vadd.f32 %v2577_v42, %v2575_v11  ;;  %v1311_v15 = vrot.slane %v1301_v13, %v3967_v49  ;;  %v2545_v12 = vrot.slane %v2525_v60, %v3253_v25 }
 0x1d2   :  { %v1137_v50 = vadd.f32 %v1135_v14, %v1084_v45  ;;  %v1179_v36 = vpop.permute.xlu1 %1178  ;;  %v1240_v30 = vmul.f32 %v1236_v35, %v1205_v29  ;;  %v2680_v45 = vstv %s4424_s13  ;;  %v4952_v14 = vld [vmem:[#allocation29_spill] sm:$0xff]  ;;  %v1315_v29 = vrot.slane %v1301_v13, %v3977_v21 }
 0x1d3   :  { %v1183_v62 = vsel %vm1182_vm14, %v4951_v59, %v1179_v36  ;;  %v1184_v47 = vsel %vm1182_vm14, %v1179_v36, %v1181_v33  ;;  %2452 = vrot.lane.b32.xlu0 %v2446_v16, %s3189_s8  ;;  %v2500_v33 = vcombine.high %v4421_v9, %v4421_v9  ;;  %v2622_v36 = vld [vmem:[#allocation4] sm:$0x3f]  ;;  %v2682_v16 = vstv %s4441_s15 }
 0x1d4   :  { %v1187_v5 = vmul.f32 %v1183_v62, %v1152_v28  ;;  %v1188_v22 = vmul.f32 %v1184_v47, %v1156_v58  ;;  %2399 = vrot.lane.b32.xlu1 %v2393_v2, %s3188_s28  ;;  %v4463_v28 = vld [vmem:[#allocation10 + $0x3] ss:$8 sm:$0x3]  ;;  %v2552_v40 = vrot.slane %v2538_v3, %v3253_v25  ;;  %v2630_v38 = vmul.f32 %v2629_v37, %v2623_v46 }
 0x1d5   :  { %v1338_v34 = vpop.permute.xlu0 %1337  ;;  %v4953_v58 = vld [vmem:[#allocation24_spill] sm:$0xff]  ;;  %v1354_v52 = vmul.f32 %v3943_v20, %v4463_v28  ;;  %v2598_v20 = vrot.slane %v4456_v17, %v3253_v25  ;;  %v1407_v62 = vmul.f32 %v4014_v23, %v4463_v28  ;;  %v2553_v60 = vcombine.high %v2545_v12, %v2545_v12 }
 0x1d6   :  { %v1189_v6 = vadd.f32 %v1187_v5, %v1136_v56  ;;  %v1190_v53 = vadd.f32 %v1188_v22, %v1137_v50  ;;  %v1234_v1 = vpop.permute.xlu1 %1233  ;;  %v1342_v26 = vsel %vm1341_vm15, %v4952_v14, %v1338_v34  ;;  %vm1659_vm5 = vcmask 613376  }
 0x1d7   :  { %v1237_v51 = vsel %vm1235_vm13, %v1232_v44, %v1234_v1  ;;  %2503 = vrot.lane.b32.xlu0 %v2500_v33, %s3190_s17  ;;  %v1346_v31 = vmul.f32 %v1342_v26, %v1311_v15  ;;  %v1364_v22 = vrot.slane %v1354_v52, %v3967_v49  ;;  %v1368_v33 = vrot.slane %v1354_v52, %v3977_v21  ;;  %v2729_v52 = vld [vmem:[#allocation4 + $0x6] sm:$0x3f] }
 0x1d8   :  { %v1241_v61 = vmul.f32 %v1237_v51, %v1209_v18  ;;  %2450 = vrot.lane.b32.xlu1 %v2447_v8, %s3189_s8  ;;  %v1242_v19 = vadd.f32 %v1240_v30, %v1189_v6  ;;  %v2628_v18 = vmul.f32 %v2627_v0, %v2622_v36  ;;  %v2683_v30 = vmul.f32 %v2682_v16, %v2676_v39 }
 0x1d9   :  { %v1393_v54 = vpop.permute.xlu0 %1392  ;;  %v2733_v6 = vstv %s4459_s18  ;;  %v1417_v0 = vrot.slane %v1407_v62, %v3967_v49  ;;  %v2681_v51 = vmul.f32 %v2680_v45, %v2675_v27  ;;  %v1421_v15 = vrot.slane %v1407_v62, %v3977_v21  ;;  %v2782_v62 = vld [vmem:[#allocation4 + $0x6] sm:$0x3f] }
 0x1da   :  { %v1243_v24 = vadd.f32 %v1241_v61, %v1190_v53  ;;  %v1285_v44 = vpop.permute.xlu1 %1284  ;;  %v2631_v42 = vadd.f32 %v2630_v38, %v2628_v18  ;;  %v4955_v61 = vld [vmem:[#allocation26_spill] sm:$0xff]  ;;  %v1566_v27 = vmul.f32 %v4057_v48, %v4463_v28  ;;  %v1619_v48 = vmul.f32 %v4104_v63, %v4463_v28 }
 0x1db   :  { %v1289_v56 = vsel %vm1288_vm0, %v4953_v58, %v1285_v44  ;;  %v1290_v2 = vsel %vm1288_vm0, %v1285_v44, %v1287_v4  ;;  %2554 = vrot.lane.b32.xlu0 %v2545_v12, %s3191_s23  ;;  %v2499_v4 = vrot.slane %v2485_v7, %v3253_v25  ;;  %v1460_v7 = vmul.f32 %v4005_v57, %v4463_v28 }
 0x1dc   :  { %v1293_v10 = vmul.f32 %v1289_v56, %v1258_v43  ;;  %v1294_v50 = vmul.f32 %v1290_v2, %v1262_v55  ;;  %2501 = vrot.lane.b32.xlu1 %v4421_v9, %s3190_s17  ;;  %v4954_v43 = vld [vmem:[#allocation30_spill] sm:$0xff]  ;;  %v2735_v44 = vstv %s4478_s24  ;;  %v2651_v45 = vrot.slane %v2631_v42, %v3253_v25  ;;  %v2728_v2 = vld [vmem:[#allocation4] sm:$0x3f] }
 0x1dd   :  { %v1444_v47 = vpop.permute.xlu0 %1443  ;;  %v2644_v12 = vcombine.high %v2631_v42, %v2631_v42  ;;  %v4511_v46 = vadd.f32 %v2683_v30, %v2681_v51  ;;  %v1513_v58 = vmul.f32 %v4063_v32, %v4463_v28  ;;  %v2734_v16 = vmul.f32 %v2733_v6, %v2728_v2  ;;  %v4551_v2 = vld [vmem:[#allocation10 + $0x4] ss:$8 sm:$0x3] }
 0x1de   :  { %v1295_v9 = vadd.f32 %v1293_v10, %v1242_v19  ;;  %v1296_v35 = vadd.f32 %v1294_v50, %v1243_v24  ;;  %v1340_v59 = vpop.permute.xlu1 %1339  ;;  %v1448_v11 = vsel %vm1447_vm1, %v4954_v43, %v1444_v47  ;;  %v1470_v50 = vrot.slane %v1460_v7, %v3967_v49 }
 0x1df   :  { %v1343_v5 = vsel %vm1341_vm15, %v1338_v34, %v1340_v59  ;;  %2558 = vrot.lane.b32.xlu0 %v2552_v40, %s3191_s23  ;;  %v2606_v34 = vcombine.high %v2598_v20, %v2598_v20  ;;  %v1452_v57 = vmul.f32 %v1448_v11, %v1417_v0  ;;  %v2704_v32 = vrot.slane %v4511_v46, %v3253_v25 }
 0x1e0   :  { %v1347_v8 = vmul.f32 %v1343_v5, %v1315_v29  ;;  %2505 = vrot.lane.b32.xlu1 %v2499_v4, %s3190_s17  ;;  %v1348_v23 = vadd.f32 %v1346_v31, %v1295_v9  ;;  %v1474_v29 = vrot.slane %v1460_v7, %v3977_v21  ;;  %v2736_v4 = vmul.f32 %v2735_v44, %v2729_v52  ;;  %v4957_v5 = vld [vmem:[#allocation28_spill] sm:$0xff] }
 0x1e1   :  { %v1499_v13 = vpop.permute.xlu0 %1498  ;;  %v2788_v40 = vstv %s4494_s1  ;;  %v1523_v31 = vrot.slane %v1513_v58, %v3967_v49  ;;  %v2658_v59 = vrot.slane %v2644_v12, %v3253_v25  ;;  %v2786_v42 = vstv %s4506_s30 }
 0x1e2   :  { %v1349_v53 = vadd.f32 %v1347_v8, %v1296_v35  ;;  %v1391_v1 = vpop.permute.xlu1 %1390  ;;  %v2659_v30 = vcombine.high %v2651_v45, %v2651_v45  ;;  %v2712_v6 = vcombine.high %v2704_v32, %v2704_v32  ;;  %v2789_v0 = vmul.f32 %v2788_v40, %v2782_v62 }
 0x1e3   :  { %v1395_v55 = vsel %vm1394_vm2, %v4955_v61, %v1391_v1  ;;  %v1396_v19 = vsel %vm1394_vm2, %v1391_v1, %v1393_v54  ;;  %2609 = vrot.lane.b32.xlu0 %v2606_v34, %s3192_s29  ;;  %v2591_v54 = vcombine.high %v4456_v17, %v4456_v17  ;;  %v1576_v61 = vrot.slane %v1566_v27, %v3967_v49 }
 0x1e4   :  { %v1399_v3 = vmul.f32 %v1395_v55, %v1364_v22  ;;  %v1400_v24 = vmul.f32 %v1396_v19, %v1368_v33  ;;  %2556 = vrot.lane.b32.xlu1 %v2553_v60, %s3191_s23  ;;  %v2781_v60 = vld [vmem:[#allocation4] sm:$0x3f]  ;;  %v1580_v7 = vrot.slane %v1566_v27, %v3977_v21  ;;  %vm1606_vm6 = vcmask 621568  }
 0x1e5   :  { %v1550_v56 = vpop.permute.xlu0 %1549  ;;  %v2787_v55 = vmul.f32 %v2786_v42, %v2781_v60  ;;  %v2697_v63 = vcombine.high %v4511_v46, %v4511_v46  ;;  %v1672_v46 = vmul.f32 %v4152_v41, %v4463_v28  ;;  %v4562_v28 = vld [vmem:[#allocation10 + $0x7] ss:$8 sm:$0x3]  ;;  %vm1765_vm7 = vcmask 523264  }
 0x1e6   :  { %v1401_v37 = vadd.f32 %v1399_v3, %v1348_v23  ;;  %v1402_v14 = vadd.f32 %v1400_v24, %v1349_v53  ;;  %v1446_v26 = vpop.permute.xlu1 %1445  ;;  %v1527_v23 = vrot.slane %v1513_v58, %v3977_v21  ;;  %v2737_v53 = vadd.f32 %v2736_v4, %v2734_v16  ;;  %v4960_v27 = vld [vmem:[#allocation33_spill] sm:$0xff]  ;;  %v4575_v42 = vld [vmem:[#allocation10 + $0x10] ss:$8 sm:$0x3] }
 0x1e7   :  { %v1449_v10 = vsel %vm1447_vm1, %v1444_v47, %v1446_v26  ;;  %2660 = vrot.lane.b32.xlu0 %v2651_v45, %s3193_s4  ;;  %v4956_v47 = vld [vmem:[#allocation32_spill] sm:$0xff]  ;;  %v1629_v45 = vrot.slane %v1619_v48, %v3967_v49  ;;  %v4959_v26 = vld [vmem:[#allocation18_spill] sm:$0xff]  ;;  %vm1712_vm8 = vcmask 605184   ;;  %vm1818_vm9 = vcmask 515072  }
 0x1e8   :  { %v1453_v17 = vmul.f32 %v1449_v10, %v1421_v15  ;;  %2607 = vrot.lane.b32.xlu1 %v2598_v20, %s3192_s29  ;;  %v1454_v36 = vadd.f32 %v1452_v57, %v1401_v37  ;;  %v2605_v20 = vrot.slane %v2591_v54, %v3253_v25  ;;  %v1554_v39 = vsel %vm1553_vm3, %v4956_v47, %v1550_v56  ;;  %v4958_v37 = vld [vmem:[#allocation17_spill] sm:$0xff] }
 0x1e9   :  { %v1605_v35 = vpop.permute.xlu0 %1604  ;;  %v1558_v1 = vmul.f32 %v1554_v39, %v1523_v31  ;;  %v2750_v24 = vcombine.high %v2737_v53, %v2737_v53  ;;  %v4544_v15 = vadd.f32 %v2789_v0, %v2787_v55  ;;  %v2757_v57 = vrot.slane %v2737_v53, %v3253_v25 }
 0x1ea   :  { %v1455_v38 = vadd.f32 %v1453_v17, %v1402_v14  ;;  %v1497_v9 = vpop.permute.xlu1 %1496  ;;  %v2711_v17 = vrot.slane %v2697_v63, %v3253_v25  ;;  %vm1871_vm10 = vcmask 506880   ;;  %vm1924_vm11 = vcmask 498688  }
 0x1eb   :  { %v1501_v22 = vsel %vm1500_vm4, %v4957_v5, %v1497_v9  ;;  %v1502_v18 = vsel %vm1500_vm4, %v1497_v9, %v1499_v13  ;;  %2664 = vrot.lane.b32.xlu0 %v2658_v59, %s3193_s4  ;;  %v1682_v9 = vrot.slane %v1672_v46, %v3967_v49  ;;  %vm1977_vm12 = vcmask 490496  }
 0x1ec   :  { %v1505_v8 = vmul.f32 %v1501_v22, %v1470_v50  ;;  %v1506_v33 = vmul.f32 %v1502_v18, %v1474_v29  ;;  %2611 = vrot.lane.b32.xlu1 %v2605_v20, %s3192_s29  ;;  %v1633_v50 = vrot.slane %v1619_v48, %v3977_v21  ;;  %v2764_v29 = vrot.slane %v2750_v24, %v3253_v25 }
 0x1ed   :  { %v1656_v43 = vpop.permute.xlu0 %1655  ;;  %v1686_v20 = vrot.slane %v1672_v46, %v3977_v21  ;;  %v2765_v22 = vcombine.high %v2757_v57, %v2757_v57  ;;  %vm2030_vm13 = vcmask 482304   ;;  %vm2083_vm14 = vcmask 474112  }
 0x1ee   :  { %v1507_v34 = vadd.f32 %v1505_v8, %v1454_v36  ;;  %v1508_v13 = vadd.f32 %v1506_v33, %v1455_v38  ;;  %v1552_v51 = vpop.permute.xlu1 %1551  ;;  %v1660_v14 = vsel %vm1659_vm5, %v4958_v37, %v1656_v43  ;;  %v2810_v36 = vrot.slane %v4544_v15, %v3253_v25  ;;  %v4961_v33 = vld [vmem:[#allocation31_spill] sm:$0xff] }
 0x1ef   :  { %v1555_v11 = vsel %vm1553_vm3, %v1550_v56, %v1552_v51  ;;  %2715 = vrot.lane.b32.xlu0 %v2712_v6, %s3194_s9  ;;  %v1664_v16 = vmul.f32 %v1660_v14, %v1629_v45  ;;  %vm2136_vm15 = vcmask 392192   ;;  %vm2189_vm0 = vcmask 384000  }
 0x1f0   :  { %v1559_v19 = vmul.f32 %v1555_v11, %v1527_v23  ;;  %2662 = vrot.lane.b32.xlu1 %v2659_v30, %s3193_s4  ;;  %v1560_v3 = vadd.f32 %v1558_v1, %v1507_v34  ;;  %v2818_v18 = vcombine.high %v2810_v36, %v2810_v36  ;;  %v1778_v30 = vmul.f32 %v4575_v42, %v4551_v2 }
 0x1f1   :  { %v1711_v12 = vpop.permute.xlu0 %1710  ;;  %vm2242_vm1 = vcmask 375808   ;;  %vm2295_vm2 = vcmask 367616   ;;  %vm2348_vm3 = vcmask 359424   ;;  %vm2401_vm4 = vcmask 351232  }
 0x1f2   :  { %v1561_v44 = vadd.f32 %v1559_v19, %v1508_v13  ;;  %v1603_v54 = vpop.permute.xlu1 %1602  ;;  %v1792_v19 = vrot.slane %v1778_v30, %v3977_v21 }
 0x1f3   :  { %v1607_v58 = vsel %vm1606_vm6, %v4959_v26, %v1603_v54  ;;  %v1608_v56 = vsel %vm1606_vm6, %v1603_v54, %v1605_v35  ;;  %2766 = vrot.lane.b32.xlu0 %v2757_v57, %s3195_s11  ;;  %vm2507_vm6 = vcmask 261120  }
 0x1f4   :  { %v1611_v52 = vmul.f32 %v1607_v58, %v1576_v61  ;;  %v1612_v10 = vmul.f32 %v1608_v56, %v1580_v7  ;;  %2713 = vrot.lane.b32.xlu1 %v2704_v32, %s3194_s9  ;;  %v1725_v32 = vmul.f32 %v4562_v28, %v4551_v2  ;;  %v1788_v61 = vrot.slane %v1778_v30, %v3967_v49 }
 0x1f5   :  { %v1762_v38 = vpop.permute.xlu0 %1761 }
 0x1f6   :  { %v1613_v4 = vadd.f32 %v1611_v52, %v1560_v3  ;;  %v1614_v40 = vadd.f32 %v1612_v10, %v1561_v44  ;;  %v1658_v41 = vpop.permute.xlu1 %1657  ;;  %v1735_v47 = vrot.slane %v1725_v32, %v3967_v49  ;;  %v1766_v8 = vsel %vm1765_vm7, %v4960_v27, %v1762_v38  ;;  %v4586_v3 = vld [vmem:[#allocation10 + $0x11] ss:$8 sm:$0x3] }
 0x1f7   :  { %v1661_v31 = vsel %vm1659_vm5, %v1656_v43, %v1658_v41  ;;  %2770 = vrot.lane.b32.xlu0 %v2764_v29, %s3195_s11  ;;  %v1739_v0 = vrot.slane %v1725_v32, %v3977_v21  ;;  %v2803_v43 = vcombine.high %v4544_v15, %v4544_v15  ;;  %v1831_v63 = vmul.f32 %v4586_v3, %v4551_v2 }
 0x1f8   :  { %v1665_v35 = vmul.f32 %v1661_v31, %v1633_v50  ;;  %2717 = vrot.lane.b32.xlu1 %v2711_v17, %s3194_s9  ;;  %v1666_v59 = vadd.f32 %v1664_v16, %v1613_v4  ;;  %v1770_v1 = vmul.f32 %v1766_v8, %v1735_v47  ;;  %v4593_v17 = vld [vmem:[#allocation10 + $0x12] ss:$8 sm:$0x3]  ;;  %vm2454_vm5 = vcmask 343040  }
 0x1f9   :  { %v1813_v5 = vpop.permute.xlu0 %1812  ;;  %v2817_v15 = vrot.slane %v2803_v43, %v3253_v25  ;;  %v1841_v14 = vrot.slane %v1831_v63, %v3967_v49  ;;  %v1845_v50 = vrot.slane %v1831_v63, %v3977_v21  ;;  %v1884_v25 = vmul.f32 %v4593_v17, %v4551_v2 }
 0x1fa   :  { %v1667_v62 = vadd.f32 %v1665_v35, %v1614_v40  ;;  %v1709_v39 = vpop.permute.xlu1 %1708 }
 0x1fb   :  { %v1713_v23 = vsel %vm1712_vm8, %v4961_v33, %v1709_v39  ;;  %v1714_v60 = vsel %vm1712_vm8, %v1709_v39, %v1711_v12  ;;  %2821 = vrot.lane.b32.xlu0 %v2818_v18, %s3196_s12  ;;  %v1894_v41 = vrot.slane %v1884_v25, %v3967_v49  ;;  %v1898_v32 = vrot.slane %v1884_v25, %v3977_v21 }
 0x1fc   :  { %v1717_v6 = vmul.f32 %v1713_v23, %v1682_v9  ;;  %v1718_v53 = vmul.f32 %v1714_v60, %v1686_v20  ;;  %2768 = vrot.lane.b32.xlu1 %v2765_v22, %s3195_s11  ;;  %vm2613_vm8 = vcmask 244736  }
 0x1fd   :  { %v1817_v48 = vpop.permute.xlu0 %1816 }
 0x1fe   :  { %v1719_v34 = vadd.f32 %v1717_v6, %v1666_v59  ;;  %v1720_v13 = vadd.f32 %v1718_v53, %v1667_v62  ;;  %v1764_v51 = vpop.permute.xlu1 %1763 }
 0x1ff   :  { %v1767_v11 = vsel %vm1765_vm7, %v1762_v38, %v1764_v51  ;;  %v4599_v38 = vld [vmem:[#allocation10 + $0x13] ss:$8 sm:$0x3]  ;;  %vm2560_vm7 = vcmask 252928  }
 0x200   :  { %v1771_v55 = vmul.f32 %v1767_v11, %v1739_v0  ;;  %2819 = vrot.lane.b32.xlu1 %v2810_v36, %s3196_s12  ;;  %v1772_v7 = vadd.f32 %v1770_v1, %v1719_v34  ;;  %v1937_v31 = vmul.f32 %v4599_v38, %v4551_v2 }
 0x201   :  { %v1868_v45 = vpop.permute.xlu0 %1867 }
 0x202   :  { %v1773_v24 = vadd.f32 %v1771_v55, %v1720_v13  ;;  %v1815_v44 = vpop.permute.xlu1 %1814  ;;  %v1951_v60 = vrot.slane %v1937_v31, %v3977_v21 }
 0x203   :  { %v1819_v54 = vsel %vm1818_vm9, %v1813_v5, %v1815_v44  ;;  %v1820_v12 = vsel %vm1818_vm9, %v1815_v44, %v1817_v48  ;;  %v1947_v5 = vrot.slane %v1937_v31, %v3967_v49  ;;  %vm2666_vm9 = vcmask 236544  }
 0x204   :  { %v1823_v57 = vmul.f32 %v1819_v54, %v1788_v61  ;;  %v1824_v37 = vmul.f32 %v1820_v12, %v1792_v19  ;;  %2823 = vrot.lane.b32.xlu1 %v2817_v15, %s3196_s12 }
 0x205   :  { %v1919_v46 = vpop.permute.xlu0 %1918 }
 0x206   :  { %v1825_v26 = vadd.f32 %v1823_v57, %v1772_v7  ;;  %v1826_v58 = vadd.f32 %v1824_v37, %v1773_v24  ;;  %v1866_v56 = vpop.permute.xlu1 %1865 }
 0x207   :  { %v1872_v52 = vsel %vm1871_vm10, %v1866_v56, %v1868_v45 }
 0x208   :  { %v1876_v10 = vmul.f32 %v1872_v52, %v1841_v14 }
 0x209   :  { %v1923_v16 = vpop.permute.xlu0 %1922 }
 0x20a   :  { %v1878_v29 = vadd.f32 %v1876_v10, %v1825_v26  ;;  %v1870_v36 = vpop.permute.xlu1 %1869  ;;  %v237_v10 = vld [vmem:[#allocation10 + $0x5] ss:$8 sm:$0x3] }
 0x20b   :  { %v1873_v4 = vsel %vm1871_vm10, %v1868_v45, %v1870_v36  ;;  %vm2719_vm10 = vcmask 228352  }
 0x20c   :  { %v1877_v40 = vmul.f32 %v1873_v4, %v1845_v50  ;;  %v4657_v50 = vld [vmem:[#allocation10 + $0x14] ss:$8 sm:$0x3] }
 0x20d   :  { %v1974_v20 = vpop.permute.xlu0 %1973  ;;  %4962 = vst [vmem:[#allocation19_spill] sm:$0xff] %v4657_v50  ;;  %v1990_v25 = vmul.f32 %v4657_v50, %v4551_v2 }
 0x20e   :  { %v1879_v9 = vadd.f32 %v1877_v40, %v1826_v58  ;;  %v1921_v35 = vpop.permute.xlu1 %1920  ;;  %v4670_v40 = vmul.f32 %v4562_v28, %v237_v10 }
 0x20f   :  { %v1925_v59 = vsel %vm1924_vm11, %v1919_v46, %v1921_v35  ;;  %v1926_v62 = vsel %vm1924_vm11, %v1921_v35, %v1923_v16  ;;  %v4665_v16 = vld [vmem:[#allocation10 + $0x15] ss:$8 sm:$0x3]  ;;  %v2004_v31 = vrot.slane %v1990_v25, %v3977_v21  ;;  %vm2772_vm11 = vcmask 220160  }
 0x210   :  { %v1929_v47 = vmul.f32 %v1925_v59, %v1894_v41  ;;  %v1930_v39 = vmul.f32 %v1926_v62, %v1898_v32  ;;  %4963 = vst [vmem:[#allocation23_spill] sm:$0xff] %v4665_v16  ;;  %v2043_v4 = vmul.f32 %v4665_v16, %v4551_v2  ;;  %v4673_v41 = vmul.f32 %v4575_v42, %v237_v10 }
 0x211   :  { %v2025_v8 = vpop.permute.xlu0 %2024  ;;  %v2000_v32 = vrot.slane %v1990_v25, %v3967_v49  ;;  %v4687_v62 = vmul.f32 %v4593_v17, %v237_v10 }
 0x212   :  { %v1931_v22 = vadd.f32 %v1929_v47, %v1878_v29  ;;  %v1932_v18 = vadd.f32 %v1930_v39, %v1879_v9  ;;  %v1972_v27 = vpop.permute.xlu1 %1971  ;;  %v4678_v9 = vmul.f32 %v4586_v3, %v237_v10  ;;  %v2053_v2 = vrot.slane %v2043_v4, %v3967_v49 }
 0x213   :  { %v1978_v33 = vsel %vm1977_vm12, %v1972_v27, %v1974_v20  ;;  %v2057_v59 = vrot.slane %v2043_v4, %v3977_v21  ;;  %v2106_v47 = vrot.slane %v4670_v40, %v3967_v49  ;;  %v2110_v39 = vrot.slane %v4670_v40, %v3977_v21 }
 0x214   :  { %v1982_v23 = vmul.f32 %v1978_v33, %v1947_v5  ;;  %v4694_v5 = vmul.f32 %v4599_v38, %v237_v10  ;;  %v2163_v27 = vrot.slane %v4673_v41, %v3977_v21  ;;  %v2212_v33 = vrot.slane %v4678_v9, %v3967_v49 }
 0x215   :  { %v4607_v53 = vpop.permute.xlu0 %2028  ;;  %v2265_v25 = vrot.slane %v4687_v62, %v3967_v49  ;;  %v4722_v40 = vmul.f32 %v4665_v16, %v237_v10 }
 0x216   :  { %v4605_v30 = vadd.f32 %v1982_v23, %v1931_v22  ;;  %v1976_v6 = vpop.permute.xlu1 %1975  ;;  %v2318_v23 = vrot.slane %v4694_v5, %v3967_v49 }
 0x217   :  { %v1979_v0 = vsel %vm1977_vm12, %v1974_v20, %v1976_v6  ;;  %v4709_v6 = vld [vmem:[#allocation10 + $0x6] ss:$8 sm:$0x3]  ;;  %vm2825_vm12 = vcmask 211968  }
 0x218   :  { %v1983_v1 = vmul.f32 %v1979_v0, %v1951_v60  ;;  %v4707_v60 = vmul.f32 %v4657_v50, %v237_v10  ;;  %v4736_v10 = vmul.f32 %v4562_v28, %v4709_v6 }
 0x219   :  { %v4613_v51 = vpop.permute.xlu0 %2079 }
 0x21a   :  { %v4609_v34 = vadd.f32 %v1983_v1, %v1932_v18  ;;  %v4611_v13 = vpop.permute.xlu1 %2026  ;;  %v2159_v18 = vrot.slane %v4673_v41, %v3967_v49 }
 0x21b   :  { %v2031_v22 = vsel %vm2030_vm13, %v2025_v8, %v4611_v13 }
 0x21c   :  { %v2035_v41 = vmul.f32 %v2031_v22, %v2000_v32  ;;  %v2371_v22 = vrot.slane %v4707_v60, %v3967_v49 }
 0x21d   :  { %v4615_v43 = vpop.permute.xlu0 %2130 }
 0x21e   :  { %v2078_v48 = vpop.permute.xlu1 %2077  ;;  %v2037_v50 = vadd.f32 %v2035_v41, %v4605_v30  ;;  %v2481_v30 = vrot.slane %v4736_v10, %v3977_v21 }
 0x21f   :  { %v2084_v1 = vsel %vm2083_vm14, %v2078_v48, %v4613_v51  ;;  %v2032_v48 = vsel %vm2030_vm13, %v4611_v13, %v4607_v53 }
 0x220   :  { %v2088_v32 = vmul.f32 %v2084_v1, %v2053_v2  ;;  %v4756_v2 = vmul.f32 %v4575_v42, %v4709_v6  ;;  %v2036_v1 = vmul.f32 %v2032_v48, %v2004_v31 }
 0x221   :  { %v4619_v61 = vpop.permute.xlu0 %2134 }
 0x222   :  { %v4617_v11 = vpop.permute.xlu1 %2081  ;;  %v2090_v42 = vadd.f32 %v2088_v32, %v2037_v50  ;;  %v2038_v50 = vadd.f32 %v2036_v1, %v4609_v34 }
 0x223   :  { %v2085_v13 = vsel %vm2083_vm14, %v4613_v51, %v4617_v11 }
 0x224   :  { %v2089_v31 = vmul.f32 %v2085_v13, %v2057_v59 }
 0x225   :  { %v4623_v19 = vpop.permute.xlu0 %2185 }
 0x226   :  { %v4621_v55 = vpop.permute.xlu1 %2132  ;;  %v2091_v13 = vadd.f32 %v2089_v31, %v2038_v50 }
 0x227   :  { %v2138_v51 = vsel %vm2136_vm15, %v4621_v55, %v4619_v61 }
 0x228   :  { %v2142_v59 = vmul.f32 %v2138_v51, %v2110_v39 }
 0x229   :  { %v4627_v63 = vpop.permute.xlu0 %2236 }
 0x22a   :  { %v4625_v7 = vpop.permute.xlu1 %2183 }
 0x22b   :  { %v2190_v28 = vsel %vm2189_vm0, %v4625_v7, %v4623_v19  ;;  %v2477_v7 = vrot.slane %v4736_v10, %v3967_v49 }
 0x22c   :  { %v2194_v48 = vmul.f32 %v2190_v28, %v2159_v18 }
 0x22d   :  { %v4631_v44 = vpop.permute.xlu0 %2240 }
 0x22e   :  { %v4629_v24 = vpop.permute.xlu1 %2187 }
 0x22f   :  { %v2191_v61 = vsel %vm2189_vm0, %v4623_v19, %v4629_v24  ;;  %v2534_v24 = vrot.slane %v4756_v2, %v3977_v21 }
 0x230   :  { %v2195_v39 = vmul.f32 %v2191_v61, %v2163_v27  ;;  %v4966_v27 = vrot.slane %v4678_v9, %v3977_v21  ;;  %v4967_v9 = vrot.slane %v4687_v62, %v3977_v21  ;;  %v4968_v62 = vrot.slane %v4694_v5, %v3977_v21 }
 0x231   :  { %v4635_v15 = vpop.permute.xlu0 %2291  ;;  %v4969_v5 = vrot.slane %v4707_v60, %v3977_v21 }
 0x232   :  { %v4633_v45 = vpop.permute.xlu1 %2238 }
 0x233   :  { %v2243_v11 = vsel %vm2242_vm1, %v4627_v63, %v4633_v45  ;;  %v2530_v63 = vrot.slane %v4756_v2, %v3967_v49  ;;  %v2244_v32 = vsel %vm2242_vm1, %v4633_v45, %v4631_v44 }
 0x234   :  { %v2247_v41 = vmul.f32 %v2243_v11, %v2212_v33 }
 0x235   :  { %v4639_v12 = vpop.permute.xlu0 %2342 }
 0x236   :  { %v4637_v54 = vpop.permute.xlu1 %2289 }
 0x239   :  { %v4643_v37 = vpop.permute.xlu0 %2346 }
 0x23a   :  { %v4641_v57 = vpop.permute.xlu1 %2293 }
 0x23b   :  { %v2297_v44 = vsel %vm2295_vm2, %v4635_v15, %v4641_v57 }
 0x23d   :  { %v4647_v26 = vpop.permute.xlu0 %2397 }
 0x23e   :  { %v4645_v14 = vpop.permute.xlu1 %2344 }
 0x23f   :  { %v2349_v19 = vsel %vm2348_vm3, %v4639_v12, %v4645_v14  ;;  %v2144_v12 = vadd.f32 %v2142_v59, %v2091_v13 }
 0x240   :  { %v2353_v51 = vmul.f32 %v2349_v19, %v2318_v23  ;;  %v2301_v23 = vmul.f32 %v2297_v44, %v4967_v9 }
 0x241   :  { %v4651_v56 = vpop.permute.xlu0 %2448  ;;  %v2197_v11 = vadd.f32 %v2195_v39, %v2144_v12 }
 0x242   :  { %v4649_v58 = vpop.permute.xlu1 %2395 }
 0x243   :  { %v2402_v45 = vsel %vm2401_vm4, %v4649_v58, %v4647_v26 }
 0x244   :  { %v2406_v31 = vmul.f32 %v2402_v45, %v2371_v22 }
 0x245   :  { %v4655_v52 = vpop.permute.xlu0 %2452 }
 0x246   :  { %v4653_v46 = vpop.permute.xlu1 %2399 }
 0x249   :  { %v4663_v36 = vpop.permute.xlu0 %2503 }
 0x24a   :  { %v4661_v29 = vpop.permute.xlu1 %2450 }
 0x24b   :  { %v2455_v57 = vsel %vm2454_vm5, %v4651_v56, %v4661_v29 }
 0x24d   :  { %v4682_v20 = vpop.permute.xlu0 %2554 }
 0x24e   :  { %v4680_v35 = vpop.permute.xlu1 %2501 }
 0x251   :  { %v4713_v0 = vpop.permute.xlu0 %2558 }
 0x252   :  { %v4711_v8 = vpop.permute.xlu1 %2505  ;;  %4964 = vst [vmem:[#allocation20_spill] sm:$0xff] %v4713_v0  ;;  %v2137_v0 = vsel %vm2136_vm15, %v4615_v43, %v4621_v55  ;;  %v2424_v43 = vrot.slane %v4722_v40, %v3967_v49  ;;  %v2296_v55 = vsel %vm2295_vm2, %v4637_v54, %v4635_v15  ;;  %v4792_v54 = vmul.f32 %v4586_v3, %v4709_v6 }
 0x253   :  { %v2141_v16 = vmul.f32 %v2137_v0, %v2106_v47  ;;  %v4804_v3 = vmul.f32 %v4593_v17, %v4709_v6  ;;  %v2350_v15 = vsel %vm2348_vm3, %v4645_v14, %v4643_v37  ;;  %v2403_v37 = vsel %vm2401_vm4, %v4647_v26, %v4653_v46 }
 0x254   :  { %v2583_v58 = vrot.slane %v4792_v54, %v3967_v49  ;;  %v2587_v17 = vrot.slane %v4792_v54, %v3977_v21  ;;  %v2508_v14 = vsel %vm2507_vm6, %v4680_v35, %v4663_v36  ;;  %v2354_v50 = vmul.f32 %v2350_v15, %v4968_v62 }
 0x255   :  { %v4744_v53 = vpop.permute.xlu0 %2609  ;;  %v2143_v18 = vadd.f32 %v2141_v16, %v2090_v42  ;;  %v2300_v16 = vmul.f32 %v2296_v55, %v2265_v25  ;;  %v2248_v25 = vmul.f32 %v2244_v32, %v4966_v27  ;;  %v2636_v56 = vrot.slane %v4804_v3, %v3967_v49 }
 0x256   :  { %v4742_v4 = vpop.permute.xlu1 %2556  ;;  %4965 = vst [vmem:[#allocation25_spill] sm:$0xff] %v4744_v53  ;;  %v2428_v53 = vrot.slane %v4722_v40, %v3977_v21  ;;  %v2459_v59 = vmul.f32 %v2455_v57, %v2424_v43  ;;  %v2640_v46 = vrot.slane %v4804_v3, %v3977_v21  ;;  %v2679_v35 = vmul.f32 %v4599_v38, %v4709_v6 }
 0x257   :  { %v2196_v34 = vadd.f32 %v2194_v48, %v2143_v18  ;;  %v2250_v55 = vadd.f32 %v2248_v25, %v2197_v11  ;;  %v2456_v18 = vsel %vm2454_vm5, %v4661_v29, %v4655_v52  ;;  %v2561_v26 = vsel %vm2560_vm7, %v4682_v20, %v4742_v4 }
 0x258   :  { %v2407_v43 = vmul.f32 %v2403_v37, %v4969_v5  ;;  %v2512_v19 = vmul.f32 %v2508_v14, %v2477_v7  ;;  %v2509_v52 = vsel %vm2507_vm6, %v4663_v36, %v4711_v8  ;;  %v2460_v60 = vmul.f32 %v2456_v18, %v2428_v53 }
 0x259   :  { %v4771_v0 = vpop.permute.xlu0 %2660  ;;  %v2249_v1 = vadd.f32 %v2247_v41, %v2196_v34  ;;  %v2303_v41 = vadd.f32 %v2301_v23, %v2250_v55  ;;  %v4971_v34 = vld [vmem:[#allocation19_spill] sm:$0xff]  ;;  %v2565_v7 = vmul.f32 %v2561_v26, %v2530_v63  ;;  %v4972_v44 = vld [vmem:[#allocation20_spill] sm:$0xff]  ;;  %v2689_v8 = vrot.slane %v2679_v35, %v3967_v49 }
 0x25a   :  { %v2608_v47 = vpop.permute.xlu1 %2607  ;;  %v2732_v38 = vmul.f32 %v4971_v34, %v4709_v6  ;;  %v2562_v45 = vsel %vm2560_vm7, %v4742_v4, %v4972_v44  ;;  %v2513_v12 = vmul.f32 %v2509_v52, %v2481_v30 }
 0x25b   :  { %v2302_v42 = vadd.f32 %v2300_v16, %v2249_v1  ;;  %v2356_v39 = vadd.f32 %v2354_v50, %v2303_v41 }
 0x25c   :  { %v2742_v4 = vrot.slane %v2732_v38, %v3967_v49 }
 0x25d   :  { %v4794_v28 = vpop.permute.xlu0 %2664  ;;  %v2355_v22 = vadd.f32 %v2353_v51, %v2302_v42  ;;  %v4970_v29 = vld [vmem:[#allocation25_spill] sm:$0xff]  ;;  %v2566_v51 = vmul.f32 %v2562_v45, %v2534_v24 }
 0x25e   :  { %v2612_v33 = vpop.permute.xlu1 %2611  ;;  %v2614_v20 = vsel %vm2613_vm8, %v2608_v47, %v4970_v29  ;;  %v2409_v47 = vadd.f32 %v2407_v43, %v2356_v39 }
 0x25f   :  { %v2408_v32 = vadd.f32 %v2406_v31, %v2355_v22  ;;  %v2618_v40 = vmul.f32 %v2614_v20, %v2583_v58  ;;  %v2615_v63 = vsel %vm2613_vm8, %v4970_v29, %v2612_v33  ;;  %v2693_v33 = vrot.slane %v2679_v35, %v3977_v21 }
 0x260   :  { %v2462_v1 = vadd.f32 %v2460_v60, %v2409_v47  ;;  %v2746_v58 = vrot.slane %v2732_v38, %v3977_v21  ;;  %v2619_v9 = vmul.f32 %v2615_v63, %v2587_v17 }
 0x261   :  { %v2716_v61 = vpop.permute.xlu0 %2715  ;;  %v2461_v16 = vadd.f32 %v2459_v59, %v2408_v32 }
 0x262   :  { %v2663_v48 = vpop.permute.xlu1 %2662  ;;  %v2515_v11 = vadd.f32 %v2513_v12, %v2462_v1 }
 0x263   :  { %v2667_v36 = vsel %vm2666_vm9, %v4771_v0, %v2663_v48  ;;  %v2514_v3 = vadd.f32 %v2512_v19, %v2461_v16  ;;  %v4973_v0 = vld [vmem:[#allocation23_spill] sm:$0xff]  ;;  %v2668_v57 = vsel %vm2666_vm9, %v2663_v48, %v4794_v28 }
 0x264   :  { %v2785_v25 = vmul.f32 %v4973_v0, %v4709_v6  ;;  %v2671_v10 = vmul.f32 %v2667_v36, %v2636_v56  ;;  %v2568_v37 = vadd.f32 %v2566_v51, %v2515_v11  ;;  %v2672_v14 = vmul.f32 %v2668_v57, %v2640_v46 }
 0x265   :  { %v2767_v13 = vpop.permute.xlu0 %2766  ;;  %v2567_v15 = vadd.f32 %v2565_v7, %v2514_v3 }
 0x266   :  { %v2714_v54 = vpop.permute.xlu1 %2713  ;;  %v2795_v24 = vrot.slane %v2785_v25, %v3967_v49  ;;  %v2621_v55 = vadd.f32 %v2619_v9, %v2568_v37 }
 0x267   :  { %v2720_v27 = vsel %vm2719_vm10, %v2714_v54, %v2716_v61  ;;  %v2620_v42 = vadd.f32 %v2618_v40, %v2567_v15 }
 0x268   :  { %v2724_v23 = vmul.f32 %v2720_v27, %v2689_v8  ;;  %v2674_v18 = vadd.f32 %v2672_v14, %v2621_v55 }
 0x269   :  { %v2771_v30 = vpop.permute.xlu0 %2770  ;;  %v2673_v56 = vadd.f32 %v2671_v10, %v2620_v42 }
 0x26a   :  { %v2718_v53 = vpop.permute.xlu1 %2717 }
 0x26b   :  { %v2721_v31 = vsel %vm2719_vm10, %v2716_v61, %v2718_v53  ;;  %v2726_v62 = vadd.f32 %v2724_v23, %v2673_v56  ;;  %v2799_v61 = vrot.slane %v2785_v25, %v3977_v21 }
 0x26c   :  { %v2725_v50 = vmul.f32 %v2721_v31, %v2693_v33 }
 0x26d   :  { %v2822_v22 = vpop.permute.xlu0 %2821 }
 0x26e   :  { %v2769_v6 = vpop.permute.xlu1 %2768  ;;  %v2727_v41 = vadd.f32 %v2725_v50, %v2674_v18 }
 0x26f   :  { %v2773_v2 = vsel %vm2772_vm11, %v2767_v13, %v2769_v6  ;;  %v2774_v48 = vsel %vm2772_vm11, %v2769_v6, %v2771_v30 }
 0x270   :  { %v2777_v28 = vmul.f32 %v2773_v2, %v2742_v4  ;;  %v2778_v26 = vmul.f32 %v2774_v48, %v2746_v58 }
 0x272   :  { %v2820_v17 = vpop.permute.xlu1 %2819  ;;  %v2779_v35 = vadd.f32 %v2777_v28, %v2726_v62  ;;  %v2780_v43 = vadd.f32 %v2778_v26, %v2727_v41 }
 0x273   :  { %v2826_v59 = vsel %vm2825_vm12, %v2820_v17, %v2822_v22 }
 0x274   :  { %v2830_v49 = vmul.f32 %v2826_v59, %v2795_v24 }
 0x276   :  { %v2832_v32 = vadd.f32 %v2830_v49, %v2779_v35  ;;  %v2824_v46 = vpop.permute.xlu1 %2823 }
 0x277   :  { %v2827_v5 = vsel %vm2825_vm12, %v2822_v22, %v2824_v46 }
 0x278   :  { %v2972_v19 = vmul.f32 -1.442695, %v2832_v32  ;;  %v2831_v54 = vmul.f32 %v2827_v5, %v2799_v61 }
 0x27a   :  { %3037 = vpow2.f32 %v2972_v19  ;;  %v2833_v13 = vadd.f32 %v2831_v54, %v2780_v43 }
 0x27c   :  { %v2973_v52 = vmul.f32 -1.442695, %v2833_v13 }
 0x27e   :  { %3039 = vpow2.f32 %v2973_v52 }
 0x284   :  { %v3038_v29 = vpop.eup %3037 }
 0x285   :  { %v2840_v20 = vadd.f32 1.0, %v3038_v29 }
 0x287   :  { %3041 = vrcp.f32 %v2840_v20 }
 0x288   :  { %v3040_v34 = vpop.eup %3039 }
 0x289   :  { %v2841_v21 = vadd.f32 1.0, %v3040_v34 }
 0x28b   :  { %3043 = vrcp.f32 %v2841_v21 }
 0x291   :  { %v3042_v38 = vpop.eup %3041 }
 0x295   :  { %v3044_v39 = vpop.eup %3043 }
 0x296   :  { %v2848_v60 = vcombine.low %v3042_v38, %v3044_v39 }
 0x298   :  { %2974 = vst.sshfl [vmem:[#allocation12] sm:$0x33 pattern:$0x76325410] %v2848_v60 }
 0x299   :  { %3119 = shalt.err (!%p3116_p11)
}
 0x29a   :  { %s3120_s27 = scalar_lea.hbm %s4900_s3, 64 }
 0x29b   :  { %p3121_p12 = scmp.ne.s32.totalorder %s4900_s3, %s3120_s27  ;;  %p3124_p13 = scmp.lt.u32.totalorder %s3120_s27, %s4900_s3 }
 0x29d   :  { %p3126_p0 = pnand %p3124_p13, %p3121_p12 }
 0x29f   :  { %3129 = shalt.err (!%p3126_p0)
}
 0x2a0   :  { %2867 = dma.vmem_to_hbm [thread:$0]  %s2865_s16, 64, %s4900_s3, [#allocation7]  }
 0x2a1   :  { %3136 = dma.done.wait [#allocation7], 64  }
 0x2a2   :  { %3137 = vsyncadd [#allocation7], 4294967232 }
 0x2a3   :  { %2871 = vsyncpa [#allocation6], 1 }
 0x2a4   :  { %2872 = vsyncpa [#allocation11], 1 }
 0x2a5   :  { %2873 = vsyncpa [#allocation7], 1 }
 0x2a6   :  { %2874 = vsyncpa [#allocation8], 1 }

</bundles_post_ra>
